<compile_context>
chip_gen: v7x
topology: tpu7x:2x2x1
jax: 0.10.0
libtpu: 0.0.40
codegen_flags: <defaults>
</compile_context>

<pallas_src>
import functools

import jax
import jax.numpy as jnp
from jax.experimental import pallas as pl
from jax.experimental.pallas import tpu as pltpu

_TAPS = tuple((ky, kx) for ky in range(3) for kx in range(3))


# ----------------------------------------------------------------------------
# Fused forward kernel (one grid step = one batch tile of B samples)
# ----------------------------------------------------------------------------

def _make_vqe_kernel(B, H, W, channel, embed_dim, n_embed):
    H1, W1 = H, W                  # conv1 spatial
    H2, W2 = H // 2, W // 2        # conv2 spatial (after pool1)
    H3, W3 = H // 4, W // 4        # conv3/conv4/VQ spatial (after pool2)
    HW3 = H3 * W3
    f32 = jnp.float32
    bf16 = jnp.bfloat16

    def pool2x2(x):
        # (b, h, w, c) -> (b, h/2, w/2, c); value-only ops, no stores.
        b, h, w, c = x.shape
        xv = x.reshape(b, h // 2, 2, w, c)            # split a leading dim (safe)
        th = jnp.maximum(xv[:, :, 0], xv[:, :, 1])    # vertical max, (b, h/2, w, c)
        cols = [jnp.maximum(th[:, :, 2 * j:2 * j + 1, :],
                            th[:, :, 2 * j + 1:2 * j + 2, :])
                for j in range(w // 2)]
        return jnp.concatenate(cols, axis=2)          # horizontal max, 1 concat

    def pad_hw(x):
        # zero-pad H and W by 1 on each side, as a value (no scratch buffers).
        b, h, w, c = x.shape
        zc = jnp.zeros((b, h, 1, c), x.dtype)
        x = jnp.concatenate([zc, x, zc], axis=2)
        zr = jnp.zeros((b, 1, w + 2, c), x.dtype)
        return jnp.concatenate([zr, x, zr], axis=1)

    def conv3x3(xp, w_ref, s_ref):
        # One full-plane im2col matmul: (b*ho*wo, 9*cin) x (9*cin, cout).
        b, hp, wp, cin = xp.shape
        ho, wo = hp - 2, wp - 2
        cols = [xp[:, ky:ky + ho, kx:kx + wo, :].reshape(b * ho * wo, cin)
                for (ky, kx) in _TAPS]
        patches = jnp.concatenate(cols, axis=1).astype(bf16)
        z = jnp.dot(patches, w_ref[...], preferred_element_type=f32) + s_ref[...]
        return jnp.maximum(z, 0.0)                    # folded BN + ReLU, (b*ho*wo, cout)

    def kernel(x_ref,                                 # (B, H+2, W+2, 1) padded input
               w1_ref, s1_ref,                        # conv1 (9, 16), (1, 16)  f32
               w2_ref, s2_ref,                        # conv2 (144, 32) bf16, (1, 32)
               w3_ref, s3_ref,                        # conv3 (288, 64) bf16, (1, 64)
               w4_ref, s4_ref,                        # conv4 (576, C)  bf16, (1, C)
               wq_ref, bq_ref,                        # 1x1 conv (C, D) bf16, (1, D)
               emb_ref, embT_ref, e2_ref,             # (D, E), (E, D), (1, E)  f32
               fw1_ref, fb1_ref, fw2_ref, fb2_ref,    # FC head (bf16 weights)
               logp_ref, sq_ref, idx_ref):            # per-tile output blocks
        xv = x_ref[...]                               # (B, H+2, W+2, 1) f32

        # ---- conv1 3x3 (1 -> 16) + folded BN + ReLU: Cin=1 -> VPU broadcast taps
        z1 = jnp.zeros((B, H1, W1, 16), f32)
        for t, (ky, kx) in enumerate(_TAPS):
            patch = xv[:, ky:ky + H1, kx:kx + W1, :]                 # (B, H1, W1, 1)
            z1 = z1 + patch * w1_ref[t:t + 1, :].reshape(1, 1, 1, 16)
        z1 = jnp.maximum(z1 + s1_ref[...].reshape(1, 1, 1, 16), 0.0)

        # ---- pool1 -> conv2 (16 -> 32): one (B*H2*W2, 144) x (144, 32) matmul
        z2 = conv3x3(pad_hw(pool2x2(z1)), w2_ref, s2_ref)
        z2 = z2.reshape(B, H2, W2, 32)

        # ---- pool2 -> conv3 (32 -> 64): one (B*HW3, 288) x (288, 64) matmul
        z3 = conv3x3(pad_hw(pool2x2(z2)), w3_ref, s3_ref)
        z3 = z3.reshape(B, H3, W3, 64)

        # ---- conv4 (64 -> channel): one (B*HW3, 576) x (576, C) matmul, kept in vregs
        x4 = conv3x3(pad_hw(z3), w4_ref, s4_ref)                     # (B*HW3, C)

        # ---- 1x1 quantize conv
        qin = (jnp.dot(x4.astype(bf16), wq_ref[...], preferred_element_type=f32)
               + bq_ref[...])                                        # (B*HW3, D), f32

        # ---- vector quantizer (f32 distances, first-match argmin)
        x2 = jnp.sum(qin * qin, axis=1, keepdims=True)               # (B*HW3, 1)
        dist = (x2 - 2.0 * jnp.dot(qin, emb_ref[...], preferred_element_type=f32)
                + e2_ref[...])                                       # (B*HW3, E)
        mind = jnp.min(dist, axis=1, keepdims=True)
        lane = jax.lax.broadcasted_iota(jnp.int32, dist.shape, 1)
        idx = jnp.min(jnp.where(dist == mind, lane, n_embed),        # first-match argmin
                      axis=1, keepdims=True)                         # (B*HW3, 1)
        onehot = (lane == idx).astype(f32)                           # (B*HW3, E)
        quant = jnp.dot(onehot, embT_ref[...], preferred_element_type=f32)  # (B*HW3, D)

        # per-sample sum of squared commitment error
        d = quant - qin
        d2 = jnp.sum(d * d, axis=1, keepdims=True).reshape(B, HW3, 1)
        sq_ref[0] = jnp.sum(d2, axis=1)                              # (B, 1)

        # lane-dense flatten: (B*HW3, C) -> (B, HW3*C) via position slices + one concat
        quant3 = quant.reshape(B, HW3, embed_dim)
        qflat = jnp.concatenate([quant3[:, p, :] for p in range(HW3)], axis=1)
        idx3 = idx.reshape(B, HW3, 1)
        idx_ref[0] = jnp.concatenate([idx3[:, p, :] for p in range(HW3)], axis=1)

        # ---- FC head: Linear -> LeakyReLU -> (Dropout = identity) -> Linear
        #      fw1 rows are pre-permuted to (p = y*W3 + x, d) order -> single matmul.
        h = (jnp.dot(qflat.astype(bf16), fw1_ref[...], preferred_element_type=f32)
             + fb1_ref[...])                                         # (B, n_hidden)
        h = jnp.where(h > 0, h, 0.01 * h)                            # LeakyReLU(0.01)
        logits = (jnp.dot(h.astype(bf16), fw2_ref[...], preferred_element_type=f32)
                  + fb2_ref[...])                                    # (B, n_classes)
        mx = jnp.max(logits, axis=1, keepdims=True)
        lse = mx + jnp.log(jnp.sum(jnp.exp(logits - mx), axis=1, keepdims=True))
        logp_ref[0] = logits - lse                                   # (B, n_classes)

    return kernel


# ----------------------------------------------------------------------------
# Parameter packing (done once, outside the forward pass)
# ----------------------------------------------------------------------------

def _fold_conv_bn(w, b, gamma, beta, rmean, rvar, eps=1e-5, dtype=jnp.float32):
    """Fold eval-mode BatchNorm + conv bias into a (9*Cin, Cout) weight + shift."""
    cout = w.shape[0]
    scale = gamma / jnp.sqrt(rvar + eps)
    wmat = (jnp.transpose(w, (2, 3, 1, 0)).reshape(-1, cout) * scale[None, :]).astype(dtype)
    shift = (beta + (b - rmean) * scale).reshape(1, cout).astype(jnp.float32)
    return wmat, shift


def pack_params(raw, H, W, mxu_dtype=jnp.bfloat16):
    channel = raw["conv4"][0].shape[0]
    embed_dim, n_embed = raw["embed"].shape
    n_hidden, fc_in = raw["fc1_w"].shape
    n_classes = raw["fc2_w"].shape[0]
    H3, W3 = H // 4, W // 4
    assert fc_in == embed_dim * H3 * W3

    w1, s1 = _fold_conv_bn(*raw["conv1"], dtype=jnp.float32)     # conv1 stays on VPU
    w2, s2 = _fold_conv_bn(*raw["conv2"], dtype=mxu_dtype)
    w3, s3 = _fold_conv_bn(*raw["conv3"], dtype=mxu_dtype)
    w4, s4 = _fold_conv_bn(*raw["conv4"], dtype=mxu_dtype)
    wq = raw["qconv_w"].reshape(embed_dim, channel).T.astype(mxu_dtype)   # (channel, D)
    bq = raw["qconv_b"].reshape(1, embed_dim).astype(jnp.float32)
    emb = raw["embed"].astype(jnp.float32)                       # (D, E), f32 for distances
    embT = emb.T                                                 # (E, D)
    e2 = jnp.sum(emb * emb, axis=0, keepdims=True)               # (1, E)
    # fc1: PyTorch flattens NCHW (d, y, x); kernel uses (p = y*W3 + x, d) order.
    fw1 = (raw["fc1_w"].T.reshape(embed_dim, H3, W3, n_hidden)
           .transpose((1, 2, 0, 3)).reshape(H3 * W3 * embed_dim, n_hidden)
           .astype(mxu_dtype))
    fb1 = raw["fc1_b"].reshape(1, n_hidden).astype(jnp.float32)
    fw2 = raw["fc2_w"].T.astype(mxu_dtype)                       # (n_hidden, n_classes)
    fb2 = raw["fc2_b"].reshape(1, n_classes).astype(jnp.float32)

    ops = (w1, s1, w2, s2, w3, s3, w4, s4, wq, bq, emb, embT, e2,
           fw1, fb1, fw2, fb2)
    meta = dict(H=H, W=W, channel=channel, embed_dim=embed_dim,
                n_embed=n_embed, n_hidden=n_hidden, n_classes=n_classes)
    return ops, meta


# ----------------------------------------------------------------------------
# Full VQE forward
# ----------------------------------------------------------------------------

def vqe_forward(x_nchw, packed, meta, b_tile_max=8):
    H, W = meta["H"], meta["W"]
    embed_dim, n_classes = meta["embed_dim"], meta["n_classes"]
    N = x_nchw.shape[0]
    H3, W3 = H // 4, W // 4
    HW3 = H3 * W3

    # Batch tile: as large as allowed, but keep >= 2 grid steps when N > 1 so
    # both v7x TensorCores get work (harmless on single-TC v5e/v6e).
    b_tile = max(1, min(b_tile_max, N))
    if N > 1 and pl.cdiv(N, b_tile) < 2:
        b_tile = pl.cdiv(N, 2)
    G = pl.cdiv(N, b_tile)
    n_pad = G * b_tile

    # Only pre-kernel work: NCHW->NHWC + zero pad (spatial halo + batch round-up).
    x_nhwc = jnp.transpose(x_nchw, (0, 2, 3, 1)).astype(jnp.float32)
    xpad = jnp.pad(x_nhwc, ((0, n_pad - N), (1, 1), (1, 1), (0, 0)))

    def full(shape):
        return pl.BlockSpec(shape, lambda n: (0,) * len(shape))

    in_specs = ([pl.BlockSpec((b_tile, H + 2, W + 2, 1), lambda n: (n, 0, 0, 0))]
                + [full(tuple(int(d) for d in p.shape)) for p in packed])
    out_specs = (
        pl.BlockSpec((1, b_tile, n_classes), lambda n: (n, 0, 0)),
        pl.BlockSpec((1, b_tile, 1), lambda n: (n, 0, 0)),
        pl.BlockSpec((1, b_tile, HW3), lambda n: (n, 0, 0)),
    )
    out_shape = (
        jax.ShapeDtypeStruct((G, b_tile, n_classes), jnp.float32),
        jax.ShapeDtypeStruct((G, b_tile, 1), jnp.float32),
        jax.ShapeDtypeStruct((G, b_tile, HW3), jnp.int32),
    )

    kernel = _make_vqe_kernel(b_tile, H, W, meta["channel"], embed_dim, meta["n_embed"])
    logp3, sq3, idx3 = pl.pallas_call(
        kernel,
        out_shape=out_shape,
        grid=(G,),
        in_specs=in_specs,
        out_specs=out_specs,
        compiler_params=pltpu.CompilerParams(dimension_semantics=("parallel",)),
    )(xpad, *packed)

    logp = logp3.reshape(n_pad, n_classes)[:N]
    sq = sq3.reshape(n_pad)[:N]
    mse = jnp.sum(sq) / (N * HW3 * embed_dim)
    diff_b = (1.25 * mse)[None]      # diff1*0.25 + diff2 (equal forward values)
    id_b = idx3.reshape(n_pad, HW3)[:N].reshape(N, H3, W3)
    return logp, diff_b, id_b


# ----------------------------------------------------------------------------
# Deterministic parameter init + run
# ----------------------------------------------------------------------------

def _make_conv_bn(key, cin, cout):
    k = jax.random.split(key, 4)
    w = 0.1 * jax.random.normal(k[0], (cout, cin, 3, 3), jnp.float32)
    b = 0.1 * jax.random.normal(k[1], (cout,), jnp.float32)
    gamma = 1.0 + 0.1 * jax.random.normal(k[2], (cout,), jnp.float32)
    beta = 0.1 * jax.random.normal(k[3], (cout,), jnp.float32)
    rmean = jnp.zeros((cout,), jnp.float32)
    rvar = jnp.ones((cout,), jnp.float32)
    return (w, b, gamma, beta, rmean, rvar)


if __name__ == "__main__":
    # Small config consistent with the module: batch=2, in_channel=1, spatial=16,
    # channel=32, embed_dim=32, n_embed=64; FC input dim = embed_dim*(H/4)*(W/4).
    N, Cin, Hin, Win = 2, 1, 16, 16
    channel, embed_dim, n_embed = 32, 32, 64
    n_hidden, n_classes = 128, 11
    Hq, Wq = Hin // 4, Win // 4
    fc_in = embed_dim * Hq * Wq

    key = jax.random.PRNGKey(0)
    ks = jax.random.split(key, 12)
    raw = {
        "conv1": _make_conv_bn(ks[0], Cin, 16),
        "conv2": _make_conv_bn(ks[1], 16, 32),
        "conv3": _make_conv_bn(ks[2], 32, 64),
        "conv4": _make_conv_bn(ks[3], 64, channel),
        "qconv_w": 0.1 * jax.random.normal(ks[4], (embed_dim, channel, 1, 1), jnp.float32),
        "qconv_b": 0.1 * jax.random.normal(ks[5], (embed_dim,), jnp.float32),
        "embed": jax.random.normal(ks[6], (embed_dim, n_embed), jnp.float32),
        "fc1_w": 0.05 * jax.random.normal(ks[7], (n_hidden, fc_in), jnp.float32),
        "fc1_b": 0.05 * jax.random.normal(ks[8], (n_hidden,), jnp.float32),
        "fc2_w": 0.05 * jax.random.normal(ks[9], (n_classes, n_hidden), jnp.float32),
        "fc2_b": 0.05 * jax.random.normal(ks[10], (n_classes,), jnp.float32),
    }
    x = jax.random.normal(ks[11], (N, Cin, Hin, Win), jnp.float32)

    packed, meta = pack_params(raw, Hin, Win)
    fwd = jax.jit(functools.partial(vqe_forward, packed=packed, meta=meta))
    logp, diff_b, id_b = fwd(x)
    jax.block_until_ready((logp, diff_b, id_b))

    assert logp.shape == (N, n_classes) and diff_b.shape == (1,)
    assert id_b.shape == (N, Hq, Wq)
    assert bool(jnp.all(jnp.isfinite(logp))) and bool(jnp.isfinite(diff_b[0]))
    # log_softmax rows should sum to ~1 in probability space
    assert bool(jnp.allclose(jnp.sum(jnp.exp(logp), axis=1), 1.0, atol=1e-4))
    assert bool(jnp.all((id_b >= 0) & (id_b < n_embed)))
    print("KERNEL_OK")
</pallas_src>

<mosaic_0001>
module attributes {stable_mosaic.version = 11 : i64} {
  func.func @kernel(%arg0: i32, %arg1: memref<1x18x18x1xf32, #tpu.memory_space<vmem>>, %arg2: memref<9x16xf32, #tpu.memory_space<vmem>>, %arg3: memref<1x16xf32, #tpu.memory_space<vmem>>, %arg4: memref<144x32xbf16, #tpu.memory_space<vmem>>, %arg5: memref<1x32xf32, #tpu.memory_space<vmem>>, %arg6: memref<288x64xbf16, #tpu.memory_space<vmem>>, %arg7: memref<1x64xf32, #tpu.memory_space<vmem>>, %arg8: memref<576x32xbf16, #tpu.memory_space<vmem>>, %arg9: memref<1x32xf32, #tpu.memory_space<vmem>>, %arg10: memref<32x32xbf16, #tpu.memory_space<vmem>>, %arg11: memref<1x32xf32, #tpu.memory_space<vmem>>, %arg12: memref<32x64xf32, #tpu.memory_space<vmem>>, %arg13: memref<64x32xf32, #tpu.memory_space<vmem>>, %arg14: memref<1x64xf32, #tpu.memory_space<vmem>>, %arg15: memref<512x128xbf16, #tpu.memory_space<vmem>>, %arg16: memref<1x128xf32, #tpu.memory_space<vmem>>, %arg17: memref<128x11xbf16, #tpu.memory_space<vmem>>, %arg18: memref<1x11xf32, #tpu.memory_space<vmem>>, %arg19: memref<1x1x11xf32, #tpu.memory_space<vmem>>, %arg20: memref<1x1x1xf32, #tpu.memory_space<vmem>>, %arg21: memref<1x1x16xi32, #tpu.memory_space<vmem>>) attributes {dimension_semantics = [#tpu.dimension_semantics<parallel>], iteration_bounds = array<i64: 2>, scalar_prefetch = 0 : i64, scratch_operands = 0 : i64, tpu.core_type = #tpu.core_type<tc>, window_params = [{transform_indices = @transform_0, window_bounds = array<i64: 1, 18, 18, 1>}, {pipeline_mode = #tpu.pipeline_mode<synchronous>, transform_indices = @transform_1, window_bounds = array<i64: 9, 16>}, {pipeline_mode = #tpu.pipeline_mode<synchronous>, transform_indices = @transform_2, window_bounds = array<i64: 1, 16>}, {pipeline_mode = #tpu.pipeline_mode<synchronous>, transform_indices = @transform_3, window_bounds = array<i64: 144, 32>}, {pipeline_mode = #tpu.pipeline_mode<synchronous>, transform_indices = @transform_4, window_bounds = array<i64: 1, 32>}, {pipeline_mode = #tpu.pipeline_mode<synchronous>, transform_indices = @transform_5, window_bounds = array<i64: 288, 64>}, {pipeline_mode = #tpu.pipeline_mode<synchronous>, transform_indices = @transform_6, window_bounds = array<i64: 1, 64>}, {pipeline_mode = #tpu.pipeline_mode<synchronous>, transform_indices = @transform_7, window_bounds = array<i64: 576, 32>}, {pipeline_mode = #tpu.pipeline_mode<synchronous>, transform_indices = @transform_8, window_bounds = array<i64: 1, 32>}, {pipeline_mode = #tpu.pipeline_mode<synchronous>, transform_indices = @transform_9, window_bounds = array<i64: 32, 32>}, {pipeline_mode = #tpu.pipeline_mode<synchronous>, transform_indices = @transform_10, window_bounds = array<i64: 1, 32>}, {pipeline_mode = #tpu.pipeline_mode<synchronous>, transform_indices = @transform_11, window_bounds = array<i64: 32, 64>}, {pipeline_mode = #tpu.pipeline_mode<synchronous>, transform_indices = @transform_12, window_bounds = array<i64: 64, 32>}, {pipeline_mode = #tpu.pipeline_mode<synchronous>, transform_indices = @transform_13, window_bounds = array<i64: 1, 64>}, {pipeline_mode = #tpu.pipeline_mode<synchronous>, transform_indices = @transform_14, window_bounds = array<i64: 512, 128>}, {pipeline_mode = #tpu.pipeline_mode<synchronous>, transform_indices = @transform_15, window_bounds = array<i64: 1, 128>}, {pipeline_mode = #tpu.pipeline_mode<synchronous>, transform_indices = @transform_16, window_bounds = array<i64: 128, 11>}, {pipeline_mode = #tpu.pipeline_mode<synchronous>, transform_indices = @transform_17, window_bounds = array<i64: 1, 11>}, {transform_indices = @transform_18, window_bounds = array<i64: 1, 1, 11>}, {transform_indices = @transform_19, window_bounds = array<i64: 1, 1, 1>}, {transform_indices = @transform_20, window_bounds = array<i64: 1, 1, 16>}]} {
    %c0 = arith.constant 0 : index
    %c0_0 = arith.constant 0 : index
    %c0_1 = arith.constant 0 : index
    %c0_2 = arith.constant 0 : index
    %0 = vector.load %arg1[%c0, %c0_0, %c0_1, %c0_2] : memref<1x18x18x1xf32, #tpu.memory_space<vmem>>, vector<1x18x18x1xf32>
    %cst = arith.constant 0.000000e+00 : f32
    %1 = vector.broadcast %cst : f32 to vector<1x16x16x16xf32>
    %2 = vector.extract_strided_slice %0 {offsets = [0, 0, 0, 0], sizes = [1, 16, 16, 1], strides = [1, 1, 1, 1]} : vector<1x18x18x1xf32> to vector<1x16x16x1xf32>
    %c0_3 = arith.constant 0 : index
    %c0_4 = arith.constant 0 : index
    %3 = vector.load %arg2[%c0_3, %c0_4] : memref<9x16xf32, #tpu.memory_space<vmem>>, vector<1x16xf32>
    %4 = vector.shape_cast %3 : vector<1x16xf32> to vector<1x1x1x16xf32>
    %5 = vector.broadcast %2 : vector<1x16x16x1xf32> to vector<1x16x16x16xf32>
    %6 = vector.broadcast %4 : vector<1x1x1x16xf32> to vector<1x16x16x16xf32>
    %7 = arith.mulf %5, %6 : vector<1x16x16x16xf32>
    %8 = arith.addf %1, %7 : vector<1x16x16x16xf32>
    %9 = vector.extract_strided_slice %0 {offsets = [0, 0, 1, 0], sizes = [1, 16, 16, 1], strides = [1, 1, 1, 1]} : vector<1x18x18x1xf32> to vector<1x16x16x1xf32>
    %c1 = arith.constant 1 : index
    %c0_5 = arith.constant 0 : index
    %10 = vector.load %arg2[%c1, %c0_5] : memref<9x16xf32, #tpu.memory_space<vmem>>, vector<1x16xf32>
    %11 = vector.shape_cast %10 : vector<1x16xf32> to vector<1x1x1x16xf32>
    %12 = vector.broadcast %9 : vector<1x16x16x1xf32> to vector<1x16x16x16xf32>
    %13 = vector.broadcast %11 : vector<1x1x1x16xf32> to vector<1x16x16x16xf32>
    %14 = arith.mulf %12, %13 : vector<1x16x16x16xf32>
    %15 = arith.addf %8, %14 : vector<1x16x16x16xf32>
    %16 = vector.extract_strided_slice %0 {offsets = [0, 0, 2, 0], sizes = [1, 16, 16, 1], strides = [1, 1, 1, 1]} : vector<1x18x18x1xf32> to vector<1x16x16x1xf32>
    %c2 = arith.constant 2 : index
    %c0_6 = arith.constant 0 : index
    %17 = vector.load %arg2[%c2, %c0_6] : memref<9x16xf32, #tpu.memory_space<vmem>>, vector<1x16xf32>
    %18 = vector.shape_cast %17 : vector<1x16xf32> to vector<1x1x1x16xf32>
    %19 = vector.broadcast %16 : vector<1x16x16x1xf32> to vector<1x16x16x16xf32>
    %20 = vector.broadcast %18 : vector<1x1x1x16xf32> to vector<1x16x16x16xf32>
    %21 = arith.mulf %19, %20 : vector<1x16x16x16xf32>
    %22 = arith.addf %15, %21 : vector<1x16x16x16xf32>
    %23 = vector.extract_strided_slice %0 {offsets = [0, 1, 0, 0], sizes = [1, 16, 16, 1], strides = [1, 1, 1, 1]} : vector<1x18x18x1xf32> to vector<1x16x16x1xf32>
    %c3 = arith.constant 3 : index
    %c0_7 = arith.constant 0 : index
    %24 = vector.load %arg2[%c3, %c0_7] : memref<9x16xf32, #tpu.memory_space<vmem>>, vector<1x16xf32>
    %25 = vector.shape_cast %24 : vector<1x16xf32> to vector<1x1x1x16xf32>
    %26 = vector.broadcast %23 : vector<1x16x16x1xf32> to vector<1x16x16x16xf32>
    %27 = vector.broadcast %25 : vector<1x1x1x16xf32> to vector<1x16x16x16xf32>
    %28 = arith.mulf %26, %27 : vector<1x16x16x16xf32>
    %29 = arith.addf %22, %28 : vector<1x16x16x16xf32>
    %30 = vector.extract_strided_slice %0 {offsets = [0, 1, 1, 0], sizes = [1, 16, 16, 1], strides = [1, 1, 1, 1]} : vector<1x18x18x1xf32> to vector<1x16x16x1xf32>
    %c4 = arith.constant 4 : index
    %c0_8 = arith.constant 0 : index
    %31 = vector.load %arg2[%c4, %c0_8] : memref<9x16xf32, #tpu.memory_space<vmem>>, vector<1x16xf32>
    %32 = vector.shape_cast %31 : vector<1x16xf32> to vector<1x1x1x16xf32>
    %33 = vector.broadcast %30 : vector<1x16x16x1xf32> to vector<1x16x16x16xf32>
    %34 = vector.broadcast %32 : vector<1x1x1x16xf32> to vector<1x16x16x16xf32>
    %35 = arith.mulf %33, %34 : vector<1x16x16x16xf32>
    %36 = arith.addf %29, %35 : vector<1x16x16x16xf32>
    %37 = vector.extract_strided_slice %0 {offsets = [0, 1, 2, 0], sizes = [1, 16, 16, 1], strides = [1, 1, 1, 1]} : vector<1x18x18x1xf32> to vector<1x16x16x1xf32>
    %c5 = arith.constant 5 : index
    %c0_9 = arith.constant 0 : index
    %38 = vector.load %arg2[%c5, %c0_9] : memref<9x16xf32, #tpu.memory_space<vmem>>, vector<1x16xf32>
    %39 = vector.shape_cast %38 : vector<1x16xf32> to vector<1x1x1x16xf32>
    %40 = vector.broadcast %37 : vector<1x16x16x1xf32> to vector<1x16x16x16xf32>
    %41 = vector.broadcast %39 : vector<1x1x1x16xf32> to vector<1x16x16x16xf32>
    %42 = arith.mulf %40, %41 : vector<1x16x16x16xf32>
    %43 = arith.addf %36, %42 : vector<1x16x16x16xf32>
    %44 = vector.extract_strided_slice %0 {offsets = [0, 2, 0, 0], sizes = [1, 16, 16, 1], strides = [1, 1, 1, 1]} : vector<1x18x18x1xf32> to vector<1x16x16x1xf32>
    %c6 = arith.constant 6 : index
    %c0_10 = arith.constant 0 : index
    %45 = vector.load %arg2[%c6, %c0_10] : memref<9x16xf32, #tpu.memory_space<vmem>>, vector<1x16xf32>
    %46 = vector.shape_cast %45 : vector<1x16xf32> to vector<1x1x1x16xf32>
    %47 = vector.broadcast %44 : vector<1x16x16x1xf32> to vector<1x16x16x16xf32>
    %48 = vector.broadcast %46 : vector<1x1x1x16xf32> to vector<1x16x16x16xf32>
    %49 = arith.mulf %47, %48 : vector<1x16x16x16xf32>
    %50 = arith.addf %43, %49 : vector<1x16x16x16xf32>
    %51 = vector.extract_strided_slice %0 {offsets = [0, 2, 1, 0], sizes = [1, 16, 16, 1], strides = [1, 1, 1, 1]} : vector<1x18x18x1xf32> to vector<1x16x16x1xf32>
    %c7 = arith.constant 7 : index
    %c0_11 = arith.constant 0 : index
    %52 = vector.load %arg2[%c7, %c0_11] : memref<9x16xf32, #tpu.memory_space<vmem>>, vector<1x16xf32>
    %53 = vector.shape_cast %52 : vector<1x16xf32> to vector<1x1x1x16xf32>
    %54 = vector.broadcast %51 : vector<1x16x16x1xf32> to vector<1x16x16x16xf32>
    %55 = vector.broadcast %53 : vector<1x1x1x16xf32> to vector<1x16x16x16xf32>
    %56 = arith.mulf %54, %55 : vector<1x16x16x16xf32>
    %57 = arith.addf %50, %56 : vector<1x16x16x16xf32>
    %58 = vector.extract_strided_slice %0 {offsets = [0, 2, 2, 0], sizes = [1, 16, 16, 1], strides = [1, 1, 1, 1]} : vector<1x18x18x1xf32> to vector<1x16x16x1xf32>
    %c8 = arith.constant 8 : index
    %c0_12 = arith.constant 0 : index
    %59 = vector.load %arg2[%c8, %c0_12] : memref<9x16xf32, #tpu.memory_space<vmem>>, vector<1x16xf32>
    %60 = vector.shape_cast %59 : vector<1x16xf32> to vector<1x1x1x16xf32>
    %61 = vector.broadcast %58 : vector<1x16x16x1xf32> to vector<1x16x16x16xf32>
    %62 = vector.broadcast %60 : vector<1x1x1x16xf32> to vector<1x16x16x16xf32>
    %63 = arith.mulf %61, %62 : vector<1x16x16x16xf32>
    %64 = arith.addf %57, %63 : vector<1x16x16x16xf32>
    %c0_13 = arith.constant 0 : index
    %c0_14 = arith.constant 0 : index
    %65 = vector.load %arg3[%c0_13, %c0_14] : memref<1x16xf32, #tpu.memory_space<vmem>>, vector<1x16xf32>
    %66 = vector.shape_cast %65 : vector<1x16xf32> to vector<1x1x1x16xf32>
    %67 = vector.broadcast %66 : vector<1x1x1x16xf32> to vector<1x16x16x16xf32>
    %68 = arith.addf %64, %67 : vector<1x16x16x16xf32>
    %cst_15 = arith.constant 0.000000e+00 : f32
    %69 = vector.broadcast %cst_15 : f32 to vector<1x16x16x16xf32>
    %70 = arith.maximumf %68, %69 : vector<1x16x16x16xf32>
    %71 = vector.shape_cast %70 : vector<1x16x16x16xf32> to vector<1x8x2x16x16xf32>
    %72 = vector.extract_strided_slice %71 {offsets = [0, 0, 0, 0, 0], sizes = [1, 8, 1, 16, 16], strides = [1, 1, 1, 1, 1]} : vector<1x8x2x16x16xf32> to vector<1x8x1x16x16xf32>
    %73 = vector.shape_cast %72 : vector<1x8x1x16x16xf32> to vector<1x8x16x16xf32>
    %74 = vector.extract_strided_slice %71 {offsets = [0, 0, 1, 0, 0], sizes = [1, 8, 1, 16, 16], strides = [1, 1, 1, 1, 1]} : vector<1x8x2x16x16xf32> to vector<1x8x1x16x16xf32>
    %75 = vector.shape_cast %74 : vector<1x8x1x16x16xf32> to vector<1x8x16x16xf32>
    %76 = arith.maximumf %73, %75 : vector<1x8x16x16xf32>
    %77 = vector.extract_strided_slice %76 {offsets = [0, 0, 0, 0], sizes = [1, 8, 1, 16], strides = [1, 1, 1, 1]} : vector<1x8x16x16xf32> to vector<1x8x1x16xf32>
    %78 = vector.extract_strided_slice %76 {offsets = [0, 0, 1, 0], sizes = [1, 8, 1, 16], strides = [1, 1, 1, 1]} : vector<1x8x16x16xf32> to vector<1x8x1x16xf32>
    %79 = arith.maximumf %77, %78 : vector<1x8x1x16xf32>
    %80 = vector.extract_strided_slice %76 {offsets = [0, 0, 2, 0], sizes = [1, 8, 1, 16], strides = [1, 1, 1, 1]} : vector<1x8x16x16xf32> to vector<1x8x1x16xf32>
    %81 = vector.extract_strided_slice %76 {offsets = [0, 0, 3, 0], sizes = [1, 8, 1, 16], strides = [1, 1, 1, 1]} : vector<1x8x16x16xf32> to vector<1x8x1x16xf32>
    %82 = arith.maximumf %80, %81 : vector<1x8x1x16xf32>
    %83 = vector.extract_strided_slice %76 {offsets = [0, 0, 4, 0], sizes = [1, 8, 1, 16], strides = [1, 1, 1, 1]} : vector<1x8x16x16xf32> to vector<1x8x1x16xf32>
    %84 = vector.extract_strided_slice %76 {offsets = [0, 0, 5, 0], sizes = [1, 8, 1, 16], strides = [1, 1, 1, 1]} : vector<1x8x16x16xf32> to vector<1x8x1x16xf32>
    %85 = arith.maximumf %83, %84 : vector<1x8x1x16xf32>
    %86 = vector.extract_strided_slice %76 {offsets = [0, 0, 6, 0], sizes = [1, 8, 1, 16], strides = [1, 1, 1, 1]} : vector<1x8x16x16xf32> to vector<1x8x1x16xf32>
    %87 = vector.extract_strided_slice %76 {offsets = [0, 0, 7, 0], sizes = [1, 8, 1, 16], strides = [1, 1, 1, 1]} : vector<1x8x16x16xf32> to vector<1x8x1x16xf32>
    %88 = arith.maximumf %86, %87 : vector<1x8x1x16xf32>
    %89 = vector.extract_strided_slice %76 {offsets = [0, 0, 8, 0], sizes = [1, 8, 1, 16], strides = [1, 1, 1, 1]} : vector<1x8x16x16xf32> to vector<1x8x1x16xf32>
    %90 = vector.extract_strided_slice %76 {offsets = [0, 0, 9, 0], sizes = [1, 8, 1, 16], strides = [1, 1, 1, 1]} : vector<1x8x16x16xf32> to vector<1x8x1x16xf32>
    %91 = arith.maximumf %89, %90 : vector<1x8x1x16xf32>
    %92 = vector.extract_strided_slice %76 {offsets = [0, 0, 10, 0], sizes = [1, 8, 1, 16], strides = [1, 1, 1, 1]} : vector<1x8x16x16xf32> to vector<1x8x1x16xf32>
    %93 = vector.extract_strided_slice %76 {offsets = [0, 0, 11, 0], sizes = [1, 8, 1, 16], strides = [1, 1, 1, 1]} : vector<1x8x16x16xf32> to vector<1x8x1x16xf32>
    %94 = arith.maximumf %92, %93 : vector<1x8x1x16xf32>
    %95 = vector.extract_strided_slice %76 {offsets = [0, 0, 12, 0], sizes = [1, 8, 1, 16], strides = [1, 1, 1, 1]} : vector<1x8x16x16xf32> to vector<1x8x1x16xf32>
    %96 = vector.extract_strided_slice %76 {offsets = [0, 0, 13, 0], sizes = [1, 8, 1, 16], strides = [1, 1, 1, 1]} : vector<1x8x16x16xf32> to vector<1x8x1x16xf32>
    %97 = arith.maximumf %95, %96 : vector<1x8x1x16xf32>
    %98 = vector.extract_strided_slice %76 {offsets = [0, 0, 14, 0], sizes = [1, 8, 1, 16], strides = [1, 1, 1, 1]} : vector<1x8x16x16xf32> to vector<1x8x1x16xf32>
    %99 = vector.extract_strided_slice %76 {offsets = [0, 0, 15, 0], sizes = [1, 8, 1, 16], strides = [1, 1, 1, 1]} : vector<1x8x16x16xf32> to vector<1x8x1x16xf32>
    %100 = arith.maximumf %98, %99 : vector<1x8x1x16xf32>
    %101 = tpu.concatenate %79, %82, %85, %88, %91, %94, %97, %100 in 2 : vector<1x8x1x16xf32>, vector<1x8x1x16xf32>, vector<1x8x1x16xf32>, vector<1x8x1x16xf32>, vector<1x8x1x16xf32>, vector<1x8x1x16xf32>, vector<1x8x1x16xf32>, vector<1x8x1x16xf32> -> vector<1x8x8x16xf32>
    %cst_16 = arith.constant 0.000000e+00 : f32
    %102 = vector.broadcast %cst_16 : f32 to vector<1x8x1x16xf32>
    %103 = tpu.concatenate %102, %101, %102 in 2 : vector<1x8x1x16xf32>, vector<1x8x8x16xf32>, vector<1x8x1x16xf32> -> vector<1x8x10x16xf32>
    %cst_17 = arith.constant 0.000000e+00 : f32
    %104 = vector.broadcast %cst_17 : f32 to vector<1x1x10x16xf32>
    %105 = tpu.concatenate %104, %103, %104 in 1 : vector<1x1x10x16xf32>, vector<1x8x10x16xf32>, vector<1x1x10x16xf32> -> vector<1x10x10x16xf32>
    %106 = vector.extract_strided_slice %105 {offsets = [0, 0, 0, 0], sizes = [1, 8, 8, 16], strides = [1, 1, 1, 1]} : vector<1x10x10x16xf32> to vector<1x8x8x16xf32>
    %107 = vector.shape_cast %106 : vector<1x8x8x16xf32> to vector<64x16xf32>
    %108 = vector.extract_strided_slice %105 {offsets = [0, 0, 1, 0], sizes = [1, 8, 8, 16], strides = [1, 1, 1, 1]} : vector<1x10x10x16xf32> to vector<1x8x8x16xf32>
    %109 = vector.shape_cast %108 : vector<1x8x8x16xf32> to vector<64x16xf32>
    %110 = vector.extract_strided_slice %105 {offsets = [0, 0, 2, 0], sizes = [1, 8, 8, 16], strides = [1, 1, 1, 1]} : vector<1x10x10x16xf32> to vector<1x8x8x16xf32>
    %111 = vector.shape_cast %110 : vector<1x8x8x16xf32> to vector<64x16xf32>
    %112 = vector.extract_strided_slice %105 {offsets = [0, 1, 0, 0], sizes = [1, 8, 8, 16], strides = [1, 1, 1, 1]} : vector<1x10x10x16xf32> to vector<1x8x8x16xf32>
    %113 = vector.shape_cast %112 : vector<1x8x8x16xf32> to vector<64x16xf32>
    %114 = vector.extract_strided_slice %105 {offsets = [0, 1, 1, 0], sizes = [1, 8, 8, 16], strides = [1, 1, 1, 1]} : vector<1x10x10x16xf32> to vector<1x8x8x16xf32>
    %115 = vector.shape_cast %114 : vector<1x8x8x16xf32> to vector<64x16xf32>
    %116 = vector.extract_strided_slice %105 {offsets = [0, 1, 2, 0], sizes = [1, 8, 8, 16], strides = [1, 1, 1, 1]} : vector<1x10x10x16xf32> to vector<1x8x8x16xf32>
    %117 = vector.shape_cast %116 : vector<1x8x8x16xf32> to vector<64x16xf32>
    %118 = vector.extract_strided_slice %105 {offsets = [0, 2, 0, 0], sizes = [1, 8, 8, 16], strides = [1, 1, 1, 1]} : vector<1x10x10x16xf32> to vector<1x8x8x16xf32>
    %119 = vector.shape_cast %118 : vector<1x8x8x16xf32> to vector<64x16xf32>
    %120 = vector.extract_strided_slice %105 {offsets = [0, 2, 1, 0], sizes = [1, 8, 8, 16], strides = [1, 1, 1, 1]} : vector<1x10x10x16xf32> to vector<1x8x8x16xf32>
    %121 = vector.shape_cast %120 : vector<1x8x8x16xf32> to vector<64x16xf32>
    %122 = vector.extract_strided_slice %105 {offsets = [0, 2, 2, 0], sizes = [1, 8, 8, 16], strides = [1, 1, 1, 1]} : vector<1x10x10x16xf32> to vector<1x8x8x16xf32>
    %123 = vector.shape_cast %122 : vector<1x8x8x16xf32> to vector<64x16xf32>
    %124 = tpu.concatenate %107, %109, %111, %113, %115, %117, %119, %121, %123 in 1 : vector<64x16xf32>, vector<64x16xf32>, vector<64x16xf32>, vector<64x16xf32>, vector<64x16xf32>, vector<64x16xf32>, vector<64x16xf32>, vector<64x16xf32>, vector<64x16xf32> -> vector<64x144xf32>
    %125 = arith.truncf %124 : vector<64x144xf32> to vector<64x144xbf16>
    %c0_18 = arith.constant 0 : index
    %c0_19 = arith.constant 0 : index
    %126 = vector.load %arg4[%c0_18, %c0_19] : memref<144x32xbf16, #tpu.memory_space<vmem>>, vector<144x32xbf16>
    %cst_20 = arith.constant dense<0.000000e+00> : vector<64x32xf32>
    %127 = tpu.matmul %125, %126, %cst_20 {dimension_numbers = #tpu.dot_dimension_numbers<[1], [0], [0], [1], [0, 0, 1, 1], [], []>} : vector<64x144xbf16>, vector<144x32xbf16>, vector<64x32xf32> -> vector<64x32xf32>
    %c0_21 = arith.constant 0 : index
    %c0_22 = arith.constant 0 : index
    %128 = vector.load %arg5[%c0_21, %c0_22] : memref<1x32xf32, #tpu.memory_space<vmem>>, vector<1x32xf32>
    %129 = vector.broadcast %128 : vector<1x32xf32> to vector<64x32xf32>
    %130 = arith.addf %127, %129 : vector<64x32xf32>
    %cst_23 = arith.constant 0.000000e+00 : f32
    %131 = vector.broadcast %cst_23 : f32 to vector<64x32xf32>
    %132 = arith.maximumf %130, %131 : vector<64x32xf32>
    %133 = vector.shape_cast %132 : vector<64x32xf32> to vector<1x8x8x32xf32>
    %134 = vector.shape_cast %133 : vector<1x8x8x32xf32> to vector<1x4x2x8x32xf32>
    %135 = vector.extract_strided_slice %134 {offsets = [0, 0, 0, 0, 0], sizes = [1, 4, 1, 8, 32], strides = [1, 1, 1, 1, 1]} : vector<1x4x2x8x32xf32> to vector<1x4x1x8x32xf32>
    %136 = vector.shape_cast %135 : vector<1x4x1x8x32xf32> to vector<1x4x8x32xf32>
    %137 = vector.extract_strided_slice %134 {offsets = [0, 0, 1, 0, 0], sizes = [1, 4, 1, 8, 32], strides = [1, 1, 1, 1, 1]} : vector<1x4x2x8x32xf32> to vector<1x4x1x8x32xf32>
    %138 = vector.shape_cast %137 : vector<1x4x1x8x32xf32> to vector<1x4x8x32xf32>
    %139 = arith.maximumf %136, %138 : vector<1x4x8x32xf32>
    %140 = vector.extract_strided_slice %139 {offsets = [0, 0, 0, 0], sizes = [1, 4, 1, 32], strides = [1, 1, 1, 1]} : vector<1x4x8x32xf32> to vector<1x4x1x32xf32>
    %141 = vector.extract_strided_slice %139 {offsets = [0, 0, 1, 0], sizes = [1, 4, 1, 32], strides = [1, 1, 1, 1]} : vector<1x4x8x32xf32> to vector<1x4x1x32xf32>
    %142 = arith.maximumf %140, %141 : vector<1x4x1x32xf32>
    %143 = vector.extract_strided_slice %139 {offsets = [0, 0, 2, 0], sizes = [1, 4, 1, 32], strides = [1, 1, 1, 1]} : vector<1x4x8x32xf32> to vector<1x4x1x32xf32>
    %144 = vector.extract_strided_slice %139 {offsets = [0, 0, 3, 0], sizes = [1, 4, 1, 32], strides = [1, 1, 1, 1]} : vector<1x4x8x32xf32> to vector<1x4x1x32xf32>
    %145 = arith.maximumf %143, %144 : vector<1x4x1x32xf32>
    %146 = vector.extract_strided_slice %139 {offsets = [0, 0, 4, 0], sizes = [1, 4, 1, 32], strides = [1, 1, 1, 1]} : vector<1x4x8x32xf32> to vector<1x4x1x32xf32>
    %147 = vector.extract_strided_slice %139 {offsets = [0, 0, 5, 0], sizes = [1, 4, 1, 32], strides = [1, 1, 1, 1]} : vector<1x4x8x32xf32> to vector<1x4x1x32xf32>
    %148 = arith.maximumf %146, %147 : vector<1x4x1x32xf32>
    %149 = vector.extract_strided_slice %139 {offsets = [0, 0, 6, 0], sizes = [1, 4, 1, 32], strides = [1, 1, 1, 1]} : vector<1x4x8x32xf32> to vector<1x4x1x32xf32>
    %150 = vector.extract_strided_slice %139 {offsets = [0, 0, 7, 0], sizes = [1, 4, 1, 32], strides = [1, 1, 1, 1]} : vector<1x4x8x32xf32> to vector<1x4x1x32xf32>
    %151 = arith.maximumf %149, %150 : vector<1x4x1x32xf32>
    %152 = tpu.concatenate %142, %145, %148, %151 in 2 : vector<1x4x1x32xf32>, vector<1x4x1x32xf32>, vector<1x4x1x32xf32>, vector<1x4x1x32xf32> -> vector<1x4x4x32xf32>
    %cst_24 = arith.constant 0.000000e+00 : f32
    %153 = vector.broadcast %cst_24 : f32 to vector<1x4x1x32xf32>
    %154 = tpu.concatenate %153, %152, %153 in 2 : vector<1x4x1x32xf32>, vector<1x4x4x32xf32>, vector<1x4x1x32xf32> -> vector<1x4x6x32xf32>
    %cst_25 = arith.constant 0.000000e+00 : f32
    %155 = vector.broadcast %cst_25 : f32 to vector<1x1x6x32xf32>
    %156 = tpu.concatenate %155, %154, %155 in 1 : vector<1x1x6x32xf32>, vector<1x4x6x32xf32>, vector<1x1x6x32xf32> -> vector<1x6x6x32xf32>
    %157 = vector.extract_strided_slice %156 {offsets = [0, 0, 0, 0], sizes = [1, 4, 4, 32], strides = [1, 1, 1, 1]} : vector<1x6x6x32xf32> to vector<1x4x4x32xf32>
    %158 = vector.shape_cast %157 : vector<1x4x4x32xf32> to vector<16x32xf32>
    %159 = vector.extract_strided_slice %156 {offsets = [0, 0, 1, 0], sizes = [1, 4, 4, 32], strides = [1, 1, 1, 1]} : vector<1x6x6x32xf32> to vector<1x4x4x32xf32>
    %160 = vector.shape_cast %159 : vector<1x4x4x32xf32> to vector<16x32xf32>
    %161 = vector.extract_strided_slice %156 {offsets = [0, 0, 2, 0], sizes = [1, 4, 4, 32], strides = [1, 1, 1, 1]} : vector<1x6x6x32xf32> to vector<1x4x4x32xf32>
    %162 = vector.shape_cast %161 : vector<1x4x4x32xf32> to vector<16x32xf32>
    %163 = vector.extract_strided_slice %156 {offsets = [0, 1, 0, 0], sizes = [1, 4, 4, 32], strides = [1, 1, 1, 1]} : vector<1x6x6x32xf32> to vector<1x4x4x32xf32>
    %164 = vector.shape_cast %163 : vector<1x4x4x32xf32> to vector<16x32xf32>
    %165 = vector.extract_strided_slice %156 {offsets = [0, 1, 1, 0], sizes = [1, 4, 4, 32], strides = [1, 1, 1, 1]} : vector<1x6x6x32xf32> to vector<1x4x4x32xf32>
    %166 = vector.shape_cast %165 : vector<1x4x4x32xf32> to vector<16x32xf32>
    %167 = vector.extract_strided_slice %156 {offsets = [0, 1, 2, 0], sizes = [1, 4, 4, 32], strides = [1, 1, 1, 1]} : vector<1x6x6x32xf32> to vector<1x4x4x32xf32>
    %168 = vector.shape_cast %167 : vector<1x4x4x32xf32> to vector<16x32xf32>
    %169 = vector.extract_strided_slice %156 {offsets = [0, 2, 0, 0], sizes = [1, 4, 4, 32], strides = [1, 1, 1, 1]} : vector<1x6x6x32xf32> to vector<1x4x4x32xf32>
    %170 = vector.shape_cast %169 : vector<1x4x4x32xf32> to vector<16x32xf32>
    %171 = vector.extract_strided_slice %156 {offsets = [0, 2, 1, 0], sizes = [1, 4, 4, 32], strides = [1, 1, 1, 1]} : vector<1x6x6x32xf32> to vector<1x4x4x32xf32>
    %172 = vector.shape_cast %171 : vector<1x4x4x32xf32> to vector<16x32xf32>
    %173 = vector.extract_strided_slice %156 {offsets = [0, 2, 2, 0], sizes = [1, 4, 4, 32], strides = [1, 1, 1, 1]} : vector<1x6x6x32xf32> to vector<1x4x4x32xf32>
    %174 = vector.shape_cast %173 : vector<1x4x4x32xf32> to vector<16x32xf32>
    %175 = tpu.concatenate %158, %160, %162, %164, %166, %168, %170, %172, %174 in 1 : vector<16x32xf32>, vector<16x32xf32>, vector<16x32xf32>, vector<16x32xf32>, vector<16x32xf32>, vector<16x32xf32>, vector<16x32xf32>, vector<16x32xf32>, vector<16x32xf32> -> vector<16x288xf32>
    %176 = arith.truncf %175 : vector<16x288xf32> to vector<16x288xbf16>
    %c0_26 = arith.constant 0 : index
    %c0_27 = arith.constant 0 : index
    %177 = vector.load %arg6[%c0_26, %c0_27] : memref<288x64xbf16, #tpu.memory_space<vmem>>, vector<288x64xbf16>
    %cst_28 = arith.constant dense<0.000000e+00> : vector<16x64xf32>
    %178 = tpu.matmul %176, %177, %cst_28 {dimension_numbers = #tpu.dot_dimension_numbers<[1], [0], [0], [1], [0, 0, 1, 1], [], []>} : vector<16x288xbf16>, vector<288x64xbf16>, vector<16x64xf32> -> vector<16x64xf32>
    %c0_29 = arith.constant 0 : index
    %c0_30 = arith.constant 0 : index
    %179 = vector.load %arg7[%c0_29, %c0_30] : memref<1x64xf32, #tpu.memory_space<vmem>>, vector<1x64xf32>
    %180 = vector.broadcast %179 : vector<1x64xf32> to vector<16x64xf32>
    %181 = arith.addf %178, %180 : vector<16x64xf32>
    %cst_31 = arith.constant 0.000000e+00 : f32
    %182 = vector.broadcast %cst_31 : f32 to vector<16x64xf32>
    %183 = arith.maximumf %181, %182 : vector<16x64xf32>
    %184 = vector.shape_cast %183 : vector<16x64xf32> to vector<1x4x4x64xf32>
    %cst_32 = arith.constant 0.000000e+00 : f32
    %185 = vector.broadcast %cst_32 : f32 to vector<1x4x1x64xf32>
    %186 = tpu.concatenate %185, %184, %185 in 2 : vector<1x4x1x64xf32>, vector<1x4x4x64xf32>, vector<1x4x1x64xf32> -> vector<1x4x6x64xf32>
    %cst_33 = arith.constant 0.000000e+00 : f32
    %187 = vector.broadcast %cst_33 : f32 to vector<1x1x6x64xf32>
    %188 = tpu.concatenate %187, %186, %187 in 1 : vector<1x1x6x64xf32>, vector<1x4x6x64xf32>, vector<1x1x6x64xf32> -> vector<1x6x6x64xf32>
    %189 = vector.extract_strided_slice %188 {offsets = [0, 0, 0, 0], sizes = [1, 4, 4, 64], strides = [1, 1, 1, 1]} : vector<1x6x6x64xf32> to vector<1x4x4x64xf32>
    %190 = vector.shape_cast %189 : vector<1x4x4x64xf32> to vector<16x64xf32>
    %191 = vector.extract_strided_slice %188 {offsets = [0, 0, 1, 0], sizes = [1, 4, 4, 64], strides = [1, 1, 1, 1]} : vector<1x6x6x64xf32> to vector<1x4x4x64xf32>
    %192 = vector.shape_cast %191 : vector<1x4x4x64xf32> to vector<16x64xf32>
    %193 = vector.extract_strided_slice %188 {offsets = [0, 0, 2, 0], sizes = [1, 4, 4, 64], strides = [1, 1, 1, 1]} : vector<1x6x6x64xf32> to vector<1x4x4x64xf32>
    %194 = vector.shape_cast %193 : vector<1x4x4x64xf32> to vector<16x64xf32>
    %195 = vector.extract_strided_slice %188 {offsets = [0, 1, 0, 0], sizes = [1, 4, 4, 64], strides = [1, 1, 1, 1]} : vector<1x6x6x64xf32> to vector<1x4x4x64xf32>
    %196 = vector.shape_cast %195 : vector<1x4x4x64xf32> to vector<16x64xf32>
    %197 = vector.extract_strided_slice %188 {offsets = [0, 1, 1, 0], sizes = [1, 4, 4, 64], strides = [1, 1, 1, 1]} : vector<1x6x6x64xf32> to vector<1x4x4x64xf32>
    %198 = vector.shape_cast %197 : vector<1x4x4x64xf32> to vector<16x64xf32>
    %199 = vector.extract_strided_slice %188 {offsets = [0, 1, 2, 0], sizes = [1, 4, 4, 64], strides = [1, 1, 1, 1]} : vector<1x6x6x64xf32> to vector<1x4x4x64xf32>
    %200 = vector.shape_cast %199 : vector<1x4x4x64xf32> to vector<16x64xf32>
    %201 = vector.extract_strided_slice %188 {offsets = [0, 2, 0, 0], sizes = [1, 4, 4, 64], strides = [1, 1, 1, 1]} : vector<1x6x6x64xf32> to vector<1x4x4x64xf32>
    %202 = vector.shape_cast %201 : vector<1x4x4x64xf32> to vector<16x64xf32>
    %203 = vector.extract_strided_slice %188 {offsets = [0, 2, 1, 0], sizes = [1, 4, 4, 64], strides = [1, 1, 1, 1]} : vector<1x6x6x64xf32> to vector<1x4x4x64xf32>
    %204 = vector.shape_cast %203 : vector<1x4x4x64xf32> to vector<16x64xf32>
    %205 = vector.extract_strided_slice %188 {offsets = [0, 2, 2, 0], sizes = [1, 4, 4, 64], strides = [1, 1, 1, 1]} : vector<1x6x6x64xf32> to vector<1x4x4x64xf32>
    %206 = vector.shape_cast %205 : vector<1x4x4x64xf32> to vector<16x64xf32>
    %207 = tpu.concatenate %190, %192, %194, %196, %198, %200, %202, %204, %206 in 1 : vector<16x64xf32>, vector<16x64xf32>, vector<16x64xf32>, vector<16x64xf32>, vector<16x64xf32>, vector<16x64xf32>, vector<16x64xf32>, vector<16x64xf32>, vector<16x64xf32> -> vector<16x576xf32>
    %208 = arith.truncf %207 : vector<16x576xf32> to vector<16x576xbf16>
    %c0_34 = arith.constant 0 : index
    %c0_35 = arith.constant 0 : index
    %209 = vector.load %arg8[%c0_34, %c0_35] : memref<576x32xbf16, #tpu.memory_space<vmem>>, vector<576x32xbf16>
    %cst_36 = arith.constant dense<0.000000e+00> : vector<16x32xf32>
    %210 = tpu.matmul %208, %209, %cst_36 {dimension_numbers = #tpu.dot_dimension_numbers<[1], [0], [0], [1], [0, 0, 1, 1], [], []>} : vector<16x576xbf16>, vector<576x32xbf16>, vector<16x32xf32> -> vector<16x32xf32>
    %c0_37 = arith.constant 0 : index
    %c0_38 = arith.constant 0 : index
    %211 = vector.load %arg9[%c0_37, %c0_38] : memref<1x32xf32, #tpu.memory_space<vmem>>, vector<1x32xf32>
    %212 = vector.broadcast %211 : vector<1x32xf32> to vector<16x32xf32>
    %213 = arith.addf %210, %212 : vector<16x32xf32>
    %cst_39 = arith.constant 0.000000e+00 : f32
    %214 = vector.broadcast %cst_39 : f32 to vector<16x32xf32>
    %215 = arith.maximumf %213, %214 : vector<16x32xf32>
    %216 = arith.truncf %215 : vector<16x32xf32> to vector<16x32xbf16>
    %c0_40 = arith.constant 0 : index
    %c0_41 = arith.constant 0 : index
    %217 = vector.load %arg10[%c0_40, %c0_41] : memref<32x32xbf16, #tpu.memory_space<vmem>>, vector<32x32xbf16>
    %cst_42 = arith.constant dense<0.000000e+00> : vector<16x32xf32>
    %218 = tpu.matmul %216, %217, %cst_42 {dimension_numbers = #tpu.dot_dimension_numbers<[1], [0], [0], [1], [0, 0, 1, 1], [], []>} : vector<16x32xbf16>, vector<32x32xbf16>, vector<16x32xf32> -> vector<16x32xf32>
    %c0_43 = arith.constant 0 : index
    %c0_44 = arith.constant 0 : index
    %219 = vector.load %arg11[%c0_43, %c0_44] : memref<1x32xf32, #tpu.memory_space<vmem>>, vector<1x32xf32>
    %220 = vector.broadcast %219 : vector<1x32xf32> to vector<16x32xf32>
    %221 = arith.addf %218, %220 : vector<16x32xf32>
    %222 = arith.mulf %221, %221 : vector<16x32xf32>
    %cst_45 = arith.constant dense<0.000000e+00> : vector<16xf32>
    %223 = vector.multi_reduction <add>, %222, %cst_45 [1] : vector<16x32xf32> to vector<16xf32>
    %224 = vector.shape_cast %223 : vector<16xf32> to vector<16x1xf32>
    %c0_46 = arith.constant 0 : index
    %c0_47 = arith.constant 0 : index
    %225 = vector.load %arg12[%c0_46, %c0_47] : memref<32x64xf32, #tpu.memory_space<vmem>>, vector<32x64xf32>
    %cst_48 = arith.constant dense<0.000000e+00> : vector<16x64xf32>
    %226 = tpu.matmul %221, %225, %cst_48 {dimension_numbers = #tpu.dot_dimension_numbers<[1], [0], [0], [1], [0, 0, 1, 1], [], []>} : vector<16x32xf32>, vector<32x64xf32>, vector<16x64xf32> -> vector<16x64xf32>
    %cst_49 = arith.constant 2.000000e+00 : f32
    %227 = vector.broadcast %cst_49 : f32 to vector<16x64xf32>
    %228 = arith.mulf %227, %226 : vector<16x64xf32>
    %229 = vector.broadcast %224 : vector<16x1xf32> to vector<16x64xf32>
    %230 = arith.subf %229, %228 : vector<16x64xf32>
    %c0_50 = arith.constant 0 : index
    %c0_51 = arith.constant 0 : index
    %231 = vector.load %arg14[%c0_50, %c0_51] : memref<1x64xf32, #tpu.memory_space<vmem>>, vector<1x64xf32>
    %232 = vector.broadcast %231 : vector<1x64xf32> to vector<16x64xf32>
    %233 = arith.addf %230, %232 : vector<16x64xf32>
    %cst_52 = arith.constant dense<0x7F800000> : vector<16xf32>
    %234 = vector.multi_reduction <minimumf>, %233, %cst_52 [1] : vector<16x64xf32> to vector<16xf32>
    %235 = vector.shape_cast %234 : vector<16xf32> to vector<16x1xf32>
    %236 = tpu.iota {dimensions = array<i32: 1>} : vector<16x64xi32>
    %237 = vector.broadcast %235 : vector<16x1xf32> to vector<16x64xf32>
    %238 = arith.cmpf oeq, %233, %237 : vector<16x64xf32>
    %c64_i32 = arith.constant 64 : i32
    %239 = vector.broadcast %c64_i32 : i32 to vector<16x64xi32>
    %240 = arith.select %238, %236, %239 : vector<16x64xi1>, vector<16x64xi32>
    %cst_53 = arith.constant dense<2147483647> : vector<16xi32>
    %241 = vector.multi_reduction <minsi>, %240, %cst_53 [1] : vector<16x64xi32> to vector<16xi32>
    %242 = vector.shape_cast %241 : vector<16xi32> to vector<16x1xi32>
    %243 = vector.broadcast %242 : vector<16x1xi32> to vector<16x64xi32>
    %244 = arith.cmpi eq, %236, %243 : vector<16x64xi32>
    %245 = arith.extui %244 : vector<16x64xi1> to vector<16x64xi32>
    %246 = arith.sitofp %245 : vector<16x64xi32> to vector<16x64xf32>
    %c0_54 = arith.constant 0 : index
    %c0_55 = arith.constant 0 : index
    %247 = vector.load %arg13[%c0_54, %c0_55] : memref<64x32xf32, #tpu.memory_space<vmem>>, vector<64x32xf32>
    %cst_56 = arith.constant dense<0.000000e+00> : vector<16x32xf32>
    %248 = tpu.matmul %246, %247, %cst_56 {dimension_numbers = #tpu.dot_dimension_numbers<[1], [0], [0], [1], [0, 0, 1, 1], [], []>} : vector<16x64xf32>, vector<64x32xf32>, vector<16x32xf32> -> vector<16x32xf32>
    %249 = arith.subf %248, %221 : vector<16x32xf32>
    %250 = arith.mulf %249, %249 : vector<16x32xf32>
    %cst_57 = arith.constant dense<0.000000e+00> : vector<16xf32>
    %251 = vector.multi_reduction <add>, %250, %cst_57 [1] : vector<16x32xf32> to vector<16xf32>
    %252 = vector.shape_cast %251 : vector<16xf32> to vector<16x1xf32>
    %253 = vector.shape_cast %252 : vector<16x1xf32> to vector<1x16x1xf32>
    %cst_58 = arith.constant dense<0.000000e+00> : vector<1x1xf32>
    %254 = vector.multi_reduction <add>, %253, %cst_58 [1] : vector<1x16x1xf32> to vector<1x1xf32>
    %c0_59 = arith.constant 0 : index
    %c0_60 = arith.constant 0 : index
    %c0_61 = arith.constant 0 : index
    %255 = vector.load %arg20[%c0_59, %c0_60, %c0_61] : memref<1x1x1xf32, #tpu.memory_space<vmem>>, vector<1x1x1xf32>
    %256 = vector.shape_cast %255 : vector<1x1x1xf32> to vector<1x1xf32>
    %257 = vector.shape_cast %254 : vector<1x1xf32> to vector<1x1x1xf32>
    tpu.vector_store %arg20[%c0_59, %c0_60, %c0_61], %257 {strides = array<i32>} : memref<1x1x1xf32, #tpu.memory_space<vmem>>, vector<1x1x1xf32>,
    %258 = vector.shape_cast %248 : vector<16x32xf32> to vector<1x16x32xf32>
    %259 = vector.extract_strided_slice %258 {offsets = [0, 0, 0], sizes = [1, 1, 32], strides = [1, 1, 1]} : vector<1x16x32xf32> to vector<1x1x32xf32>
    %260 = vector.shape_cast %259 : vector<1x1x32xf32> to vector<1x32xf32>
    %261 = vector.extract_strided_slice %258 {offsets = [0, 1, 0], sizes = [1, 1, 32], strides = [1, 1, 1]} : vector<1x16x32xf32> to vector<1x1x32xf32>
    %262 = vector.shape_cast %261 : vector<1x1x32xf32> to vector<1x32xf32>
    %263 = vector.extract_strided_slice %258 {offsets = [0, 2, 0], sizes = [1, 1, 32], strides = [1, 1, 1]} : vector<1x16x32xf32> to vector<1x1x32xf32>
    %264 = vector.shape_cast %263 : vector<1x1x32xf32> to vector<1x32xf32>
    %265 = vector.extract_strided_slice %258 {offsets = [0, 3, 0], sizes = [1, 1, 32], strides = [1, 1, 1]} : vector<1x16x32xf32> to vector<1x1x32xf32>
    %266 = vector.shape_cast %265 : vector<1x1x32xf32> to vector<1x32xf32>
    %267 = vector.extract_strided_slice %258 {offsets = [0, 4, 0], sizes = [1, 1, 32], strides = [1, 1, 1]} : vector<1x16x32xf32> to vector<1x1x32xf32>
    %268 = vector.shape_cast %267 : vector<1x1x32xf32> to vector<1x32xf32>
    %269 = vector.extract_strided_slice %258 {offsets = [0, 5, 0], sizes = [1, 1, 32], strides = [1, 1, 1]} : vector<1x16x32xf32> to vector<1x1x32xf32>
    %270 = vector.shape_cast %269 : vector<1x1x32xf32> to vector<1x32xf32>
    %271 = vector.extract_strided_slice %258 {offsets = [0, 6, 0], sizes = [1, 1, 32], strides = [1, 1, 1]} : vector<1x16x32xf32> to vector<1x1x32xf32>
    %272 = vector.shape_cast %271 : vector<1x1x32xf32> to vector<1x32xf32>
    %273 = vector.extract_strided_slice %258 {offsets = [0, 7, 0], sizes = [1, 1, 32], strides = [1, 1, 1]} : vector<1x16x32xf32> to vector<1x1x32xf32>
    %274 = vector.shape_cast %273 : vector<1x1x32xf32> to vector<1x32xf32>
    %275 = vector.extract_strided_slice %258 {offsets = [0, 8, 0], sizes = [1, 1, 32], strides = [1, 1, 1]} : vector<1x16x32xf32> to vector<1x1x32xf32>
    %276 = vector.shape_cast %275 : vector<1x1x32xf32> to vector<1x32xf32>
    %277 = vector.extract_strided_slice %258 {offsets = [0, 9, 0], sizes = [1, 1, 32], strides = [1, 1, 1]} : vector<1x16x32xf32> to vector<1x1x32xf32>
    %278 = vector.shape_cast %277 : vector<1x1x32xf32> to vector<1x32xf32>
    %279 = vector.extract_strided_slice %258 {offsets = [0, 10, 0], sizes = [1, 1, 32], strides = [1, 1, 1]} : vector<1x16x32xf32> to vector<1x1x32xf32>
    %280 = vector.shape_cast %279 : vector<1x1x32xf32> to vector<1x32xf32>
    %281 = vector.extract_strided_slice %258 {offsets = [0, 11, 0], sizes = [1, 1, 32], strides = [1, 1, 1]} : vector<1x16x32xf32> to vector<1x1x32xf32>
    %282 = vector.shape_cast %281 : vector<1x1x32xf32> to vector<1x32xf32>
    %283 = vector.extract_strided_slice %258 {offsets = [0, 12, 0], sizes = [1, 1, 32], strides = [1, 1, 1]} : vector<1x16x32xf32> to vector<1x1x32xf32>
    %284 = vector.shape_cast %283 : vector<1x1x32xf32> to vector<1x32xf32>
    %285 = vector.extract_strided_slice %258 {offsets = [0, 13, 0], sizes = [1, 1, 32], strides = [1, 1, 1]} : vector<1x16x32xf32> to vector<1x1x32xf32>
    %286 = vector.shape_cast %285 : vector<1x1x32xf32> to vector<1x32xf32>
    %287 = vector.extract_strided_slice %258 {offsets = [0, 14, 0], sizes = [1, 1, 32], strides = [1, 1, 1]} : vector<1x16x32xf32> to vector<1x1x32xf32>
    %288 = vector.shape_cast %287 : vector<1x1x32xf32> to vector<1x32xf32>
    %289 = vector.extract_strided_slice %258 {offsets = [0, 15, 0], sizes = [1, 1, 32], strides = [1, 1, 1]} : vector<1x16x32xf32> to vector<1x1x32xf32>
    %290 = vector.shape_cast %289 : vector<1x1x32xf32> to vector<1x32xf32>
    %291 = tpu.concatenate %260, %262, %264, %266, %268, %270, %272, %274, %276, %278, %280, %282, %284, %286, %288, %290 in 1 : vector<1x32xf32>, vector<1x32xf32>, vector<1x32xf32>, vector<1x32xf32>, vector<1x32xf32>, vector<1x32xf32>, vector<1x32xf32>, vector<1x32xf32>, vector<1x32xf32>, vector<1x32xf32>, vector<1x32xf32>, vector<1x32xf32>, vector<1x32xf32>, vector<1x32xf32>, vector<1x32xf32>, vector<1x32xf32> -> vector<1x512xf32>
    %292 = vector.shape_cast %242 : vector<16x1xi32> to vector<1x16x1xi32>
    %293 = vector.extract_strided_slice %292 {offsets = [0, 0, 0], sizes = [1, 1, 1], strides = [1, 1, 1]} : vector<1x16x1xi32> to vector<1x1x1xi32>
    %294 = vector.shape_cast %293 : vector<1x1x1xi32> to vector<1x1xi32>
    %295 = vector.extract_strided_slice %292 {offsets = [0, 1, 0], sizes = [1, 1, 1], strides = [1, 1, 1]} : vector<1x16x1xi32> to vector<1x1x1xi32>
    %296 = vector.shape_cast %295 : vector<1x1x1xi32> to vector<1x1xi32>
    %297 = vector.extract_strided_slice %292 {offsets = [0, 2, 0], sizes = [1, 1, 1], strides = [1, 1, 1]} : vector<1x16x1xi32> to vector<1x1x1xi32>
    %298 = vector.shape_cast %297 : vector<1x1x1xi32> to vector<1x1xi32>
    %299 = vector.extract_strided_slice %292 {offsets = [0, 3, 0], sizes = [1, 1, 1], strides = [1, 1, 1]} : vector<1x16x1xi32> to vector<1x1x1xi32>
    %300 = vector.shape_cast %299 : vector<1x1x1xi32> to vector<1x1xi32>
    %301 = vector.extract_strided_slice %292 {offsets = [0, 4, 0], sizes = [1, 1, 1], strides = [1, 1, 1]} : vector<1x16x1xi32> to vector<1x1x1xi32>
    %302 = vector.shape_cast %301 : vector<1x1x1xi32> to vector<1x1xi32>
    %303 = vector.extract_strided_slice %292 {offsets = [0, 5, 0], sizes = [1, 1, 1], strides = [1, 1, 1]} : vector<1x16x1xi32> to vector<1x1x1xi32>
    %304 = vector.shape_cast %303 : vector<1x1x1xi32> to vector<1x1xi32>
    %305 = vector.extract_strided_slice %292 {offsets = [0, 6, 0], sizes = [1, 1, 1], strides = [1, 1, 1]} : vector<1x16x1xi32> to vector<1x1x1xi32>
    %306 = vector.shape_cast %305 : vector<1x1x1xi32> to vector<1x1xi32>
    %307 = vector.extract_strided_slice %292 {offsets = [0, 7, 0], sizes = [1, 1, 1], strides = [1, 1, 1]} : vector<1x16x1xi32> to vector<1x1x1xi32>
    %308 = vector.shape_cast %307 : vector<1x1x1xi32> to vector<1x1xi32>
    %309 = vector.extract_strided_slice %292 {offsets = [0, 8, 0], sizes = [1, 1, 1], strides = [1, 1, 1]} : vector<1x16x1xi32> to vector<1x1x1xi32>
    %310 = vector.shape_cast %309 : vector<1x1x1xi32> to vector<1x1xi32>
    %311 = vector.extract_strided_slice %292 {offsets = [0, 9, 0], sizes = [1, 1, 1], strides = [1, 1, 1]} : vector<1x16x1xi32> to vector<1x1x1xi32>
    %312 = vector.shape_cast %311 : vector<1x1x1xi32> to vector<1x1xi32>
    %313 = vector.extract_strided_slice %292 {offsets = [0, 10, 0], sizes = [1, 1, 1], strides = [1, 1, 1]} : vector<1x16x1xi32> to vector<1x1x1xi32>
    %314 = vector.shape_cast %313 : vector<1x1x1xi32> to vector<1x1xi32>
    %315 = vector.extract_strided_slice %292 {offsets = [0, 11, 0], sizes = [1, 1, 1], strides = [1, 1, 1]} : vector<1x16x1xi32> to vector<1x1x1xi32>
    %316 = vector.shape_cast %315 : vector<1x1x1xi32> to vector<1x1xi32>
    %317 = vector.extract_strided_slice %292 {offsets = [0, 12, 0], sizes = [1, 1, 1], strides = [1, 1, 1]} : vector<1x16x1xi32> to vector<1x1x1xi32>
    %318 = vector.shape_cast %317 : vector<1x1x1xi32> to vector<1x1xi32>
    %319 = vector.extract_strided_slice %292 {offsets = [0, 13, 0], sizes = [1, 1, 1], strides = [1, 1, 1]} : vector<1x16x1xi32> to vector<1x1x1xi32>
    %320 = vector.shape_cast %319 : vector<1x1x1xi32> to vector<1x1xi32>
    %321 = vector.extract_strided_slice %292 {offsets = [0, 14, 0], sizes = [1, 1, 1], strides = [1, 1, 1]} : vector<1x16x1xi32> to vector<1x1x1xi32>
    %322 = vector.shape_cast %321 : vector<1x1x1xi32> to vector<1x1xi32>
    %323 = vector.extract_strided_slice %292 {offsets = [0, 15, 0], sizes = [1, 1, 1], strides = [1, 1, 1]} : vector<1x16x1xi32> to vector<1x1x1xi32>
    %324 = vector.shape_cast %323 : vector<1x1x1xi32> to vector<1x1xi32>
    %325 = tpu.concatenate %294, %296, %298, %300, %302, %304, %306, %308, %310, %312, %314, %316, %318, %320, %322, %324 in 1 : vector<1x1xi32>, vector<1x1xi32>, vector<1x1xi32>, vector<1x1xi32>, vector<1x1xi32>, vector<1x1xi32>, vector<1x1xi32>, vector<1x1xi32>, vector<1x1xi32>, vector<1x1xi32>, vector<1x1xi32>, vector<1x1xi32>, vector<1x1xi32>, vector<1x1xi32>, vector<1x1xi32>, vector<1x1xi32> -> vector<1x16xi32>
    %c0_62 = arith.constant 0 : index
    %c0_63 = arith.constant 0 : index
    %c0_64 = arith.constant 0 : index
    %326 = vector.load %arg21[%c0_62, %c0_63, %c0_64] : memref<1x1x16xi32, #tpu.memory_space<vmem>>, vector<1x1x16xi32>
    %327 = vector.shape_cast %326 : vector<1x1x16xi32> to vector<1x16xi32>
    %328 = vector.shape_cast %325 : vector<1x16xi32> to vector<1x1x16xi32>
    tpu.vector_store %arg21[%c0_62, %c0_63, %c0_64], %328 {strides = array<i32>} : memref<1x1x16xi32, #tpu.memory_space<vmem>>, vector<1x1x16xi32>,
    %329 = arith.truncf %291 : vector<1x512xf32> to vector<1x512xbf16>
    %c0_65 = arith.constant 0 : index
    %c0_66 = arith.constant 0 : index
    %330 = vector.load %arg15[%c0_65, %c0_66] : memref<512x128xbf16, #tpu.memory_space<vmem>>, vector<512x128xbf16>
    %cst_67 = arith.constant dense<0.000000e+00> : vector<1x128xf32>
    %331 = tpu.matmul %329, %330, %cst_67 {dimension_numbers = #tpu.dot_dimension_numbers<[1], [0], [0], [1], [0, 0, 1, 1], [], []>} : vector<1x512xbf16>, vector<512x128xbf16>, vector<1x128xf32> -> vector<1x128xf32>
    %c0_68 = arith.constant 0 : index
    %c0_69 = arith.constant 0 : index
    %332 = vector.load %arg16[%c0_68, %c0_69] : memref<1x128xf32, #tpu.memory_space<vmem>>, vector<1x128xf32>
    %333 = arith.addf %331, %332 : vector<1x128xf32>
    %cst_70 = arith.constant 0.000000e+00 : f32
    %334 = vector.broadcast %cst_70 : f32 to vector<1x128xf32>
    %335 = arith.cmpf ogt, %333, %334 : vector<1x128xf32>
    %cst_71 = arith.constant 0.00999999977 : f32
    %336 = vector.broadcast %cst_71 : f32 to vector<1x128xf32>
    %337 = arith.mulf %336, %333 : vector<1x128xf32>
    %338 = arith.select %335, %333, %337 : vector<1x128xi1>, vector<1x128xf32>
    %339 = arith.truncf %338 : vector<1x128xf32> to vector<1x128xbf16>
    %c0_72 = arith.constant 0 : index
    %c0_73 = arith.constant 0 : index
    %340 = vector.load %arg17[%c0_72, %c0_73] : memref<128x11xbf16, #tpu.memory_space<vmem>>, vector<128x11xbf16>
    %cst_74 = arith.constant dense<0.000000e+00> : vector<1x11xf32>
    %341 = tpu.matmul %339, %340, %cst_74 {dimension_numbers = #tpu.dot_dimension_numbers<[1], [0], [0], [1], [0, 0, 1, 1], [], []>} : vector<1x128xbf16>, vector<128x11xbf16>, vector<1x11xf32> -> vector<1x11xf32>
    %c0_75 = arith.constant 0 : index
    %c0_76 = arith.constant 0 : index
    %342 = vector.load %arg18[%c0_75, %c0_76] : memref<1x11xf32, #tpu.memory_space<vmem>>, vector<1x11xf32>
    %343 = arith.addf %341, %342 : vector<1x11xf32>
    %cst_77 = arith.constant dense<0xFF800000> : vector<1xf32>
    %344 = vector.multi_reduction <maximumf>, %343, %cst_77 [1] : vector<1x11xf32> to vector<1xf32>
    %345 = vector.shape_cast %344 : vector<1xf32> to vector<1x1xf32>
    %346 = vector.broadcast %345 : vector<1x1xf32> to vector<1x11xf32>
    %347 = arith.subf %343, %346 : vector<1x11xf32>
    %348 = math.exp %347 : vector<1x11xf32>
    %cst_78 = arith.constant dense<0.000000e+00> : vector<1xf32>
    %349 = vector.multi_reduction <add>, %348, %cst_78 [1] : vector<1x11xf32> to vector<1xf32>
    %350 = vector.shape_cast %349 : vector<1xf32> to vector<1x1xf32>
    %351 = math.log %350 : vector<1x1xf32>
    %352 = arith.addf %345, %351 : vector<1x1xf32>
    %353 = vector.broadcast %352 : vector<1x1xf32> to vector<1x11xf32>
    %354 = arith.subf %343, %353 : vector<1x11xf32>
    %c0_79 = arith.constant 0 : index
    %c0_80 = arith.constant 0 : index
    %c0_81 = arith.constant 0 : index
    %355 = vector.load %arg19[%c0_79, %c0_80, %c0_81] : memref<1x1x11xf32, #tpu.memory_space<vmem>>, vector<1x1x11xf32>
    %356 = vector.shape_cast %355 : vector<1x1x11xf32> to vector<1x11xf32>
    %357 = vector.shape_cast %354 : vector<1x11xf32> to vector<1x1x11xf32>
    tpu.vector_store %arg19[%c0_79, %c0_80, %c0_81], %357 {strides = array<i32>} : memref<1x1x11xf32, #tpu.memory_space<vmem>>, vector<1x1x11xf32>,
    return
  }
  func.func @transform_0(%arg0: i32) -> (i32, i32, i32, i32) {
    %c0_i32 = arith.constant 0 : i32
    %c0_i32_0 = arith.constant 0 : i32
    %c0_i32_1 = arith.constant 0 : i32
    %c0_i32_2 = arith.constant 0 : i32
    return %arg0, %c0_i32, %c0_i32_0, %c0_i32_1 : i32, i32, i32, i32
  }
  func.func @transform_1(%arg0: i32) -> (i32, i32) {
    %c0_i32 = arith.constant 0 : i32
    %c0_i32_0 = arith.constant 0 : i32
    %c0_i32_1 = arith.constant 0 : i32
    return %c0_i32, %c0_i32_0 : i32, i32
  }
  func.func @transform_2(%arg0: i32) -> (i32, i32) {
    %c0_i32 = arith.constant 0 : i32
    %c0_i32_0 = arith.constant 0 : i32
    %c0_i32_1 = arith.constant 0 : i32
    return %c0_i32, %c0_i32_0 : i32, i32
  }
  func.func @transform_3(%arg0: i32) -> (i32, i32) {
    %c0_i32 = arith.constant 0 : i32
    %c0_i32_0 = arith.constant 0 : i32
    %c0_i32_1 = arith.constant 0 : i32
    return %c0_i32, %c0_i32_0 : i32, i32
  }
  func.func @transform_4(%arg0: i32) -> (i32, i32) {
    %c0_i32 = arith.constant 0 : i32
    %c0_i32_0 = arith.constant 0 : i32
    %c0_i32_1 = arith.constant 0 : i32
    return %c0_i32, %c0_i32_0 : i32, i32
  }
  func.func @transform_5(%arg0: i32) -> (i32, i32) {
    %c0_i32 = arith.constant 0 : i32
    %c0_i32_0 = arith.constant 0 : i32
    %c0_i32_1 = arith.constant 0 : i32
    return %c0_i32, %c0_i32_0 : i32, i32
  }
  func.func @transform_6(%arg0: i32) -> (i32, i32) {
    %c0_i32 = arith.constant 0 : i32
    %c0_i32_0 = arith.constant 0 : i32
    %c0_i32_1 = arith.constant 0 : i32
    return %c0_i32, %c0_i32_0 : i32, i32
  }
  func.func @transform_7(%arg0: i32) -> (i32, i32) {
    %c0_i32 = arith.constant 0 : i32
    %c0_i32_0 = arith.constant 0 : i32
    %c0_i32_1 = arith.constant 0 : i32
    return %c0_i32, %c0_i32_0 : i32, i32
  }
  func.func @transform_8(%arg0: i32) -> (i32, i32) {
    %c0_i32 = arith.constant 0 : i32
    %c0_i32_0 = arith.constant 0 : i32
    %c0_i32_1 = arith.constant 0 : i32
    return %c0_i32, %c0_i32_0 : i32, i32
  }
  func.func @transform_9(%arg0: i32) -> (i32, i32) {
    %c0_i32 = arith.constant 0 : i32
    %c0_i32_0 = arith.constant 0 : i32
    %c0_i32_1 = arith.constant 0 : i32
    return %c0_i32, %c0_i32_0 : i32, i32
  }
  func.func @transform_10(%arg0: i32) -> (i32, i32) {
    %c0_i32 = arith.constant 0 : i32
    %c0_i32_0 = arith.constant 0 : i32
    %c0_i32_1 = arith.constant 0 : i32
    return %c0_i32, %c0_i32_0 : i32, i32
  }
  func.func @transform_11(%arg0: i32) -> (i32, i32) {
    %c0_i32 = arith.constant 0 : i32
    %c0_i32_0 = arith.constant 0 : i32
    %c0_i32_1 = arith.constant 0 : i32
    return %c0_i32, %c0_i32_0 : i32, i32
  }
  func.func @transform_12(%arg0: i32) -> (i32, i32) {
    %c0_i32 = arith.constant 0 : i32
    %c0_i32_0 = arith.constant 0 : i32
    %c0_i32_1 = arith.constant 0 : i32
    return %c0_i32, %c0_i32_0 : i32, i32
  }
  func.func @transform_13(%arg0: i32) -> (i32, i32) {
    %c0_i32 = arith.constant 0 : i32
    %c0_i32_0 = arith.constant 0 : i32
    %c0_i32_1 = arith.constant 0 : i32
    return %c0_i32, %c0_i32_0 : i32, i32
  }
  func.func @transform_14(%arg0: i32) -> (i32, i32) {
    %c0_i32 = arith.constant 0 : i32
    %c0_i32_0 = arith.constant 0 : i32
    %c0_i32_1 = arith.constant 0 : i32
    return %c0_i32, %c0_i32_0 : i32, i32
  }
  func.func @transform_15(%arg0: i32) -> (i32, i32) {
    %c0_i32 = arith.constant 0 : i32
    %c0_i32_0 = arith.constant 0 : i32
    %c0_i32_1 = arith.constant 0 : i32
    return %c0_i32, %c0_i32_0 : i32, i32
  }
  func.func @transform_16(%arg0: i32) -> (i32, i32) {
    %c0_i32 = arith.constant 0 : i32
    %c0_i32_0 = arith.constant 0 : i32
    %c0_i32_1 = arith.constant 0 : i32
    return %c0_i32, %c0_i32_0 : i32, i32
  }
  func.func @transform_17(%arg0: i32) -> (i32, i32) {
    %c0_i32 = arith.constant 0 : i32
    %c0_i32_0 = arith.constant 0 : i32
    %c0_i32_1 = arith.constant 0 : i32
    return %c0_i32, %c0_i32_0 : i32, i32
  }
  func.func @transform_18(%arg0: i32) -> (i32, i32, i32) {
    %c0_i32 = arith.constant 0 : i32
    %c0_i32_0 = arith.constant 0 : i32
    %c0_i32_1 = arith.constant 0 : i32
    return %arg0, %c0_i32, %c0_i32_0 : i32, i32, i32
  }
  func.func @transform_19(%arg0: i32) -> (i32, i32, i32) {
    %c0_i32 = arith.constant 0 : i32
    %c0_i32_0 = arith.constant 0 : i32
    %c0_i32_1 = arith.constant 0 : i32
    return %arg0, %c0_i32, %c0_i32_0 : i32, i32, i32
  }
  func.func @transform_20(%arg0: i32) -> (i32, i32, i32) {
    %c0_i32 = arith.constant 0 : i32
    %c0_i32_0 = arith.constant 0 : i32
    %c0_i32_1 = arith.constant 0 : i32
    return %arg0, %c0_i32, %c0_i32_0 : i32, i32, i32
  }
}

</mosaic_0001>

<bundles_post_ra>
// kernel: vqe_forward.1
= control target key start
LH: loop header
LB: loop body
LE: loop exit
PB: predicated region body
PF: predicated region fallthrough
CT: control target
= control target key end

     0   :  { %s9685_s0 = inlined_call_operand.vmem [shape: f32[2,18,18,1], index: 0, kind: input, shape index: {}]   ;;  %s9686_s1 = inlined_call_operand.vmem [shape: f32[9,16], index: 1, kind: input, shape index: {}]   ;;  %s9687_s2 = inlined_call_operand.vmem [shape: f32[1,16], index: 2, kind: input, shape index: {}]   ;;  %s9688_s3 = inlined_call_operand.vmem [shape: bf16[144,32], index: 3, kind: input, shape index: {}]   ;;  %s9689_s4 = inlined_call_operand.vmem [shape: f32[1,32], index: 4, kind: input, shape index: {}]   ;;  %s9690_s5 = inlined_call_operand.vmem [shape: bf16[288,64], index: 5, kind: input, shape index: {}]   ;;  %s9691_s6 = inlined_call_operand.vmem [shape: f32[1,64], index: 6, kind: input, shape index: {}]   ;;  %s9692_s7 = inlined_call_operand.vmem [shape: bf16[576,32], index: 7, kind: input, shape index: {}]   ;;  %s9693_s8 = inlined_call_operand.vmem [shape: f32[1,32], index: 8, kind: input, shape index: {}]   ;;  %s9694_s9 = inlined_call_operand.vmem [shape: bf16[32,32], index: 9, kind: input, shape index: {}]   ;;  %s9695_s10 = inlined_call_operand.vmem [shape: f32[1,32], index: 10, kind: input, shape index: {}]   ;;  %s9696_s11 = inlined_call_operand.vmem [shape: f32[32,64], index: 11, kind: input, shape index: {}]   ;;  %s9697_s12 = inlined_call_operand.vmem [shape: f32[64,32], index: 12, kind: input, shape index: {}]   ;;  %s9698_s13 = inlined_call_operand.vmem [shape: f32[1,64], index: 13, kind: input, shape index: {}]   ;;  %s9699_s14 = inlined_call_operand.vmem [shape: bf16[512,128], index: 14, kind: input, shape index: {}]   ;;  %s9700_s15 = inlined_call_operand.vmem [shape: f32[1,128], index: 15, kind: input, shape index: {}]   ;;  %s9701_s16 = inlined_call_operand.vmem [shape: bf16[128,11], index: 16, kind: input, shape index: {}]   ;;  %s9702_s17 = inlined_call_operand.vmem [shape: f32[1,11], index: 17, kind: input, shape index: {}]   ;;  %s9703_s18 = inlined_call_operand.hbm [shape: f32[2,1,11], index: 18, kind: output, shape index: {0}]   ;;  %s9704_s19 = inlined_call_operand.vmem [shape: f32[2,1,1], index: 19, kind: output, shape index: {1}]   ;;  %s9705_s20 = inlined_call_operand.vmem [shape: s32[2,1,16], index: 20, kind: output, shape index: {2}]  }
   0x1   :  { %9787 = sst [smem:[#allocation34_spill]] %s9685_s0 }
   0x2   :  { %9788 = sst [smem:[#allocation35_spill]] %s9686_s1 }
   0x3   :  { %9789 = sst [smem:[#allocation36_spill]] %s9687_s2 }
   0x4   :  { %9790 = sst [smem:[#allocation37_spill]] %s9688_s3 }
   0x5   :  { %9791 = sst [smem:[#allocation38_spill]] %s9689_s4 }
   0x6   :  { %9792 = sst [smem:[#allocation39_spill]] %s9690_s5 }
   0x7   :  { %9793 = sst [smem:[#allocation40_spill]] %s9703_s18 }
   0x8   :  { %26 = vsyncpa [#allocation3], 0 }
   0x9   :  { %28 = vsyncpa [#allocation3 + $0x1], 0  ;;  %s6497_s1 = smov 0   ;;  %s6499_s22 = smov 0  }
   0xa   :  { %s6501_s23 = smov 0   ;;  %s6503_s24 = smov 0  }
   0xb LB: > { %9794 = sst [smem:[#allocation5_spill]] %s6367_s1  ;;  %s6518_s2 = sadd.s32 4294967295, %s6379_s24   ;;  %s6379_s24 = sphi %s6503_s24, %s10023_s24   ;;  %s6375_s23 = sphi %s6501_s23, %s10025_s23   ;;  %s6371_s22 = sphi %s6499_s22, %s10027_s22   ;;  %s6367_s1 = sphi %s6497_s1, %s10026_s1  }
   0xc   : > { %9795 = sst [smem:[#allocation6_spill]] %s6375_s23  ;;  %s5515_s25 = sadd.s32 4294967294, %s6379_s24  }
   0xd   : > { %9796 = sst [smem:[#allocation7_spill]] %s6379_s24  ;;  %s6522_s3 = sadd.s32 1, %s6379_s24  }
   0xe   : > { %9797 = sst [smem:[#allocation8_spill]] %s6522_s3  ;;  %s424_s26 = sadd.s32 1, %s6375_s23 }
   0xf   : > { %s421_s27 = ssub.s32 %s6379_s24, %s6522_s3  ;;  %p434_p0 = scmp.ne.s32.totalorder %s6375_s23, %s6371_s22 }
  0x10   : > { %p422_p1 = scmp.eq.s32.totalorder %s421_s27, 0  ;;  %p435_p2 = scmp.eq.s32.totalorder %s6518_s2, 1 }
  0x11   : > { %p440_p3 = scmp.ne.s32.totalorder %s6371_s22, %s6367_s1  ;;  %p441_p4 = scmp.eq.s32.totalorder %s5515_s25, 1 }
  0x12   : > { %s6533_s28 = scalar_select %p422_p1, %s6375_s23, %s424_s26  }
  0x13   : > { %p6535_p5 = por %p435_p2, %p434_p0  ;;  %p6539_p6 = por %p441_p4, %p440_p3 }
  0x14   : > { %9798 = sst [smem:[#allocation9_spill]] %s6533_s28  ;;  %p5518_p7 = scmp.ge.s32.totalorder %s6379_s24, 1 }
  0x15   : > { %s9799_s4 = scalar_select %p6535_p5, 1, 0 }
  0x16   : > { %s9801_s29 = scalar_select %p6539_p6, 1, 0 }
  0x17   : > { %9800 = sst [smem:[#allocation10_spill]] %s9799_s4  ;;  %p570_p8 = scmp.lt.s32.totalorder %s6379_s24, 3 }
  0x18   : > { %9802 = sst [smem:[#allocation11_spill]] %s9801_s29 }
  0x19   : > { %p571_p9 = pnand %p5518_p7, %p570_p8 }
  0x1b   : > { %574 = sbr.rel (%p571_p9) target bundleno = 3652 (0xe44), region = 92 }
  0x22   : > { %p633_p10 = scmp.lt.s32.totalorder %s6518_s2, 1  ;;  %v9713_v0 = vmov 0   ;;  %s9803_s26 = sld [smem:[#allocation34_spill]]  ;;  %vm1109_vm0 = vcmask 1046528   ;;  %vm1355_vm1 = vcmask 1045504   ;;  %vm2927_vm2 = vcmask 1040384  }
  0x23   : > { %5973 = vset.pattern.permute.xlu1 %v9713_v0  ;;  %5972 = vset.pattern.permute.xlu0 %v9713_v0  ;;  %s9804_s25 = sld [smem:[#allocation35_spill]]  ;;  %s9819_s23 = sld [smem:[#allocation36_spill]]  ;;  %vm2936_vm3 = vcmask 1041408   ;;  %vm2945_vm4 = vcmask 1042432   ;;  %vm2954_vm5 = vcmask 1043456   ;;  %vm2963_vm6 = vcmask 1044480  }
  0x24   : > { %s6549_s30 = scalar_select %p633_p10, %s6518_s2, 1  ;;  %3435 = vmatprep.subr.bf16.mxu0 %v9713_v0  ;;  %vm3273_vm7 = vcmask 130048   ;;  %vm3282_vm8 = vcmask 261120   ;;  %vm3291_vm9 = vcmask 392192   ;;  %vm3300_vm10 = vcmask 523264  }
  0x25   : > { %s6382_s28 = smov 48   ;;  %s9997_s21 = sld [smem:[#allocation37_spill]]  ;;  %vm3309_vm11 = vcmask 654336   ;;  %vm3318_vm12 = vcmask 785408   ;;  %vm3327_vm13 = vcmask 916480   ;;  %vm3595_vm14 = vcmask 1046532  }
  0x26   : > { %s5922_s0 = smul.u32 432, %s6549_s30  ;;  %s9771_s29 = smov 112   ;;  %vm9013_vm15 = vmor %vm2945_vm4, %vm3595_vm14  ;;  %vm4908_vm14 = vcmask 39936  }
  0x27   : > { %s10010_s5 = sld [smem:[#allocation39_spill]]  ;;  %s10011_s24 = sld [smem:[#allocation38_spill]] }
  0x28   : > { %s6556_s27 = scalar_lea.vmem %s9803_s26, %s5922_s0  ;;  %s9769_s26 = smov 96  }
  0x29   : > { %v648_v1 = vld [vmem:[%s6556_s27 + $0x18] sm:$0xff]  ;;  %v645_v2 = vld [vmem:[%s6556_s27] sm:$0xff]  ;;  %v646_v4 = vld [vmem:[%s6556_s27 + $0x8] sm:$0xff]  ;;  %s9820_s3 = smov %s9819_s23  ;;  %s9773_s0 = smov 80  }
  0x2a   : > { %712 = vperm.xlu1 %5973, %v648_v1   ;;  %702 = vperm.xlu0 %5972, %v645_v2   ;;  %v649_v3 = vld [vmem:[%s6556_s27 + $0x20] sm:$0xff]  ;;  %v652_v5 = vld [vmem:[%s6556_s27 + $0x38] sm:$0xff]  ;;  %v651_v6 = vld [vmem:[%s6556_s27 + $0x30] sm:$0xff]  ;;  %s640_s1 = scalar_lea.vmem %s9704_s19, %s6549_s30  ;;  %s5671_s18 = sshll.u32 %s6518_s2, 4 }
  0x2b   : > { %v655_v7 = vld [vmem:[%s6556_s27 + $0x50] sm:$0xff]  ;;  %v654_v8 = vld [vmem:[%s6556_s27 + $0x48] sm:$0xff]  ;;  %v657_v12 = vld [vmem:[%s6556_s27 + $0x60] sm:$0xff]  ;;  %s6391_s2 = smov [#allocation2]  }
  0x2c   : > { %v650_v9 = vld [vmem:[%s6556_s27 + $0x28] sm:$0x3]  ;;  %v647_v10 = vld [vmem:[%s6556_s27 + $0x10] sm:$0x3]  ;;  %v661_v13 = vld [vmem:[%s6556_s27 + $0x80] sm:$0xff] }
  0x2d   : > { %v658_v11 = vld [vmem:[%s6556_s27 + $0x68] sm:$0xff]  ;;  %v660_v14 = vld [vmem:[%s6556_s27 + $0x78] sm:$0xff]  ;;  %v653_v16 = vld [vmem:[%s6556_s27 + $0x40] sm:$0x3] }
  0x2e   : > { %717 = vperm.xlu1 %5973, %v649_v3   ;;  %707 = vperm.xlu0 %5972, %v646_v4   ;;  %v656_v15 = vld [vmem:[%s6556_s27 + $0x58] sm:$0x3]  ;;  %v662_v17 = vld [vmem:[%s6556_s27 + $0x88] sm:$0x3]  ;;  %v659_v18 = vld [vmem:[%s6556_s27 + $0x70] sm:$0x3] }
  0x2f   : > { %v664_v19 = vld [vmem:[%s6556_s27 + $0x98] sm:$0xff]  ;;  %v663_v20 = vld [vmem:[%s6556_s27 + $0x90] sm:$0xff]  ;;  %v666_v22 = vld [vmem:[%s6556_s27 + $0xa8] sm:$0xff] }
  0x30   : > { %v667_v21 = vld [vmem:[%s6556_s27 + $0xb0] sm:$0xff]  ;;  %v670_v23 = vld [vmem:[%s6556_s27 + $0xc8] sm:$0xff]  ;;  %v669_v24 = vld [vmem:[%s6556_s27 + $0xc0] sm:$0xff] }
  0x31   : > { %v673_v25 = vld [vmem:[%s6556_s27 + $0xe0] sm:$0xff]  ;;  %v672_v26 = vld [vmem:[%s6556_s27 + $0xd8] sm:$0xff]  ;;  %v674_v29 = vld [vmem:[%s6556_s27 + $0xe8] sm:$0x3] }
  0x32   : > { %727 = vperm.xlu1 %5973, %v652_v5   ;;  %722 = vperm.xlu0 %5972, %v651_v6   ;;  %v668_v27 = vld [vmem:[%s6556_s27 + $0xb8] sm:$0x3]  ;;  %v665_v28 = vld [vmem:[%s6556_s27 + $0xa0] sm:$0x3]  ;;  %v671_v30 = vld [vmem:[%s6556_s27 + $0xd0] sm:$0x3] }
  0x33   : > { %v676_v31 = vld [vmem:[%s6556_s27 + $0xf8] sm:$0xff]  ;;  %v675_v32 = vld [vmem:[%s6556_s27 + $0xf0] sm:$0xff]  ;;  %v678_v34 = vld [vmem:[%s6556_s27 + $0x108] sm:$0xff] }
  0x34   : > { %v679_v33 = vld [vmem:[%s6556_s27 + $0x110] sm:$0xff]  ;;  %v682_v35 = vld [vmem:[%s6556_s27 + $0x128] sm:$0xff]  ;;  %v681_v36 = vld [vmem:[%s6556_s27 + $0x120] sm:$0xff] }
  0x35   : > { %v685_v37 = vld [vmem:[%s6556_s27 + $0x140] sm:$0xff]  ;;  %v684_v38 = vld [vmem:[%s6556_s27 + $0x138] sm:$0xff]  ;;  %v686_v41 = vld [vmem:[%s6556_s27 + $0x148] sm:$0x3] }
  0x36   : > { %737 = vperm.xlu1 %5973, %v655_v7   ;;  %732 = vperm.xlu0 %5972, %v654_v8   ;;  %v680_v39 = vld [vmem:[%s6556_s27 + $0x118] sm:$0x3]  ;;  %v677_v40 = vld [vmem:[%s6556_s27 + $0x100] sm:$0x3]  ;;  %v683_v42 = vld [vmem:[%s6556_s27 + $0x130] sm:$0x3] }
  0x37   : > { %v688_v43 = vld [vmem:[%s6556_s27 + $0x158] sm:$0xff]  ;;  %v687_v44 = vld [vmem:[%s6556_s27 + $0x150] sm:$0xff]  ;;  %v690_v46 = vld [vmem:[%s6556_s27 + $0x168] sm:$0xff] }
  0x38   : > { %v691_v45 = vld [vmem:[%s6556_s27 + $0x170] sm:$0xff]  ;;  %v692_v47 = vld [vmem:[%s6556_s27 + $0x178] sm:$0x3]  ;;  %v689_v48 = vld [vmem:[%s6556_s27 + $0x160] sm:$0x3] }
  0x39   : > { %v694_v49 = vld [vmem:[%s6556_s27 + $0x188] sm:$0xff]  ;;  %v693_v50 = vld [vmem:[%s6556_s27 + $0x180] sm:$0xff]  ;;  %v696_v51 = vld [vmem:[%s6556_s27 + $0x198] sm:$0xff] }
  0x3a   : > { %936 = vperm.xlu1 %5973, %v650_v9   ;;  %931 = vperm.xlu0 %5972, %v647_v10   ;;  %v695_v52 = vld [vmem:[%s6556_s27 + $0x190] sm:$0x3]  ;;  %v698_v53 = vld [vmem:[%s6556_s27 + $0x1a8] sm:$0x3]  ;;  %v697_v54 = vld [vmem:[%s6556_s27 + $0x1a0] sm:$0xff]  ;;  %s10007_s27 = smov 80  }
  0x3b   : > { %v6615_v55 = vld [vmem:[%s9804_s25 + $0x1] ss:$0 sm:$0xff]  ;;  %v6620_v58 = vld [vmem:[%s9804_s25 + $0x3] ss:$0 sm:$0xff]  ;;  %v6625_v59 = vld [vmem:[%s9804_s25 + $0x4] ss:$0 sm:$0xff] }
  0x3c   : > { %v6630_v60 = vld [vmem:[%s9804_s25 + $0x5] ss:$0 sm:$0xff]  ;;  %v6636_v62 = vld [vmem:[%s9804_s25] ss:$0 sm:$0xff]  ;;  %v6641_v63 = vld [vmem:[%s9804_s25 + $0x2] ss:$0 sm:$0xff] }
  0x3e   : > { %747 = vperm.xlu1 %5973, %v658_v11   ;;  %742 = vperm.xlu0 %5972, %v657_v12  }
  0x42   : > { %757 = vperm.xlu1 %5973, %v661_v13   ;;  %752 = vperm.xlu0 %5972, %v660_v14  }
  0x46   : > { %946 = vperm.xlu1 %5973, %v656_v15   ;;  %941 = vperm.xlu0 %5972, %v653_v16  }
  0x4a   : > { %956 = vperm.xlu1 %5973, %v662_v17   ;;  %951 = vperm.xlu0 %5972, %v659_v18  }
  0x4e   : > { %767 = vperm.xlu1 %5973, %v664_v19   ;;  %762 = vperm.xlu0 %5972, %v663_v20  }
  0x52   : > { %777 = vperm.xlu1 %5973, %v667_v21   ;;  %772 = vperm.xlu0 %5972, %v666_v22  }
  0x56   : > { %787 = vperm.xlu1 %5973, %v670_v23   ;;  %782 = vperm.xlu0 %5972, %v669_v24  }
  0x5a   : > { %797 = vperm.xlu1 %5973, %v673_v25   ;;  %792 = vperm.xlu0 %5972, %v672_v26  }
  0x5e   : > { %966 = vperm.xlu1 %5973, %v668_v27   ;;  %961 = vperm.xlu0 %5972, %v665_v28  }
  0x62   : > { %976 = vperm.xlu1 %5973, %v674_v29   ;;  %971 = vperm.xlu0 %5972, %v671_v30  }
  0x66   : > { %807 = vperm.xlu1 %5973, %v676_v31   ;;  %802 = vperm.xlu0 %5972, %v675_v32  }
  0x6a   : > { %817 = vperm.xlu1 %5973, %v679_v33   ;;  %812 = vperm.xlu0 %5972, %v678_v34  }
  0x6e   : > { %827 = vperm.xlu1 %5973, %v682_v35   ;;  %822 = vperm.xlu0 %5972, %v681_v36  }
  0x72   : > { %837 = vperm.xlu1 %5973, %v685_v37   ;;  %832 = vperm.xlu0 %5972, %v684_v38   ;;  %v6693_v38 = vld [vmem:[%s9804_s25 + $0x6] ss:$0 sm:$0xff] }
  0x76   : > { %986 = vperm.xlu1 %5973, %v680_v39   ;;  %981 = vperm.xlu0 %5972, %v677_v40   ;;  %v6698_v39 = vld [vmem:[%s9804_s25 + $0x7] ss:$0 sm:$0xff] }
  0x7a   : > { %996 = vperm.xlu1 %5973, %v686_v41   ;;  %991 = vperm.xlu0 %5972, %v683_v42  }
  0x7e   : > { %847 = vperm.xlu1 %5973, %v688_v43   ;;  %842 = vperm.xlu0 %5972, %v687_v44   ;;  %v6715_v44 = vld [vmem:[%s9804_s25 + $0x8] ss:$0 sm:$0xff] }
  0x82   : > { %857 = vperm.xlu1 %5973, %v691_v45   ;;  %852 = vperm.xlu0 %5972, %v690_v46  }
  0x86   : > { %1006 = vperm.xlu1 %5973, %v692_v47   ;;  %1001 = vperm.xlu0 %5972, %v689_v48  }
  0x8a   : > { %1508 = vperm.xlu1 %5973, %v694_v49   ;;  %1503 = vperm.xlu0 %5972, %v693_v50  }
  0x8e   : > { %2077 = vperm.xlu1 %5973, %v696_v51   ;;  %1582 = vperm.xlu0 %5972, %v695_v52  }
  0x92   : > { %2156 = vperm.xlu1 %5973, %v698_v53   ;;  %2082 = vperm.xlu0 %5972, %v697_v54  }
  0xa9   : > { %v713_v56 = vpop.permute.xlu1 %712  ;;  %v703_v57 = vpop.permute.xlu0 %702 }
  0xaa   : > { %v1016_v61 = vmul.f32 %v6615_v55, %v713_v56  ;;  %v866_v1 = vmul.f32 %v6636_v62, %v713_v56  ;;  %v1262_v2 = vmul.f32 %v6641_v63, %v713_v56  ;;  %v1515_v3 = vmul.f32 %v6620_v58, %v713_v56 }
  0xab   : > { %v1589_v4 = vmul.f32 %v6625_v59, %v713_v56  ;;  %v1834_v5 = vmul.f32 %v6630_v60, %v713_v56  ;;  %v1013_v6 = vmul.f32 %v6615_v55, %v703_v57  ;;  %v864_v10 = vmul.f32 %v6636_v62, %v703_v57 }
  0xac   : > { %v1115_v9 = vrot.slane %v1016_v61, 1  ;;  %v1259_v13 = vmul.f32 %v6641_v63, %v703_v57  ;;  %v1361_v17 = vrot.slane %v1262_v2, 2 }
  0xad   : > { %v718_v7 = vpop.permute.xlu1 %717  ;;  %v708_v8 = vpop.permute.xlu0 %707  ;;  %v1110_v21 = vrot.slane %v1013_v6, 1  ;;  %v1685_v27 = vrot.slane %v1589_v4, 1  ;;  %v1930_v28 = vrot.slane %v1834_v5, 2 }
  0xae   : > { %v6651_v11 = vmul.f32 %v6615_v55, %v718_v7  ;;  %v6654_v12 = vmul.f32 %v6641_v63, %v718_v7  ;;  %v6658_v14 = vmul.f32 %v6625_v59, %v718_v7  ;;  %v6661_v15 = vmul.f32 %v6630_v60, %v718_v7 }
  0xaf   : > { %v6664_v16 = vmul.f32 %v6615_v55, %v708_v8  ;;  %v6669_v20 = vmul.f32 %v6641_v63, %v708_v8  ;;  %v1356_v31 = vrot.slane %v1259_v13, 2  ;;  %v867_v32 = vmul.f32 %v6636_v62, %v718_v7 }
  0xb0   : > { %v1116_v18 = vrot.slane %v6651_v11, 1  ;;  %v1362_v19 = vrot.slane %v6654_v12, 2  ;;  %v1686_v22 = vrot.slane %v6658_v14, 1  ;;  %v1931_v23 = vrot.slane %v6661_v15, 2 }
  0xb1   : > { %v1111_v24 = vrot.slane %v6664_v16, 1  ;;  %v6674_v25 = vpop.permute.xlu1 %727  ;;  %v6676_v26 = vpop.permute.xlu0 %722  ;;  %v1357_v30 = vrot.slane %v6669_v20, 2  ;;  %v865_v36 = vmul.f32 %v6636_v62, %v708_v8  ;;  %v6701_v40 = vmul.f32 %v6620_v58, %v718_v7 }
  0xb2   : > { %v1117_v29 = vsel %vm1109_vm0, %v1115_v9, %v1116_v18  ;;  %v1363_v35 = vsel %vm1355_vm1, %v1361_v17, %v1362_v19  ;;  %v1687_v41 = vsel %vm1109_vm0, %v1685_v27, %v1686_v22  ;;  %v1932_v42 = vsel %vm1355_vm1, %v1930_v28, %v1931_v23 }
  0xb3   : > { %v1224_v33 = vadd.f32 %v1117_v29, %v866_v1  ;;  %v1112_v34 = vsel %vm1109_vm0, %v1110_v21, %v1111_v24  ;;  %v1358_v43 = vsel %vm1355_vm1, %v1356_v31, %v1357_v30  ;;  %v6719_v45 = vmul.f32 %v6615_v55, %v6676_v26 }
  0xb4   : > { %v1222_v37 = vadd.f32 %v1112_v34, %v864_v10  ;;  %v6729_v50 = vmul.f32 %v6641_v63, %v6676_v26  ;;  %v6733_v51 = vmul.f32 %v6620_v58, %v6676_v26  ;;  %v6737_v52 = vmul.f32 %v6625_v59, %v6676_v26 }
  0xb5   : > { %v6721_v46 = vpop.permute.xlu1 %737  ;;  %v6723_v47 = vpop.permute.xlu0 %732  ;;  %v6725_v48 = vadd.f32 %v1363_v35, %v1224_v33  ;;  %v6741_v53 = vmul.f32 %v6630_v60, %v6676_v26  ;;  %v6745_v54 = vmul.f32 %v6693_v38, %v6676_v26  ;;  %v6749_v56 = vmul.f32 %v6698_v39, %v6676_v26 }
  0xb6   : > { %v1468_v49 = vadd.f32 %v1358_v43, %v1222_v37  ;;  %v6753_v61 = vmul.f32 %v6715_v44, %v6676_v26  ;;  %v6757_v1 = vmul.f32 %v6615_v55, %v6723_v47  ;;  %v6761_v2 = vmul.f32 %v6641_v63, %v6723_v47 }
  0xb7   : > { %v6765_v4 = vmul.f32 %v6620_v58, %v6723_v47  ;;  %v6769_v5 = vmul.f32 %v6625_v59, %v6723_v47  ;;  %v6777_v6 = vmul.f32 %v6693_v38, %v6723_v47  ;;  %v6784_v17 = vmul.f32 %v6615_v55, %v6721_v46 }
  0xb8   : > { %v1547_v57 = vadd.f32 %v1515_v3, %v1468_v49  ;;  %v6773_v3 = vmul.f32 %v6630_v60, %v6723_v47  ;;  %v6791_v31 = vmul.f32 %v6698_v39, %v6723_v47  ;;  %v6795_v37 = vmul.f32 %v6715_v44, %v6723_v47 }
  0xb9   : > { %v937_v7 = vpop.permute.xlu1 %936  ;;  %v932_v8 = vpop.permute.xlu0 %931  ;;  %v1126_v0 = vrot.slane %v6784_v17, 1 }
  0xba   : > { %v1018_v9 = vmul.f32 %v6615_v55, %v937_v7  ;;  %v1264_v10 = vmul.f32 %v6641_v63, %v937_v7  ;;  %v1591_v13 = vmul.f32 %v6625_v59, %v937_v7  ;;  %v1797_v21 = vadd.f32 %v1687_v41, %v1547_v57 }
  0xbb   : > { %v1836_v27 = vmul.f32 %v6630_v60, %v937_v7  ;;  %v1015_v28 = vmul.f32 %v6615_v55, %v932_v8  ;;  %v1261_v29 = vmul.f32 %v6641_v63, %v932_v8  ;;  %v1518_v8 = vmul.f32 %v6620_v58, %v6674_v25 }
  0xbc   : > { %v1118_v33 = vrot.slane %v1018_v9, 1  ;;  %v1364_v34 = vrot.slane %v1264_v10, 2  ;;  %v1688_v35 = vrot.slane %v1591_v13, 1  ;;  %v2090_v10 = vmul.f32 %v6693_v38, %v6674_v25 }
  0xbd   : > { %v1933_v43 = vrot.slane %v1836_v27, 2  ;;  %v1113_v49 = vrot.slane %v1015_v28, 1  ;;  %v1359_v41 = vrot.slane %v1261_v29, 2  ;;  %v6797_v57 = vpop.permute.xlu1 %747  ;;  %v6799_v7 = vpop.permute.xlu0 %742  ;;  %v871_v13 = vmul.f32 %v6636_v62, %v6721_v46 }
  0xbe   : > { %9805 = vst [vmem:[#allocation12_spill] sm:$0xff] %v6797_v57  ;;  %9806 = vst [vmem:[#allocation13_spill] sm:$0xff] %v6799_v7  ;;  %v1119_v9 = vsel %vm1109_vm0, %v1116_v18, %v1118_v33  ;;  %v6810_v27 = vadd.f32 %v1932_v42, %v1797_v21  ;;  %v1365_v11 = vsel %vm1355_vm1, %v1362_v19, %v1364_v34 }
  0xbf   : > { %v1225_v28 = vadd.f32 %v1119_v9, %v867_v32  ;;  %v1114_v29 = vsel %vm1109_vm0, %v1111_v24, %v1113_v49  ;;  %v1689_v18 = vsel %vm1109_vm0, %v1686_v22, %v1688_v35  ;;  %v1269_v42 = vmul.f32 %v6641_v63, %v6721_v46 }
  0xc0   : > { %v1223_v33 = vadd.f32 %v1114_v29, %v865_v36  ;;  %v1934_v16 = vsel %vm1355_vm1, %v1931_v23, %v1933_v43  ;;  %v1360_v24 = vsel %vm1355_vm1, %v1357_v30, %v1359_v41  ;;  %v6832_v12 = vmul.f32 %v6615_v55, %v6799_v7 }
  0xc1   : > { %v1471_v21 = vadd.f32 %v1365_v11, %v1225_v28  ;;  %v6834_v14 = vpop.permute.xlu1 %757  ;;  %v6836_v19 = vpop.permute.xlu0 %752  ;;  %v6840_v32 = vmul.f32 %v6641_v63, %v6799_v7  ;;  %v6844_v15 = vmul.f32 %v6620_v58, %v6799_v7  ;;  %v6848_v20 = vmul.f32 %v6625_v59, %v6799_v7 }
  0xc2   : > { %9807 = vst [vmem:[#allocation14_spill] sm:$0xff] %v6832_v12  ;;  %v1469_v22 = vadd.f32 %v1360_v24, %v1223_v33  ;;  %v6852_v23 = vmul.f32 %v6630_v60, %v6799_v7  ;;  %v6856_v30 = vmul.f32 %v6693_v38, %v6799_v7  ;;  %v6860_v36 = vmul.f32 %v6698_v39, %v6799_v7 }
  0xc3   : > { %9808 = vst [vmem:[#allocation15_spill] sm:$0xff] %v6840_v32  ;;  %9809 = vst [vmem:[#allocation16_spill] sm:$0xff] %v6844_v15  ;;  %v6864_v17 = vmul.f32 %v6715_v44, %v6799_v7  ;;  %v6866_v34 = vadd.f32 %v1518_v8, %v1471_v21  ;;  %v6871_v43 = vmul.f32 %v6615_v55, %v6836_v19  ;;  %v1372_v24 = vrot.slane %v1269_v42, 2 }
  0xc4   : > { %9810 = vst [vmem:[#allocation17_spill] sm:$0xff] %v6848_v20  ;;  %9811 = vst [vmem:[#allocation18_spill] sm:$0xff] %v6852_v23  ;;  %v1548_v35 = vadd.f32 %v6701_v40, %v1469_v22  ;;  %v6875_v49 = vmul.f32 %v6641_v63, %v6836_v19  ;;  %v6879_v41 = vmul.f32 %v6620_v58, %v6836_v19  ;;  %v1695_v12 = vrot.slane %v6769_v5, 1 }
  0xc5   : > { %9812 = vst [vmem:[#allocation19_spill] sm:$0xff] %v6856_v30  ;;  %9813 = vst [vmem:[#allocation20_spill] sm:$0xff] %v6860_v36  ;;  %v6883_v9 = vmul.f32 %v6625_v59, %v6836_v19  ;;  %v6887_v8 = vmul.f32 %v6630_v60, %v6836_v19  ;;  %v1596_v40 = vmul.f32 %v6625_v59, %v6721_v46  ;;  %v947_v28 = vpop.permute.xlu1 %946 }
  0xc6   : > { %9814 = vst [vmem:[#allocation21_spill] sm:$0xff] %v6864_v17  ;;  %9815 = vst [vmem:[#allocation22_spill] sm:$0xff] %v6879_v41  ;;  %v1798_v29 = vadd.f32 %v1689_v18, %v1548_v35  ;;  %v6893_v11 = vmul.f32 %v6693_v38, %v6836_v19  ;;  %v6897_v33 = vmul.f32 %v6698_v39, %v6836_v19  ;;  %v1125_v18 = vrot.slane %v6757_v1, 1 }
  0xc7   : > { %9816 = vst [vmem:[#allocation23_spill] sm:$0xff] %v6887_v8  ;;  %v1024_v21 = vmul.f32 %v6615_v55, %v947_v28  ;;  %v1841_v22 = vmul.f32 %v6630_v60, %v6721_v46  ;;  %v6904_v41 = vmul.f32 %v6698_v39, %v6721_v46  ;;  %v6909_v35 = vmul.f32 %v6715_v44, %v6721_v46 }
  0xc8   : > { %9817 = vst [vmem:[#allocation24_spill] sm:$0xff] %v6893_v11  ;;  %v870_v11 = vmul.f32 %v6636_v62, %v6723_v47  ;;  %v1270_v36 = vmul.f32 %v6641_v63, %v947_v28  ;;  %v2043_v42 = vadd.f32 %v1934_v16, %v1798_v29  ;;  %v1696_v30 = vrot.slane %v1596_v40, 1 }
  0xc9   : > { %v1128_v17 = vrot.slane %v1024_v21, 1  ;;  %v1127_v23 = vsel %vm1109_vm0, %v1125_v18, %v1126_v0  ;;  %v1597_v20 = vmul.f32 %v6625_v59, %v947_v28  ;;  %v1371_v1 = vrot.slane %v6761_v2, 2 }
  0xca   : > { %v1374_v32 = vrot.slane %v1270_v36, 2  ;;  %v1941_v57 = vrot.slane %v1841_v22, 2  ;;  %v1228_v7 = vadd.f32 %v1127_v23, %v870_v11  ;;  %v6921_v21 = vmul.f32 %v6715_v44, %v6836_v19 }
  0xcb   : > { %v1129_v15 = vsel %vm1109_vm0, %v1126_v0, %v1128_v17  ;;  %v1698_v47 = vrot.slane %v1597_v20, 1  ;;  %v9719_v16 = vrot.slane %v6904_v41, 1  ;;  %v1842_v40 = vmul.f32 %v6630_v60, %v947_v28 }
  0xcc   : > { %v1229_v8 = vadd.f32 %v1129_v15, %v871_v13  ;;  %v1940_v29 = vrot.slane %v6773_v3, 2  ;;  %v6926_v0 = vadd.f32 %v2090_v10, %v2043_v42  ;;  %v9718_v2 = vrot.slane %v6909_v35, 2 }
  0xcd   : > { %v6930_v5 = vmul.f32 %v6698_v39, %v947_v28  ;;  %v2264_v13 = vrot.slane %v6791_v31, 1  ;;  %v1373_v15 = vsel %vm1355_vm1, %v1371_v1, %v1372_v24  ;;  %v1375_v20 = vsel %vm1355_vm1, %v1372_v24, %v1374_v32 }
  0xce   : > { %v6936_v23 = vsel %vm1109_vm0, %v1695_v12, %v1696_v30  ;;  %v1943_v36 = vrot.slane %v1842_v40, 2  ;;  %v6938_v17 = vadd.f32 %v1373_v15, %v1228_v7  ;;  %v6940_v3 = vadd.f32 %v1375_v20, %v1229_v8 }
  0xcf   : > { %v6943_v10 = vsel %vm1109_vm0, %v1696_v30, %v1698_v47  ;;  %v6946_v11 = vsel %vm1355_vm1, %v1940_v29, %v1941_v57  ;;  %v2266_v31 = vsel %vm1109_vm0, %v2264_v13, %v9719_v16  ;;  %v6952_v32 = vmul.f32 %v6715_v44, %v947_v28  ;;  %v942_v13 = vpop.permute.xlu0 %941 }
  0xd0   : > { %v2509_v12 = vrot.slane %v6795_v37, 2  ;;  %v1020_v7 = vmul.f32 %v6615_v55, %v6674_v25  ;;  %v868_v30 = vmul.f32 %v6636_v62, %v6676_v26  ;;  %v1120_v24 = vrot.slane %v6719_v45, 1 }
  0xd1   : > { %v1266_v22 = vmul.f32 %v6641_v63, %v6674_v25  ;;  %v6964_v18 = vsel %vm1355_vm1, %v1941_v57, %v1943_v36  ;;  %v869_v28 = vmul.f32 %v6636_v62, %v6674_v25  ;;  %v1366_v42 = vrot.slane %v6729_v50, 2 }
  0xd2   : > { %9818 = vst [vmem:[#allocation25_spill] sm:$0xff] %v6964_v18  ;;  %v1121_v37 = vrot.slane %v1020_v7, 1  ;;  %v1593_v47 = vmul.f32 %v6625_v59, %v6674_v25  ;;  %v1690_v26 = vrot.slane %v6737_v52, 1  ;;  %v1838_v45 = vmul.f32 %v6630_v60, %v6674_v25 }
  0xd3   : > { %v1367_v1 = vrot.slane %v1266_v22, 2  ;;  %v2511_v57 = vsel %vm1355_vm1, %v2509_v12, %v9718_v2  ;;  %v2512_v40 = vrot.slane %v6952_v32, 2  ;;  %v1549_v50 = vadd.f32 %v6733_v51, %v6725_v48 }
  0xd4   : > { %v1122_v29 = vsel %vm1109_vm0, %v1120_v24, %v1121_v37  ;;  %v1691_v15 = vrot.slane %v1593_v47, 1  ;;  %v1935_v20 = vrot.slane %v6741_v53, 2  ;;  %v1936_v36 = vrot.slane %v1838_v45, 2 }
  0xd5   : > { %v2121_v52 = vadd.f32 %v6745_v54, %v6810_v27  ;;  %v1226_v7 = vadd.f32 %v1122_v29, %v868_v30  ;;  %v2164_v22 = vmul.f32 %v6698_v39, %v6674_v25  ;;  %v2259_v12 = vrot.slane %v6749_v56, 1 }
  0xd6   : > { %v2409_v32 = vmul.f32 %v6715_v44, %v6674_v25  ;;  %v1368_v24 = vsel %vm1355_vm1, %v1366_v42, %v1367_v1  ;;  %v1692_v48 = vsel %vm1109_vm0, %v1690_v26, %v1691_v15  ;;  %v2504_v51 = vrot.slane %v6753_v61, 2 }
  0xd7   : > { %v1021_v53 = vmul.f32 %v6615_v55, %v942_v13  ;;  %v1799_v47 = vadd.f32 %v1692_v48, %v1549_v50  ;;  %v2260_v45 = vrot.slane %v2164_v22, 1  ;;  %v1267_v27 = vmul.f32 %v6641_v63, %v942_v13 }
  0xd8   : > { %v2505_v54 = vrot.slane %v2409_v32, 2  ;;  %v1937_v30 = vsel %vm1355_vm1, %v1935_v20, %v1936_v36  ;;  %v1594_v56 = vmul.f32 %v6625_v59, %v942_v13  ;;  %v1839_v25 = vmul.f32 %v6630_v60, %v942_v13 }
  0xd9   : > { %v1123_v29 = vrot.slane %v1021_v53, 1  ;;  %v1472_v2 = vadd.f32 %v1368_v24, %v1226_v7  ;;  %v2044_v42 = vadd.f32 %v1937_v30, %v1799_v47  ;;  %v2261_v26 = vsel %vm1109_vm0, %v2259_v12, %v2260_v45  ;;  %v7005_v7 = vld [vmem:[%s9819_s23] ss:$0 sm:$0xff]  ;;  %s6385_s23 = smov 16  }
  0xda   : > { %v1369_v16 = vrot.slane %v1267_v27, 2  ;;  %v2371_v61 = vadd.f32 %v2261_v26, %v2121_v52  ;;  %v2506_v8 = vsel %vm1355_vm1, %v2504_v51, %v2505_v54  ;;  %v1693_v22 = vrot.slane %v1594_v56, 1 }
  0xdb   : > { %v1124_v50 = vsel %vm1109_vm0, %v1121_v37, %v1123_v29  ;;  %v2123_v32 = vadd.f32 %v6777_v6, %v2044_v42  ;;  %v1938_v53 = vrot.slane %v1839_v25, 2  ;;  %v2165_v52 = vmul.f32 %v6698_v39, %v942_v13 }
  0xdc   : > { %v1227_v48 = vadd.f32 %v1124_v50, %v869_v28  ;;  %v1370_v20 = vsel %vm1355_vm1, %v1367_v1, %v1369_v16  ;;  %v2616_v18 = vadd.f32 %v2506_v8, %v2371_v61  ;;  %v1694_v12 = vsel %vm1109_vm0, %v1691_v15, %v1693_v22 }
  0xdd   : > { %v2410_v24 = vmul.f32 %v6715_v44, %v942_v13  ;;  %v1520_v37 = vmul.f32 %v6620_v58, %v6721_v46  ;;  %v2373_v6 = vadd.f32 %v2266_v31, %v2123_v32  ;;  %v1800_v16 = vadd.f32 %v1694_v12, %v6866_v34 }
  0xde   : > { %v1473_v28 = vadd.f32 %v1370_v20, %v1227_v48  ;;  %v2092_v8 = vmul.f32 %v6693_v38, %v6721_v46  ;;  %v1939_v1 = vsel %vm1355_vm1, %v1936_v36, %v1938_v53  ;;  %v2262_v51 = vrot.slane %v2165_v52, 1 }
  0xdf   : > { %v2507_v47 = vrot.slane %v2410_v24, 2  ;;  %v1551_v15 = vadd.f32 %v6765_v4, %v1472_v2  ;;  %v2618_v27 = vadd.f32 %v2511_v57, %v2373_v6  ;;  %v2655_v30 = vadd.f32 %v7005_v7, %v2616_v18 }
  0xe0   : > { %v2045_v13 = vadd.f32 %v1939_v1, %v1800_v16  ;;  %v1552_v29 = vadd.f32 %v1520_v37, %v1473_v28  ;;  %v2263_v56 = vsel %vm1109_vm0, %v2260_v45, %v2262_v51  ;;  %v1029_v31 = vmul.f32 %v6615_v55, %v6834_v14 }
  0xe1   : > { %v1275_v34 = vmul.f32 %v6641_v63, %v6834_v14  ;;  %v9821_v46 = vrot.slane %v6930_v5, 1  ;;  %v9822_v36 = vrot.slane %v6904_v41, 1  ;;  %v2657_v4 = vadd.f32 %v7005_v7, %v2618_v27 }
  0xe2   : > { %v2124_v2 = vadd.f32 %v2092_v8, %v2045_v13  ;;  %v2372_v18 = vadd.f32 %v2263_v56, %v6926_v0  ;;  %v9823_v57 = vrot.slane %v6909_v35, 2  ;;  %v2508_v42 = vsel %vm1355_vm1, %v2505_v54, %v2507_v47  ;;  %v957_v35 = vpop.permute.xlu1 %956 }
  0xe3   : > { %v2268_v25 = vsel %vm1109_vm0, %v9822_v36, %v9821_v46  ;;  %v1602_v26 = vmul.f32 %v6625_v59, %v6834_v14  ;;  %v7038_v5 = vmul.f32 %v6630_v60, %v6834_v14  ;;  %v7041_v41 = vadd.f32 %v6936_v23, %v1551_v15 }
  0xe4   : > { %v2513_v45 = vsel %vm1355_vm1, %v9823_v57, %v2512_v40  ;;  %v2374_v61 = vadd.f32 %v2268_v25, %v2124_v2  ;;  %v2617_v50 = vadd.f32 %v2508_v42, %v2372_v18  ;;  %v875_v0 = vmul.f32 %v6636_v62, %v6834_v14 }
  0xe5   : > { %v2687_v22 = vmax.f32 %v2655_v30, 0.0  ;;  %v7046_v40 = vadd.f32 %v6943_v10, %v1552_v29  ;;  %v1136_v54 = vrot.slane %v1029_v31, 1  ;;  %v1382_v32 = vrot.slane %v1275_v34, 2 }
  0xe6   : > { %v2689_v48 = vmax.f32 %v2657_v4, 0.0  ;;  %v2619_v20 = vadd.f32 %v2513_v45, %v2374_v61  ;;  %v1706_v53 = vrot.slane %v1602_v26, 1  ;;  %v7050_v12 = vmul.f32 %v6698_v39, %v6834_v14 }
  0xe7   : > { %v1951_v23 = vrot.slane %v7038_v5, 2  ;;  %v1030_v52 = vmul.f32 %v6615_v55, %v957_v35  ;;  %v1135_v24 = vrot.slane %v6871_v43, 1  ;;  %v1276_v37 = vmul.f32 %v6641_v63, %v957_v35 }
  0xe8   : > { %v2656_v10 = vadd.f32 %v7005_v7, %v2617_v50  ;;  %v2658_v6 = vadd.f32 %v7005_v7, %v2619_v20  ;;  %v7060_v28 = vmul.f32 %v6715_v44, %v6834_v14  ;;  %v874_v16 = vmul.f32 %v6636_v62, %v6836_v19  ;;  %v9827_v20 = vld [vmem:[#allocation13_spill] sm:$0xff] }
  0xe9   : > { %v1137_v8 = vsel %vm1109_vm0, %v1135_v24, %v1136_v54  ;;  %v1138_v1 = vrot.slane %v1030_v52, 1  ;;  %v1384_v51 = vrot.slane %v1276_v37, 2  ;;  %v1603_v47 = vmul.f32 %v6625_v59, %v957_v35  ;;  %v9828_v24 = vld [vmem:[#allocation12_spill] sm:$0xff]  ;;  %v9829_v37 = vld [vmem:[#allocation14_spill] sm:$0xff] }
  0xea   : > { %v7066_v43 = vmax.f32 %v2687_v22, %v2689_v48  ;;  %v2690_v15 = vmax.f32 %v2658_v6, 0.0  ;;  %v1232_v27 = vadd.f32 %v1137_v8, %v874_v16  ;;  %v1381_v30 = vrot.slane %v6875_v49, 2  ;;  %v9826_v22 = vld [vmem:[#allocation23_spill] sm:$0xff] }
  0xeb   : > { %v1139_v13 = vsel %vm1109_vm0, %v1136_v54, %v1138_v1  ;;  %v1385_v29 = vsel %vm1355_vm1, %v1382_v32, %v1384_v51  ;;  %v1708_v56 = vrot.slane %v1603_v47, 1  ;;  %v1848_v31 = vmul.f32 %v6630_v60, %v957_v35  ;;  %v9830_v16 = vld [vmem:[#allocation15_spill] sm:$0xff] }
  0xec   : > { %9824 = vst [vmem:[#allocation26_spill] sm:$0xff] %v7066_v43  ;;  %v9721_v19 = vrot.slane %v7050_v12, 1  ;;  %v9720_v34 = vrot.slane %v7060_v28, 2  ;;  %v1233_v46 = vadd.f32 %v1139_v13, %v875_v0  ;;  %v1705_v36 = vrot.slane %v6883_v9, 1 }
  0xed   : > { %v2688_v25 = vmax.f32 %v2656_v10, 0.0  ;;  %v7076_v4 = vsel %vm1109_vm0, %v1706_v53, %v1708_v56  ;;  %v1953_v2 = vrot.slane %v1848_v31, 2  ;;  %v7079_v49 = vmul.f32 %v6698_v39, %v957_v35 }
  0xee   : > { %v1383_v57 = vsel %vm1355_vm1, %v1381_v30, %v1382_v32  ;;  %v7083_v45 = vadd.f32 %v1385_v29, %v1233_v46  ;;  %v2274_v42 = vrot.slane %v6897_v33, 1  ;;  %v2519_v50 = vrot.slane %v6921_v21, 2  ;;  %v9831_v30 = vld [vmem:[#allocation16_spill] sm:$0xff]  ;;  %v9832_v29 = vld [vmem:[#allocation17_spill] sm:$0xff] }
  0xef   : > { %v7086_v26 = vmax.f32 %v2688_v25, %v2690_v15  ;;  %v7088_v61 = vadd.f32 %v1383_v57, %v1232_v27  ;;  %v7093_v9 = vsel %vm1355_vm1, %v1951_v23, %v1953_v2  ;;  %v7097_v0 = vsel %vm1109_vm0, %v1705_v36, %v1706_v53  ;;  %v9833_v25 = vld [vmem:[#allocation18_spill] sm:$0xff] }
  0xf0   : > { %v1950_v54 = vrot.slane %v9826_v22, 2  ;;  %v7102_v33 = vmul.f32 %v6715_v44, %v957_v35  ;;  %v2276_v48 = vsel %vm1109_vm0, %v2274_v42, %v9721_v19  ;;  %v872_v52 = vmul.f32 %v6636_v62, %v9827_v20 }
  0xf1   : > { %9825 = vst [vmem:[#allocation27_spill] sm:$0xff] %v7086_v26  ;;  %v1026_v21 = vmul.f32 %v6615_v55, %v9828_v24  ;;  %v1130_v53 = vrot.slane %v9829_v37, 1  ;;  %v2521_v10 = vsel %vm1355_vm1, %v2519_v50, %v9720_v34  ;;  %v873_v35 = vmul.f32 %v6636_v62, %v9828_v24 }
  0xf2   : > { %v1272_v6 = vmul.f32 %v6641_v63, %v9828_v24  ;;  %v1376_v8 = vrot.slane %v9830_v16, 2  ;;  %v1522_v51 = vmul.f32 %v6620_v58, %v9828_v24  ;;  %v7124_v47 = vmul.f32 %v6620_v58, %v6834_v14  ;;  %v9835_v16 = vld [vmem:[#allocation19_spill] sm:$0xff] }
  0xf3   : > { %v1131_v1 = vrot.slane %v1026_v21, 1  ;;  %v1599_v15 = vmul.f32 %v6625_v59, %v9828_v24  ;;  %v1553_v13 = vadd.f32 %v9831_v30, %v6938_v17  ;;  %v1700_v56 = vrot.slane %v9832_v29, 1  ;;  %v9834_v21 = vld [vmem:[#allocation25_spill] sm:$0xff]  ;;  %v952_v30 = vpop.permute.xlu0 %951 }
  0xf4   : > { %v1377_v27 = vrot.slane %v1272_v6, 2  ;;  %v1844_v31 = vmul.f32 %v6630_v60, %v9828_v24  ;;  %v1945_v2 = vrot.slane %v9833_v25, 2  ;;  %v2046_v57 = vadd.f32 %v6946_v11, %v7041_v41 }
  0xf5   : > { %v1132_v46 = vsel %vm1109_vm0, %v1130_v53, %v1131_v1  ;;  %v1701_v36 = vrot.slane %v1599_v15, 1  ;;  %v1554_v50 = vadd.f32 %v1522_v51, %v6940_v3  ;;  %v2047_v17 = vadd.f32 %v9834_v21, %v7046_v40  ;;  %v9837_v51 = vld [vmem:[#allocation21_spill] sm:$0xff] }
  0xf6   : > { %v1230_v42 = vadd.f32 %v1132_v46, %v872_v52  ;;  %v1946_v20 = vrot.slane %v1844_v31, 2  ;;  %v1378_v37 = vsel %vm1355_vm1, %v1376_v8, %v1377_v27  ;;  %v2094_v53 = vmul.f32 %v6693_v38, %v9828_v24  ;;  %v9836_v52 = vld [vmem:[#allocation20_spill] sm:$0xff]  ;;  %v9838_v31 = vld [vmem:[#allocation22_spill] sm:$0xff] }
  0xf7   : > { %v1702_v6 = vsel %vm1109_vm0, %v1700_v56, %v1701_v36  ;;  %v2125_v15 = vadd.f32 %v9835_v16, %v2046_v57  ;;  %v2170_v3 = vmul.f32 %v6698_v39, %v9828_v24  ;;  %v2269_v40 = vrot.slane %v9836_v52, 1  ;;  %v763_v34 = vpop.permute.xlu0 %762 }
  0xf8   : > { %v1476_v29 = vadd.f32 %v1378_v37, %v1230_v42  ;;  %v1803_v25 = vadd.f32 %v1702_v6, %v1553_v13  ;;  %v1947_v11 = vsel %vm1355_vm1, %v1945_v2, %v1946_v20  ;;  %v2126_v41 = vadd.f32 %v2094_v53, %v2047_v17  ;;  %v9839_v6 = vld [vmem:[#allocation24_spill] sm:$0xff] }
  0xf9   : > { %v2415_v8 = vmul.f32 %v6715_v44, %v9828_v24  ;;  %v2514_v56 = vrot.slane %v9837_v51, 2  ;;  %v2270_v57 = vrot.slane %v2170_v3, 1  ;;  %v1027_v42 = vmul.f32 %v6615_v55, %v952_v30 }
  0xfa   : > { %v1555_v46 = vadd.f32 %v9838_v31, %v1476_v29  ;;  %v2048_v21 = vadd.f32 %v1947_v11, %v1803_v25  ;;  %v1273_v2 = vmul.f32 %v6641_v63, %v952_v30  ;;  %v1600_v37 = vmul.f32 %v6625_v59, %v952_v30 }
  0xfb   : > { %v2515_v13 = vrot.slane %v2415_v8, 2  ;;  %v1845_v17 = vmul.f32 %v6630_v60, %v952_v30  ;;  %v2271_v16 = vsel %vm1109_vm0, %v2269_v40, %v2270_v57  ;;  %v1133_v24 = vrot.slane %v1027_v42, 1  ;;  %v7164_v42 = vpop.permute.xlu1 %767 }
  0xfc   : > { %v2127_v53 = vadd.f32 %v9839_v6, %v2048_v21  ;;  %v2171_v52 = vmul.f32 %v6698_v39, %v952_v30  ;;  %v2375_v51 = vadd.f32 %v2271_v16, %v2125_v15  ;;  %v1379_v25 = vrot.slane %v1273_v2, 2 }
  0xfd   : > { %v2516_v29 = vsel %vm1355_vm1, %v2514_v56, %v2515_v13  ;;  %v1703_v11 = vrot.slane %v1600_v37, 1  ;;  %v1134_v8 = vsel %vm1109_vm0, %v1131_v1, %v1133_v24  ;;  %v1948_v31 = vrot.slane %v1845_v17, 2 }
  0xfe   : > { %v2377_v3 = vadd.f32 %v2276_v48, %v2127_v53  ;;  %v2272_v18 = vrot.slane %v2171_v52, 1  ;;  %v2620_v19 = vadd.f32 %v2516_v29, %v2375_v51  ;;  %v1231_v32 = vadd.f32 %v1134_v8, %v873_v35 }
  0xff   : > { %v1380_v21 = vsel %vm1355_vm1, %v1377_v27, %v1379_v25  ;;  %v1704_v40 = vsel %vm1109_vm0, %v1701_v36, %v1703_v11  ;;  %v2096_v15 = vmul.f32 %v6693_v38, %v6834_v14  ;;  %v1949_v48 = vsel %vm1355_vm1, %v1946_v20, %v1948_v31 }
 0x100   : > { %v2622_v56 = vadd.f32 %v2521_v10, %v2377_v3  ;;  %v1804_v2 = vadd.f32 %v1704_v40, %v1554_v50  ;;  %v2659_v1 = vadd.f32 %v7005_v7, %v2620_v19  ;;  %v1477_v37 = vadd.f32 %v1380_v21, %v1231_v32 }
 0x101   : > { %v2273_v17 = vsel %vm1109_vm0, %v2270_v57, %v2272_v18  ;;  %v2416_v35 = vmul.f32 %v6715_v44, %v952_v30  ;;  %v1805_v53 = vadd.f32 %v7097_v0, %v1555_v46  ;;  %v1952_v14 = vsel %vm1355_vm1, %v1950_v54, %v1951_v23  ;;  %v773_v57 = vpop.permute.xlu0 %772 }
 0x102   : > { %v2661_v27 = vadd.f32 %v7005_v7, %v2622_v56  ;;  %v2049_v6 = vadd.f32 %v1949_v48, %v1804_v2  ;;  %v2376_v36 = vadd.f32 %v2273_v17, %v2126_v41  ;;  %v2522_v10 = vrot.slane %v7102_v33, 2  ;;  %v7193_v33 = vpop.permute.xlu1 %777 }
 0x103   : > { %v1556_v19 = vadd.f32 %v7124_v47, %v1477_v37  ;;  %v2517_v32 = vrot.slane %v2416_v35, 2  ;;  %v2691_v18 = vmax.f32 %v2659_v1, 0.0  ;;  %v2050_v30 = vadd.f32 %v1952_v14, %v1805_v53 }
 0x104   : > { %v2693_v50 = vmax.f32 %v2661_v27, 0.0  ;;  %v2128_v20 = vadd.f32 %v2096_v15, %v2049_v6  ;;  %v9840_v41 = vrot.slane %v7079_v49, 1  ;;  %v9841_v0 = vrot.slane %v7050_v12, 1 }
 0x105   : > { %v7187_v22 = vadd.f32 %v7076_v4, %v1556_v19  ;;  %v2518_v23 = vsel %vm1355_vm1, %v2515_v13, %v2517_v32  ;;  %v7191_v54 = vmul.f32 %v6615_v55, %v763_v34  ;;  %v7196_v24 = vmul.f32 %v6641_v63, %v763_v34  ;;  %v783_v2 = vpop.permute.xlu0 %782 }
 0x106   : > { %v2278_v5 = vsel %vm1109_vm0, %v9841_v0, %v9840_v41  ;;  %v2721_v47 = vmax.f32 %v2691_v18, %v2693_v50  ;;  %v2621_v16 = vadd.f32 %v2518_v23, %v2376_v36  ;;  %v9842_v49 = vrot.slane %v7060_v28, 2  ;;  %v7233_v35 = vpop.permute.xlu1 %787 }
 0x107   : > { %v2378_v46 = vadd.f32 %v2278_v5, %v2128_v20  ;;  %v1525_v52 = vmul.f32 %v6620_v58, %v763_v34  ;;  %v7204_v13 = vmul.f32 %v6625_v59, %v763_v34  ;;  %v7208_v25 = vmul.f32 %v6630_v60, %v763_v34  ;;  %9843 = vst [vmem:[#allocation23_spill] sm:$0xff] %v7233_v35 }
 0x108   : > { %v2523_v4 = vsel %vm1355_vm1, %v9842_v49, %v2522_v10  ;;  %v2660_v29 = vadd.f32 %v7005_v7, %v2621_v16  ;;  %v2097_v11 = vmul.f32 %v6693_v38, %v763_v34  ;;  %v2744_v3 = vrot.slane %v2721_v47, 1 }
 0x109   : > { %v2623_v51 = vadd.f32 %v2523_v4, %v2378_v46  ;;  %v7212_v8 = vmul.f32 %v6636_v62, %v763_v34  ;;  %v7216_v31 = vmul.f32 %v6698_v39, %v763_v34  ;;  %v7221_v56 = vmul.f32 %v6715_v44, %v763_v34  ;;  %v793_v16 = vpop.permute.xlu0 %792 }
 0x10a   : > { %v2692_v40 = vmax.f32 %v2660_v29, 0.0  ;;  %v7224_v48 = vadd.f32 %v1525_v52, %v7088_v61  ;;  %v7228_v37 = vmul.f32 %v6615_v55, %v773_v57  ;;  %v7231_v17 = vmul.f32 %v6641_v63, %v773_v57  ;;  %v7278_v29 = vpop.permute.xlu1 %797 }
 0x10b   : > { %v2662_v21 = vadd.f32 %v7005_v7, %v2623_v51  ;;  %v7236_v36 = vadd.f32 %v2097_v11, %v2050_v30  ;;  %v7239_v34 = vmul.f32 %v6625_v59, %v773_v57  ;;  %v7241_v61 = vmax.f32 %v2721_v47, %v2744_v3 }
 0x10c   : > { %v7245_v14 = vmul.f32 %v6630_v60, %v773_v57  ;;  %v7248_v10 = vmul.f32 %v6698_v39, %v773_v57  ;;  %v878_v18 = vmul.f32 %v6636_v62, %v773_v57  ;;  %v7253_v50 = vmul.f32 %v6715_v44, %v773_v57 }
 0x10d   : > { %v2694_v27 = vmax.f32 %v2662_v21, 0.0  ;;  %9844 = vst [vmem:[#allocation13_spill] sm:$0xff] %v7241_v61  ;;  %v1145_v20 = vrot.slane %v7228_v37, 1  ;;  %v1391_v30 = vrot.slane %v7231_v17, 2  ;;  %v7258_v41 = vmul.f32 %v6620_v58, %v773_v57 }
 0x10e   : > { %v7261_v0 = vmul.f32 %v6615_v55, %v783_v2  ;;  %v7265_v47 = vmul.f32 %v6693_v38, %v773_v57  ;;  %v7268_v46 = vmul.f32 %v6641_v63, %v783_v2  ;;  %v1960_v49 = vrot.slane %v7245_v14, 2 }
 0x10f   : > { %v2722_v19 = vmax.f32 %v2692_v40, %v2694_v27  ;;  %v7273_v52 = vmul.f32 %v6625_v59, %v783_v2  ;;  %v7276_v51 = vmul.f32 %v6630_v60, %v783_v2  ;;  %v7282_v57 = vmul.f32 %v6636_v62, %v783_v2 }
 0x110   : > { %9845 = vst [vmem:[#allocation12_spill] sm:$0xff] %v7261_v0  ;;  %9846 = vst [vmem:[#allocation14_spill] sm:$0xff] %v7268_v46  ;;  %v7285_v3 = vmul.f32 %v6698_v39, %v783_v2  ;;  %v7288_v21 = vmul.f32 %v6715_v44, %v783_v2  ;;  %v1529_v37 = vmul.f32 %v6620_v58, %v783_v2 }
 0x111   : > { %v2776_v5 = vrot.slane %v2722_v19, 1  ;;  %9847 = vst [vmem:[#allocation15_spill] sm:$0xff] %v7273_v52  ;;  %9848 = vst [vmem:[#allocation16_spill] sm:$0xff] %v7276_v51  ;;  %v7293_v17 = vmul.f32 %v6615_v55, %v793_v16  ;;  %v7296_v27 = vmul.f32 %v6641_v63, %v793_v16  ;;  %v7302_v32 = vmul.f32 %v6693_v38, %v783_v2 }
 0x112   : > { %9849 = vst [vmem:[#allocation17_spill] sm:$0xff] %v7282_v57  ;;  %9850 = vst [vmem:[#allocation18_spill] sm:$0xff] %v7285_v3  ;;  %v7305_v53 = vmul.f32 %v6625_v59, %v793_v16  ;;  %v7311_v15 = vmul.f32 %v6636_v62, %v793_v16  ;;  %v7317_v2 = vmul.f32 %v6620_v58, %v793_v16 }
 0x113   : > { %9851 = vst [vmem:[#allocation25_spill] sm:$0xff] %v7288_v21  ;;  %v7298_v14 = vmax.f32 %v2722_v19, %v2776_v5  ;;  %v7320_v28 = vmul.f32 %v6630_v60, %v793_v16  ;;  %v1035_v6 = vmul.f32 %v6615_v55, %v7193_v33  ;;  %v1281_v1 = vmul.f32 %v6641_v63, %v7193_v33  ;;  %v967_v19 = vpop.permute.xlu1 %966 }
 0x114   : > { %9853 = vst [vmem:[#allocation20_spill] sm:$0xff] %v7305_v53  ;;  %9854 = vst [vmem:[#allocation21_spill] sm:$0xff] %v7317_v2  ;;  %v1608_v40 = vmul.f32 %v6625_v59, %v7193_v33  ;;  %v7330_v12 = vmul.f32 %v6693_v38, %v793_v16  ;;  %v7334_v58 = vmul.f32 %v6630_v60, %v7193_v33 }
 0x115   : > { %9852 = vst [vmem:[#allocation19_spill] sm:$0xff] %v7298_v14  ;;  %v2179_v11 = vmul.f32 %v6698_v39, %v7193_v33  ;;  %v7339_v4 = vmul.f32 %v6698_v39, %v793_v16  ;;  %v7342_v23 = vmul.f32 %v6715_v44, %v793_v16  ;;  %v1146_v14 = vrot.slane %v1035_v6, 1 }
 0x116   : > { %9855 = vst [vmem:[#allocation22_spill] sm:$0xff] %v7330_v12  ;;  %v1392_v61 = vrot.slane %v1281_v1, 2  ;;  %v879_v5 = vmul.f32 %v6636_v62, %v7193_v33  ;;  %v7348_v26 = vmul.f32 %v6715_v44, %v7193_v33  ;;  %v1036_v43 = vmul.f32 %v6615_v55, %v967_v19 }
 0x117   : > { %v1282_v21 = vmul.f32 %v6641_v63, %v967_v19  ;;  %v1716_v12 = vrot.slane %v1608_v40, 1  ;;  %v1147_v2 = vsel %vm1109_vm0, %v1145_v20, %v1146_v14  ;;  %v1609_v16 = vmul.f32 %v6625_v59, %v967_v19 }
 0x118   : > { %v2285_v6 = vrot.slane %v2179_v11, 1  ;;  %v1148_v1 = vrot.slane %v1036_v43, 1  ;;  %v1236_v51 = vadd.f32 %v1147_v2, %v878_v18  ;;  %v1393_v57 = vsel %vm1355_vm1, %v1391_v30, %v1392_v61 }
 0x119   : > { %v1394_v52 = vrot.slane %v1282_v21, 2  ;;  %v1718_v46 = vrot.slane %v1609_v16, 1  ;;  %v7357_v0 = vmul.f32 %v6630_v60, %v967_v19  ;;  %v2180_v35 = vmul.f32 %v6698_v39, %v967_v19 }
 0x11a   : > { %v1149_v20 = vsel %vm1109_vm0, %v1146_v14, %v1148_v1  ;;  %v1482_v53 = vadd.f32 %v1393_v57, %v1236_v51  ;;  %v9856_v18 = vrot.slane %v7239_v34, 1  ;;  %v9857_v21 = vrot.slane %v7334_v58, 2 }
 0x11b   : > { %v1237_v16 = vadd.f32 %v1149_v20, %v879_v5  ;;  %v1395_v40 = vsel %vm1355_vm1, %v1392_v61, %v1394_v52  ;;  %v2287_v3 = vrot.slane %v2180_v35, 1  ;;  %v7375_v14 = vmul.f32 %v6715_v44, %v967_v19  ;;  %v962_v5 = vpop.permute.xlu0 %961 }
 0x11c   : > { %v1717_v30 = vsel %vm1109_vm0, %v9856_v18, %v1716_v12  ;;  %v7371_v2 = vsel %vm1355_vm1, %v1960_v49, %v9857_v21  ;;  %v7378_v51 = vsel %vm1109_vm0, %v1716_v12, %v1718_v46  ;;  %v9858_v34 = vrot.slane %v7248_v10, 1 }
 0x11d   : > { %v1032_v49 = vmul.f32 %v6615_v55, %v7164_v42  ;;  %v7386_v18 = vadd.f32 %v1529_v37, %v1482_v53  ;;  %v9860_v61 = vrot.slane %v7348_v26, 2  ;;  %v9861_v35 = vrot.slane %v7253_v50, 2 }
 0x11e   : > { %v2286_v1 = vsel %vm1109_vm0, %v9858_v34, %v2285_v6  ;;  %v877_v12 = vmul.f32 %v6636_v62, %v7164_v42  ;;  %v7399_v10 = vmul.f32 %v6641_v63, %v7164_v42  ;;  %v1605_v55 = vmul.f32 %v6625_v59, %v7164_v42 }
 0x11f   : > { %9859 = vst [vmem:[#allocation24_spill] sm:$0xff] %v7386_v18  ;;  %v7393_v52 = vsel %vm1355_vm1, %v9861_v35, %v9860_v61  ;;  %v1141_v46 = vrot.slane %v1032_v49, 1  ;;  %v1850_v53 = vmul.f32 %v6630_v60, %v7164_v42  ;;  %v2051_v50 = vadd.f32 %v7093_v9, %v7187_v22  ;;  %v7420_v60 = vld [vmem:[%s9804_s25 + $0x3] ss:$0 sm:$0xff] }
 0x120   : > { %v7407_v37 = vadd.f32 %v1395_v40, %v1237_v16  ;;  %v7410_v19 = vsel %vm1109_vm0, %v2285_v6, %v2287_v3  ;;  %v1387_v63 = vrot.slane %v7399_v10, 2  ;;  %v9863_v20 = vrot.slane %v7191_v54, 1  ;;  %9864 = vst [vmem:[#allocation29_spill] sm:$0xff] %v7420_v60 }
 0x121   : > { %v1526_v9 = vmul.f32 %v7420_v60, %v7164_v42  ;;  %v1711_v22 = vrot.slane %v1605_v55, 1  ;;  %v1956_v3 = vrot.slane %v1850_v53, 2  ;;  %v9865_v40 = vrot.slane %v7196_v24, 2 }
 0x122   : > { %9862 = vst [vmem:[#allocation28_spill] sm:$0xff] %v7407_v37  ;;  %v1142_v59 = vsel %vm1109_vm0, %v9863_v20, %v1141_v46  ;;  %v7430_v54 = vmul.f32 %v7420_v60, %v7193_v33  ;;  %v2176_v16 = vmul.f32 %v6698_v39, %v7164_v42  ;;  %v9866_v34 = vrot.slane %v7204_v13, 1 }
 0x123   : > { %v1234_v6 = vadd.f32 %v1142_v59, %v7212_v8  ;;  %v1388_v21 = vsel %vm1355_vm1, %v9865_v40, %v1387_v63  ;;  %v9867_v61 = vrot.slane %v7208_v25, 2  ;;  %v2421_v24 = vmul.f32 %v6715_v44, %v7164_v42  ;;  %v7445_v8 = vld [vmem:[%s9804_s25 + $0x1] ss:$0 sm:$0xff]  ;;  %v7452_v25 = vld [vmem:[%s9804_s25 + $0x2] ss:$0 sm:$0xff] }
 0x124   : > { %v1712_v49 = vsel %vm1109_vm0, %v9866_v34, %v1711_v22  ;;  %v1033_v10 = vmul.f32 %v7445_v8, %v962_v5  ;;  %v2280_v13 = vrot.slane %v2176_v16, 1  ;;  %v1279_v20 = vmul.f32 %v7452_v25, %v962_v5  ;;  %v7458_v40 = vld [vmem:[%s9804_s25 + $0x4] ss:$0 sm:$0xff] }
 0x125   : > { %v1957_v35 = vsel %vm1355_vm1, %v9867_v61, %v1956_v3  ;;  %v1480_v55 = vadd.f32 %v1388_v21, %v1234_v6  ;;  %v1807_v53 = vadd.f32 %v1712_v49, %v7224_v48  ;;  %v2525_v59 = vrot.slane %v2421_v24, 2  ;;  %v7464_v48 = vld [vmem:[%s9804_s25 + $0x5] ss:$0 sm:$0xff] }
 0x126   : > { %v1143_v44 = vrot.slane %v1033_v10, 1  ;;  %v1606_v34 = vmul.f32 %v7458_v40, %v962_v5  ;;  %v1851_v6 = vmul.f32 %v7464_v48, %v962_v5  ;;  %v1558_v21 = vadd.f32 %v1526_v9, %v7083_v45 }
 0x127   : > { %v1559_v16 = vadd.f32 %v7258_v41, %v1480_v55  ;;  %v2052_v49 = vadd.f32 %v1957_v35, %v1807_v53  ;;  %v9868_v61 = vrot.slane %v7216_v31, 1  ;;  %v1389_v11 = vrot.slane %v1279_v20, 2 }
 0x128   : > { %v1144_v43 = vsel %vm1109_vm0, %v1141_v46, %v1143_v44  ;;  %v1713_v62 = vrot.slane %v1606_v34, 1  ;;  %v9869_v37 = vrot.slane %v7221_v56, 2  ;;  %v1958_v31 = vrot.slane %v1851_v6, 2 }
 0x129   : > { %v2281_v24 = vsel %vm1109_vm0, %v9868_v61, %v2280_v13  ;;  %v1809_v57 = vadd.f32 %v1717_v30, %v1559_v16  ;;  %v2131_v18 = vadd.f32 %v7265_v47, %v2052_v49  ;;  %v1235_v9 = vadd.f32 %v1144_v43, %v877_v12  ;;  %v7485_v30 = vld [vmem:[%s9804_s25 + $0x6] ss:$0 sm:$0xff] }
 0x12a   : > { %v2379_v10 = vadd.f32 %v2281_v24, %v7236_v36  ;;  %v2526_v45 = vsel %vm1355_vm1, %v9869_v37, %v2525_v59  ;;  %v1714_v35 = vsel %vm1109_vm0, %v1711_v22, %v1713_v62  ;;  %v2177_v55 = vmul.f32 %v6698_v39, %v962_v5  ;;  %v7494_v39 = vld [vmem:[%s9804_s25 + $0x8] ss:$0 sm:$0xff] }
 0x12b   : > { %v2098_v36 = vmul.f32 %v6693_v38, %v7164_v42  ;;  %v2100_v56 = vmul.f32 %v7485_v30, %v7193_v33  ;;  %v2381_v47 = vadd.f32 %v2286_v1, %v2131_v18  ;;  %v1808_v46 = vadd.f32 %v1714_v35, %v1558_v21 }
 0x12c   : > { %v2624_v41 = vadd.f32 %v2526_v45, %v2379_v10  ;;  %v1959_v12 = vsel %vm1355_vm1, %v1956_v3, %v1958_v31  ;;  %v2282_v37 = vrot.slane %v2177_v55, 1  ;;  %v2422_v38 = vmul.f32 %v7494_v39, %v962_v5 }
 0x12d   : > { %v2130_v42 = vadd.f32 %v2098_v36, %v2051_v50  ;;  %v2626_v62 = vadd.f32 %v7393_v52, %v2381_v47  ;;  %v1390_v22 = vsel %vm1355_vm1, %v1387_v63, %v1389_v11  ;;  %v2053_v33 = vadd.f32 %v1959_v12, %v1808_v46 }
 0x12e   : > { %v2663_v43 = vadd.f32 %v7005_v7, %v2624_v41  ;;  %v2054_v1 = vadd.f32 %v7371_v2, %v1809_v57  ;;  %v1481_v18 = vadd.f32 %v1390_v22, %v1235_v9  ;;  %v2283_v53 = vsel %vm1109_vm0, %v2280_v13, %v2282_v37  ;;  %v977_v13 = vpop.permute.xlu1 %976 }
 0x12f   : > { %v2527_v3 = vrot.slane %v2422_v38, 2  ;;  %v2665_v20 = vadd.f32 %v7005_v7, %v2626_v62  ;;  %v2132_v34 = vadd.f32 %v2100_v56, %v2053_v33  ;;  %v2380_v6 = vadd.f32 %v2283_v53, %v2130_v42 }
 0x130   : > { %v2695_v44 = vmax.f32 %v2663_v43, 0.0  ;;  %v1041_v50 = vmul.f32 %v7445_v8, %v7278_v29  ;;  %v1287_v11 = vmul.f32 %v7452_v25, %v7278_v29  ;;  %v1614_v2 = vmul.f32 %v7458_v40, %v7278_v29 }
 0x131   : > { %v2528_v21 = vsel %vm1355_vm1, %v2525_v59, %v2527_v3  ;;  %v2697_v57 = vmax.f32 %v2665_v20, 0.0  ;;  %v2382_v52 = vadd.f32 %v7410_v19, %v2132_v34  ;;  %v7512_v5 = vmul.f32 %v7464_v48, %v7278_v29 }
 0x132   : > { %v2625_v63 = vadd.f32 %v2528_v21, %v2380_v6  ;;  %v9870_v59 = vrot.slane %v7357_v0, 2  ;;  %v9871_v16 = vrot.slane %v7334_v58, 2  ;;  %v9872_v61 = vrot.slane %v7375_v14, 2  ;;  %v7532_v58 = vld [vmem:[%s9804_s25] ss:$0 sm:$0xff] }
 0x133   : > { %v9873_v24 = vrot.slane %v7348_v26, 2  ;;  %v7525_v19 = vadd.f32 %v7302_v32, %v2054_v1  ;;  %v1156_v45 = vrot.slane %v1041_v50, 1  ;;  %v2723_v9 = vmax.f32 %v2695_v44, %v2697_v57  ;;  %v7539_v32 = vld [vmem:[%s9804_s25 + $0x7] ss:$0 sm:$0xff] }
 0x134   : > { %v1964_v49 = vsel %vm1355_vm1, %v9871_v16, %v9870_v59  ;;  %v1560_v41 = vadd.f32 %v7430_v54, %v1481_v18  ;;  %v2664_v0 = vadd.f32 %v7005_v7, %v2625_v63  ;;  %v883_v26 = vmul.f32 %v7532_v58, %v7278_v29 }
 0x135   : > { %v2533_v10 = vsel %vm1355_vm1, %v9873_v24, %v9872_v61  ;;  %v7543_v14 = vmul.f32 %v7539_v32, %v7278_v29  ;;  %v1042_v54 = vmul.f32 %v7445_v8, %v977_v13  ;;  %v9874_v31 = vrot.slane %v7293_v17, 1 }
 0x136   : > { %v2627_v35 = vadd.f32 %v2533_v10, %v2382_v52  ;;  %v1402_v56 = vrot.slane %v1287_v11, 2  ;;  %v1726_v47 = vrot.slane %v1614_v2, 1  ;;  %v9737_v46 = vrot.slane %v7512_v5, 2 }
 0x137   : > { %v1157_v55 = vsel %vm1109_vm0, %v9874_v31, %v1156_v45  ;;  %v2745_v43 = vrot.slane %v2723_v9, 1  ;;  %v7553_v12 = vmul.f32 %v7494_v39, %v7278_v29  ;;  %v1158_v37 = vrot.slane %v1042_v54, 1 }
 0x138   : > { %v2666_v36 = vadd.f32 %v7005_v7, %v2627_v35  ;;  %v1288_v38 = vmul.f32 %v7452_v25, %v977_v13  ;;  %v2696_v42 = vmax.f32 %v2664_v0, 0.0  ;;  %v1240_v17 = vadd.f32 %v1157_v55, %v7311_v15 }
 0x139   : > { %v1615_v22 = vmul.f32 %v7458_v40, %v977_v13  ;;  %v2295_v33 = vrot.slane %v7543_v14, 1  ;;  %v1159_v1 = vsel %vm1109_vm0, %v1156_v45, %v1158_v37  ;;  %v7561_v53 = vmul.f32 %v7464_v48, %v977_v13 }
 0x13a   : > { %v2698_v62 = vmax.f32 %v2666_v36, 0.0  ;;  %v1404_v18 = vrot.slane %v1288_v38, 2  ;;  %v1810_v3 = vadd.f32 %v7378_v51, %v1560_v41  ;;  %v1241_v44 = vadd.f32 %v1159_v1, %v883_v26  ;;  %v9877_v51 = vld [vmem:[#allocation20_spill] sm:$0xff]  ;;  %v9881_v41 = vld [vmem:[#allocation23_spill] sm:$0xff] }
 0x13b   : > { %v1728_v34 = vrot.slane %v1615_v22, 1  ;;  %v7566_v6 = vmax.f32 %v2723_v9, %v2745_v43  ;;  %v9736_v15 = vrot.slane %v7553_v12, 2  ;;  %v9876_v21 = vrot.slane %v7296_v27, 2  ;;  %v9883_v43 = vld [vmem:[#allocation28_spill] sm:$0xff] }
 0x13c   : > { %v7564_v20 = vmax.f32 %v2696_v42, %v2698_v62  ;;  %v7573_v11 = vmul.f32 %v7539_v32, %v977_v13  ;;  %v1405_v2 = vsel %vm1355_vm1, %v1402_v56, %v1404_v18  ;;  %v9878_v52 = vrot.slane %v9877_v51, 1  ;;  %v972_v62 = vpop.permute.xlu0 %971  ;;  %v9886_v18 = vld [vmem:[#allocation14_spill] sm:$0xff] }
 0x13d   : > { %9875 = vst [vmem:[#allocation30_spill] sm:$0xff] %v7566_v6  ;;  %v1403_v50 = vsel %vm1355_vm1, %v9876_v21, %v1402_v56  ;;  %v9879_v59 = vrot.slane %v7320_v28, 2  ;;  %v7589_v61 = vadd.f32 %v1405_v2, %v1241_v44  ;;  %v1973_v24 = vrot.slane %v7561_v53, 2  ;;  %v9888_v2 = vld [vmem:[#allocation17_spill] sm:$0xff] }
 0x13e   : > { %v7576_v57 = vadd.f32 %v1403_v50, %v1240_v17  ;;  %v1727_v63 = vsel %vm1109_vm0, %v9878_v52, %v1726_v47  ;;  %v2777_v27 = vrot.slane %v7564_v20, 1  ;;  %v9880_v10 = vrot.slane %v7339_v4, 1  ;;  %v9884_v17 = vld [vmem:[#allocation12_spill] sm:$0xff]  ;;  %v9889_v52 = vld [vmem:[#allocation15_spill] sm:$0xff] }
 0x13f   : > { %v7586_v16 = vsel %vm1355_vm1, %v9879_v59, %v9737_v46  ;;  %v7598_v9 = vsel %vm1109_vm0, %v1726_v47, %v1728_v34  ;;  %v7601_v28 = vmul.f32 %v7494_v39, %v977_v13  ;;  %v1038_v35 = vmul.f32 %v7445_v8, %v9881_v41 }
 0x140   : > { %v2296_v45 = vsel %vm1109_vm0, %v9880_v10, %v2295_v33  ;;  %v1284_v0 = vmul.f32 %v7452_v25, %v9881_v41  ;;  %v2297_v26 = vrot.slane %v7573_v11, 1  ;;  %v9882_v4 = vrot.slane %v7342_v23, 2 }
 0x141   : > { %v1530_v31 = vmul.f32 %v7420_v60, %v9881_v41  ;;  %v1611_v13 = vmul.f32 %v7458_v40, %v9881_v41  ;;  %v881_v55 = vmul.f32 %v7532_v58, %v9881_v41  ;;  %v1151_v36 = vrot.slane %v1038_v35, 1  ;;  %v9891_v35 = vld [vmem:[#allocation24_spill] sm:$0xff] }
 0x142   : > { %v2541_v54 = vsel %vm1355_vm1, %v9882_v4, %v9736_v15  ;;  %v1397_v56 = vrot.slane %v1284_v0, 2  ;;  %v1856_v47 = vmul.f32 %v7464_v48, %v9881_v41  ;;  %v2055_v23 = vadd.f32 %v1964_v49, %v1810_v3  ;;  %v9892_v4 = vld [vmem:[#allocation16_spill] sm:$0xff]  ;;  %v9897_v15 = vld [vmem:[#allocation22_spill] sm:$0xff] }
 0x143   : > { %v1562_v37 = vadd.f32 %v1530_v31, %v9883_v43  ;;  %v1721_v38 = vrot.slane %v1611_v13, 1  ;;  %v2102_v42 = vmul.f32 %v7485_v30, %v9881_v41  ;;  %v9885_v22 = vrot.slane %v9884_v17, 1 }
 0x144   : > { %v9887_v44 = vrot.slane %v9886_v18, 2  ;;  %v1966_v21 = vrot.slane %v1856_v47, 2  ;;  %v2104_v50 = vmul.f32 %v7485_v30, %v7278_v29  ;;  %v9890_v49 = vrot.slane %v9889_v52, 1  ;;  %v9894_v52 = vld [vmem:[#allocation21_spill] sm:$0xff] }
 0x145   : > { %v1152_v1 = vsel %vm1109_vm0, %v9885_v22, %v1151_v36  ;;  %v2134_v59 = vadd.f32 %v2102_v42, %v2055_v23  ;;  %v2182_v10 = vmul.f32 %v7539_v32, %v9881_v41  ;;  %v9893_v31 = vrot.slane %v9892_v4, 2 }
 0x146   : > { %v1398_v34 = vsel %vm1355_vm1, %v9887_v44, %v1397_v56  ;;  %v1238_v51 = vadd.f32 %v1152_v1, %v9888_v2  ;;  %v1722_v3 = vsel %vm1109_vm0, %v9890_v49, %v1721_v38  ;;  %v2427_v47 = vmul.f32 %v7494_v39, %v9881_v41 }
 0x147   : > { %v1811_v0 = vadd.f32 %v1722_v3, %v9891_v35  ;;  %v1967_v13 = vsel %vm1355_vm1, %v9893_v31, %v1966_v21  ;;  %v1039_v43 = vmul.f32 %v7445_v8, %v972_v62  ;;  %v2290_v22 = vrot.slane %v2182_v10, 1  ;;  %v9895_v3 = vld [vmem:[#allocation18_spill] sm:$0xff]  ;;  %v9898_v10 = vld [vmem:[#allocation25_spill] sm:$0xff] }
 0x148   : > { %v1484_v17 = vadd.f32 %v1398_v34, %v1238_v51  ;;  %v1285_v1 = vmul.f32 %v7452_v25, %v972_v62  ;;  %v1612_v23 = vmul.f32 %v7458_v40, %v972_v62  ;;  %v2535_v18 = vrot.slane %v2427_v47, 2 }
 0x149   : > { %v2056_v42 = vadd.f32 %v1967_v13, %v1811_v0  ;;  %v1153_v44 = vrot.slane %v1039_v43, 1  ;;  %v1857_v2 = vmul.f32 %v7464_v48, %v972_v62  ;;  %v9896_v35 = vrot.slane %v9895_v3, 1 }
 0x14a   : > { %v1563_v49 = vadd.f32 %v9894_v52, %v1484_v17  ;;  %v1399_v41 = vrot.slane %v1285_v1, 2  ;;  %v1723_v31 = vrot.slane %v1612_v23, 1  ;;  %v9899_v46 = vrot.slane %v9898_v10, 2 }
 0x14b   : > { %v2291_v4 = vsel %vm1109_vm0, %v9896_v35, %v2290_v22  ;;  %v2135_v34 = vadd.f32 %v9897_v15, %v2056_v42  ;;  %v1154_v13 = vsel %vm1109_vm0, %v1151_v36, %v1153_v44  ;;  %v1968_v52 = vrot.slane %v1857_v2, 2 }
 0x14c   : > { %v2383_v51 = vadd.f32 %v2291_v4, %v7525_v19  ;;  %v2536_v0 = vsel %vm1355_vm1, %v9899_v46, %v2535_v18  ;;  %v1239_v47 = vadd.f32 %v1154_v13, %v881_v55  ;;  %v1400_v43 = vsel %vm1355_vm1, %v1397_v56, %v1399_v41  ;;  %v803_v46 = vpop.permute.xlu0 %802 }
 0x14d   : > { %v1724_v17 = vsel %vm1109_vm0, %v1721_v38, %v1723_v31  ;;  %v2385_v3 = vadd.f32 %v2296_v45, %v2135_v34  ;;  %v2183_v23 = vmul.f32 %v7539_v32, %v972_v62  ;;  %v1969_v19 = vsel %vm1355_vm1, %v1966_v21, %v1968_v52 }
 0x14e   : > { %v2628_v35 = vadd.f32 %v2536_v0, %v2383_v51  ;;  %v1812_v1 = vadd.f32 %v1724_v17, %v1562_v37  ;;  %v1485_v15 = vadd.f32 %v1400_v43, %v1239_v47  ;;  %v2428_v42 = vmul.f32 %v7494_v39, %v972_v62  ;;  %v7713_v47 = vpop.permute.xlu1 %807 }
 0x14f   : > { %v1813_v4 = vadd.f32 %v1727_v63, %v1563_v49  ;;  %v2630_v10 = vadd.f32 %v2541_v54, %v2385_v3  ;;  %v2292_v56 = vrot.slane %v2183_v23, 1  ;;  %v2542_v38 = vrot.slane %v7601_v28, 2 }
 0x150   : > { %v2667_v55 = vadd.f32 %v7005_v7, %v2628_v35  ;;  %v2057_v36 = vadd.f32 %v1969_v19, %v1812_v1  ;;  %v1532_v45 = vmul.f32 %v7420_v60, %v7278_v29  ;;  %v2537_v37 = vrot.slane %v2428_v42, 2  ;;  %v9915_v19 = vld [vmem:[#allocation13_spill] sm:$0xff] }
 0x151   : > { %v2058_v44 = vadd.f32 %v7586_v16, %v1813_v4  ;;  %v2298_v63 = vsel %vm1109_vm0, %v2295_v33, %v2297_v26  ;;  %v2669_v54 = vadd.f32 %v7005_v7, %v2630_v10  ;;  %v2293_v21 = vsel %vm1109_vm0, %v2290_v22, %v2292_v56 }
 0x152   : > { %v2136_v62 = vadd.f32 %v2104_v50, %v2057_v36  ;;  %v2699_v2 = vmax.f32 %v2667_v55, 0.0  ;;  %v1564_v49 = vadd.f32 %v1532_v45, %v1485_v15  ;;  %v2384_v28 = vadd.f32 %v2293_v21, %v2134_v59 }
 0x153   : > { %v2538_v41 = vsel %vm1355_vm1, %v2535_v18, %v2537_v37  ;;  %v2701_v29 = vmax.f32 %v2669_v54, 0.0  ;;  %v7677_v16 = vmul.f32 %v7445_v8, %v803_v46  ;;  %v7680_v11 = vmul.f32 %v7452_v25, %v803_v46  ;;  %v813_v18 = vpop.permute.xlu0 %812  ;;  %v7755_v54 = vpop.permute.xlu1 %817 }
 0x154   : > { %v2386_v31 = vadd.f32 %v2298_v63, %v2136_v62  ;;  %v7685_v14 = vmax.f32 %v7564_v20, %v2777_v27  ;;  %v9901_v33 = vrot.slane %v7512_v5, 2  ;;  %v9902_v50 = vrot.slane %v7553_v12, 2 }
 0x155   : > { %v2629_v22 = vadd.f32 %v2538_v41, %v2384_v28  ;;  %v2725_v34 = vmax.f32 %v2699_v2, %v2701_v29  ;;  %v1533_v0 = vmul.f32 %v7420_v60, %v803_v46  ;;  %v7699_v20 = vmul.f32 %v7458_v40, %v803_v46 }
 0x156   : > { %9900 = vst [vmem:[#allocation20_spill] sm:$0xff] %v7685_v14  ;;  %v7692_v26 = vsel %vm1355_vm1, %v9901_v33, %v1973_v24  ;;  %v2543_v59 = vsel %vm1355_vm1, %v9902_v50, %v2542_v38  ;;  %v7703_v5 = vmul.f32 %v7532_v58, %v803_v46  ;;  %v7706_v27 = vmul.f32 %v7464_v48, %v803_v46 }
 0x157   : > { %v2631_v51 = vadd.f32 %v2543_v59, %v2386_v31  ;;  %v2668_v53 = vadd.f32 %v7005_v7, %v2629_v22  ;;  %v2105_v12 = vmul.f32 %v7485_v30, %v803_v46  ;;  %v7710_v24 = vadd.f32 %v7598_v9, %v1564_v49 }
 0x158   : > { %v2746_v52 = vrot.slane %v2725_v34, 1  ;;  %v7718_v35 = vmul.f32 %v7539_v32, %v803_v46  ;;  %v7721_v1 = vmul.f32 %v7494_v39, %v803_v46  ;;  %v7724_v9 = vadd.f32 %v1533_v0, %v7576_v57  ;;  %v823_v46 = vpop.permute.xlu0 %822 }
 0x159   : > { %v2670_v13 = vadd.f32 %v7005_v7, %v2631_v51  ;;  %v2700_v3 = vmax.f32 %v2668_v53, 0.0  ;;  %v7728_v15 = vmul.f32 %v7445_v8, %v813_v18  ;;  %v7731_v42 = vadd.f32 %v2105_v12, %v2058_v44  ;;  %v9910_v12 = vld [vmem:[#allocation26_spill] sm:$0xff]  ;;  %v7805_v7 = vpop.permute.xlu1 %827 }
 0x15a   : > { %v7734_v4 = vmul.f32 %v7532_v58, %v813_v18  ;;  %v7737_v10 = vmul.f32 %v7452_v25, %v813_v18  ;;  %v7740_v57 = vmul.f32 %v7458_v40, %v813_v18  ;;  %v7743_v36 = vmul.f32 %v7464_v48, %v813_v18  ;;  %9916 = vst [vmem:[#allocation21_spill] sm:$0xff] %v7805_v7 }
 0x15b   : > { %v2702_v23 = vmax.f32 %v2670_v13, 0.0  ;;  %v7746_v56 = vmul.f32 %v7539_v32, %v813_v18  ;;  %v7748_v38 = vmax.f32 %v2725_v34, %v2746_v52  ;;  %v7753_v44 = vmul.f32 %v7494_v39, %v813_v18 }
 0x15c   : > { %v7759_v21 = vmul.f32 %v7420_v60, %v813_v18  ;;  %v7762_v2 = vmul.f32 %v7445_v8, %v823_v46  ;;  %v7766_v28 = vmul.f32 %v7485_v30, %v813_v18  ;;  %v7769_v41 = vmul.f32 %v7452_v25, %v823_v46  ;;  %v9918_v18 = vld [vmem:[#allocation19_spill] sm:$0xff]  ;;  %v833_v62 = vpop.permute.xlu0 %832 }
 0x15d   : > { %v2726_v55 = vmax.f32 %v2700_v3, %v2702_v23  ;;  %9903 = vst [vmem:[#allocation23_spill] sm:$0xff] %v7748_v38  ;;  %v7772_v29 = vmul.f32 %v7458_v40, %v823_v46  ;;  %v7778_v59 = vmul.f32 %v7532_v58, %v823_v46  ;;  %v7784_v34 = vmul.f32 %v7420_v60, %v823_v46  ;;  %v9912_v3 = vld [vmem:[#allocation27_spill] sm:$0xff] }
 0x15e   : > { %9904 = vst [vmem:[#allocation28_spill] sm:$0xff] %v7762_v2  ;;  %9905 = vst [vmem:[#allocation12_spill] sm:$0xff] %v7769_v41  ;;  %v7787_v51 = vmul.f32 %v7464_v48, %v823_v46  ;;  %v7791_v53 = vmul.f32 %v7485_v30, %v823_v46  ;;  %v9911_v13 = vrot.slane %v9910_v12, 1  ;;  %v9913_v23 = vrot.slane %v9912_v3, 1 }
 0x15f   : > { %v2778_v63 = vrot.slane %v2726_v55, 1  ;;  %9906 = vst [vmem:[#allocation14_spill] sm:$0xff] %v7772_v29  ;;  %9907 = vst [vmem:[#allocation17_spill] sm:$0xff] %v7778_v59  ;;  %v7802_v45 = vmul.f32 %v7539_v32, %v823_v46  ;;  %v2808_v0 = vrot.slane %v9915_v19, 1  ;;  %v7808_v17 = vmul.f32 %v7494_v39, %v823_v46 }
 0x160   : > { %9909 = vst [vmem:[#allocation24_spill] sm:$0xff] %v7787_v51  ;;  %v2759_v52 = vmax.f32 %v9910_v12, %v9911_v13  ;;  %v2824_v13 = vrot.slane %v9915_v19, 2  ;;  %v2864_v50 = vrot.slane %v9918_v18, 4  ;;  %v2880_v31 = vrot.slane %v9918_v18, 5 }
 0x161   : > { %v7780_v22 = vmax.f32 %v2726_v55, %v2778_v63  ;;  %v2791_v55 = vmax.f32 %v9912_v3, %v9913_v23  ;;  %9914 = vst [vmem:[#allocation16_spill] sm:$0xff] %v7802_v45  ;;  %9917 = vst [vmem:[#allocation18_spill] sm:$0xff] %v7808_v17  ;;  %v2840_v63 = vrot.slane %v9915_v19, 3  ;;  %v2929_v46 = vsel %vm2927_vm2, %v9915_v19, %v2808_v0  ;;  %v7825_v0 = vpop.permute.xlu1 %837 }
 0x162   : > { %v2807_v43 = vrot.slane %v2759_v52, 1  ;;  %v2823_v12 = vrot.slane %v2759_v52, 2  ;;  %v2839_v23 = vrot.slane %v2759_v52, 3  ;;  %v2896_v14 = vrot.slane %v9918_v18, 6 }
 0x163   : > { %9908 = vst [vmem:[#allocation15_spill] sm:$0xff] %v7780_v22  ;;  %v2863_v37 = vrot.slane %v2791_v55, 4  ;;  %v2879_v33 = vrot.slane %v2791_v55, 5  ;;  %v2938_v22 = vsel %vm2936_vm3, %v2929_v46, %v2824_v13  ;;  %v2895_v38 = vrot.slane %v2791_v55, 6 }
 0x164   : > { %v2928_v49 = vsel %vm2927_vm2, %v2759_v52, %v2807_v43  ;;  %v2947_v51 = vsel %vm2945_vm4, %v2938_v22, %v2840_v63  ;;  %v2911_v43 = vrot.slane %v2791_v55, 7  ;;  %v7856_v63 = vmul.f32 %v7420_v60, %v833_v62 }
 0x165   : > { %v2937_v3 = vsel %vm2936_vm3, %v2928_v49, %v2823_v12  ;;  %v2956_v19 = vsel %vm2954_vm5, %v2947_v51, %v2864_v50  ;;  %v7828_v49 = vmul.f32 %v7445_v8, %v833_v62  ;;  %v2912_v12 = vrot.slane %v9918_v18, 7 }
 0x166   : > { %v2946_v6 = vsel %vm2945_vm4, %v2937_v3, %v2839_v23  ;;  %v2965_v46 = vsel %vm2963_vm6, %v2956_v19, %v2880_v31  ;;  %v7834_v3 = vmul.f32 %v7452_v25, %v833_v62  ;;  %v7840_v50 = vmul.f32 %v7458_v40, %v833_v62  ;;  %9921 = vst [vmem:[#allocation26_spill] sm:$0xff] %v7856_v63 }
 0x167   : > { %v2955_v52 = vsel %vm2954_vm5, %v2946_v6, %v2863_v37  ;;  %v2973_v37 = vsel %vm1355_vm1, %v2965_v46, %v2896_v14  ;;  %v7850_v31 = vmul.f32 %v7532_v58, %v833_v62  ;;  %v1293_v19 = vmul.f32 %v7452_v25, %v7755_v54 }
 0x168   : > { %v2964_v13 = vsel %vm2963_vm6, %v2955_v52, %v2879_v33  ;;  %v7847_v33 = vsel %vm1109_vm0, %v2973_v37, %v2912_v12  ;;  %v1047_v52 = vmul.f32 %v7445_v8, %v7755_v54  ;;  %v987_v37 = vpop.permute.xlu1 %986  ;;  %v7882_v22 = vmul.f32 %v7485_v30, %v833_v62 }
 0x169   : > { %v2972_v6 = vsel %vm1355_vm1, %v2964_v13, %v2895_v38  ;;  %9920 = vst [vmem:[#allocation25_spill] sm:$0xff] %v7847_v33  ;;  %v9744_v38 = vrot.slane %v7847_v33, 7  ;;  %v7885_v14 = vmul.f32 %v7539_v32, %v833_v62  ;;  %v7892_v46 = vmul.f32 %v7464_v48, %v7755_v54 }
 0x16a   : > { %v7844_v18 = vsel %vm1109_vm0, %v2972_v6, %v2911_v43  ;;  %v7860_v43 = vmul.f32 %v7464_v48, %v833_v62  ;;  %v1620_v6 = vmul.f32 %v7458_v40, %v7755_v54  ;;  %9924 = vst [vmem:[#allocation19_spill] sm:$0xff] %v7882_v22  ;;  %v1166_v23 = vrot.slane %v1047_v52, 1 }
 0x16b   : > { %9919 = vst [vmem:[#allocation22_spill] sm:$0xff] %v7844_v18  ;;  %v9743_v55 = vrot.slane %v7844_v18, 7  ;;  %v7874_v13 = vsel %vm2927_vm2, 0.0, %v9744_v38  ;;  %v7888_v38 = vmul.f32 %v7494_v39, %v833_v62  ;;  %v2191_v18 = vmul.f32 %v7539_v32, %v7755_v54 }
 0x16c   : > { %9923 = vst [vmem:[#allocation13_spill] sm:$0xff] %v7874_v13  ;;  %v7899_v52 = vmul.f32 %v7494_v39, %v7755_v54  ;;  %v887_v33 = vmul.f32 %v7532_v58, %v7755_v54  ;;  %v1736_v63 = vrot.slane %v1620_v6, 1  ;;  %v9757_v45 = vrot.slane %v7892_v46, 2 }
 0x16d   : > { %v7869_v12 = vsel %vm2927_vm2, 0.0, %v9743_v55  ;;  %v1412_v55 = vrot.slane %v1293_v19, 2  ;;  %9925 = vst [vmem:[#allocation31_spill] sm:$0xff] %v7888_v38  ;;  %v1048_v19 = vmul.f32 %v7445_v8, %v987_v37  ;;  %v2305_v41 = vrot.slane %v2191_v18, 1 }
 0x16e   : > { %9922 = vst [vmem:[#allocation27_spill] sm:$0xff] %v7869_v12  ;;  %v5974_v51 = vpack.i.bf16 %v7874_v13, %v7869_v12  ;;  %v9926_v12 = vrot.slane %v7728_v15, 1  ;;  %v1294_v13 = vmul.f32 %v7452_v25, %v987_v37  ;;  %v1621_v15 = vmul.f32 %v7458_v40, %v987_v37 }
 0x16f   : > { %v1168_v29 = vrot.slane %v1048_v19, 1  ;;  %v7915_v2 = vmul.f32 %v7464_v48, %v987_v37  ;;  %v2192_v7 = vmul.f32 %v7539_v32, %v987_v37  ;;  %v9928_v18 = vrot.slane %v7740_v57, 1 }
 0x170   : > { %5975 = vrot.lane.b32.xlu0 %v5974_v51, %s6382_s28  ;;  %v1167_v62 = vsel %vm1109_vm0, %v9926_v12, %v1166_v23  ;;  %v9927_v51 = vrot.slane %v7737_v10, 2  ;;  %v1414_v59 = vrot.slane %v1294_v13, 2  ;;  %v9929_v6 = vrot.slane %v7743_v36, 2 }
 0x171   : > { %v1244_v17 = vadd.f32 %v1167_v62, %v7734_v4  ;;  %v1169_v10 = vsel %vm1109_vm0, %v1166_v23, %v1168_v29  ;;  %v1738_v62 = vrot.slane %v1621_v15, 1  ;;  %v2307_v29 = vrot.slane %v2192_v7, 1 }
 0x172   : > { %v1413_v22 = vsel %vm1355_vm1, %v9927_v51, %v1412_v55  ;;  %v1245_v19 = vadd.f32 %v1169_v10, %v887_v33  ;;  %v7932_v4 = vsel %vm1355_vm1, %v9929_v6, %v9757_v45  ;;  %v7935_v23 = vmul.f32 %v7494_v39, %v987_v37 }
 0x173   : > { %v1490_v12 = vadd.f32 %v1413_v22, %v1244_v17  ;;  %v1737_v17 = vsel %vm1109_vm0, %v9928_v18, %v1736_v63  ;;  %v1415_v22 = vsel %vm1355_vm1, %v1412_v55, %v1414_v59  ;;  %v9931_v33 = vrot.slane %v7746_v56, 1 }
 0x174   : > { %v1044_v55 = vmul.f32 %v7445_v8, %v7713_v47  ;;  %v7947_v36 = vsel %vm1109_vm0, %v1736_v63, %v1738_v62  ;;  %v9932_v7 = vrot.slane %v7899_v52, 2  ;;  %v9933_v37 = vrot.slane %v7753_v44, 2 }
 0x175   : > { %v7938_v15 = vadd.f32 %v7784_v34, %v1490_v12  ;;  %v2306_v59 = vsel %vm1109_vm0, %v9931_v33, %v2305_v41  ;;  %v885_v34 = vmul.f32 %v7532_v58, %v7713_v47  ;;  %v1290_v56 = vmul.f32 %v7452_v25, %v7713_v47 }
 0x176   : > { %v2551_v6 = vsel %vm1355_vm1, %v9933_v37, %v9932_v7  ;;  %v7958_v12 = vadd.f32 %v1415_v22, %v1245_v19  ;;  %v1161_v10 = vrot.slane %v1044_v55, 1  ;;  %v1617_v18 = vmul.f32 %v7458_v40, %v7713_v47  ;;  %v982_v37 = vpop.permute.xlu0 %981 }
 0x177   : > { %9930 = vst [vmem:[#allocation32_spill] sm:$0xff] %v7938_v15  ;;  %v1862_v63 = vmul.f32 %v7464_v48, %v7713_v47  ;;  %v7965_v62 = vsel %vm1109_vm0, %v2305_v41, %v2307_v29  ;;  %v1407_v33 = vrot.slane %v1290_v56, 2  ;;  %v1534_v7 = vmul.f32 %v7420_v60, %v7713_v47 }
 0x178   : > { %9934 = vst [vmem:[#allocation33_spill] sm:$0xff] %v7958_v12  ;;  %v9935_v19 = vrot.slane %v7677_v16, 1  ;;  %v7975_v55 = vmul.f32 %v7420_v60, %v7755_v54  ;;  %v1731_v13 = vrot.slane %v1617_v18, 1  ;;  %v9936_v29 = vrot.slane %v7680_v11, 2 }
 0x179   : > { %v1976_v51 = vrot.slane %v1862_v63, 2  ;;  %v2059_v44 = vadd.f32 %v7692_v26, %v7710_v24  ;;  %v2188_v16 = vmul.f32 %v7539_v32, %v7713_v47  ;;  %v9938_v57 = vrot.slane %v7706_v27, 2 }
 0x17a   : > { %v1162_v22 = vsel %vm1109_vm0, %v9935_v19, %v1161_v10  ;;  %v1408_v56 = vsel %vm1355_vm1, %v9936_v29, %v1407_v33  ;;  %v9937_v19 = vrot.slane %v7699_v20, 1  ;;  %v1045_v11 = vmul.f32 %v7445_v8, %v982_v37 }
 0x17b   : > { %v1242_v41 = vadd.f32 %v1162_v22, %v7703_v5  ;;  %v1977_v18 = vsel %vm1355_vm1, %v9938_v57, %v1976_v51  ;;  %v2433_v5 = vmul.f32 %v7494_v39, %v7713_v47  ;;  %v2300_v26 = vrot.slane %v2188_v16, 1 }
 0x17c   : > { %v1732_v45 = vsel %vm1109_vm0, %v9937_v19, %v1731_v13  ;;  %v1291_v24 = vmul.f32 %v7452_v25, %v982_v37  ;;  %v1163_v15 = vrot.slane %v1045_v11, 1  ;;  %v1618_v20 = vmul.f32 %v7458_v40, %v982_v37 }
 0x17d   : > { %v1488_v63 = vadd.f32 %v1408_v56, %v1242_v41  ;;  %v1815_v22 = vadd.f32 %v1732_v45, %v7724_v9  ;;  %v2545_v29 = vrot.slane %v2433_v5, 2  ;;  %v1863_v19 = vmul.f32 %v7464_v48, %v982_v37 }
 0x17e   : > { %v1566_v27 = vadd.f32 %v1534_v7, %v7589_v61  ;;  %v9939_v38 = vrot.slane %v7718_v35, 1  ;;  %v1164_v45 = vsel %vm1109_vm0, %v1161_v10, %v1163_v15  ;;  %v1409_v56 = vrot.slane %v1291_v24, 2 }
 0x17f   : > { %v1567_v57 = vadd.f32 %v7759_v21, %v1488_v63  ;;  %v2060_v12 = vadd.f32 %v1977_v18, %v1815_v22  ;;  %v1733_v16 = vrot.slane %v1618_v20, 1  ;;  %v9940_v60 = vrot.slane %v7721_v1, 2  ;;  %v8018_v1 = vld [vmem:[%s9820_s3] ss:$0 sm:$0xff]  ;;  %s6321_s3 = sshll.u32 %s6391_s2, 4  ;;  %s6322_s3 = int_to_ptr.vmem [resolvable:$false] %s6321_s3 }
 0x180   : > { %v2301_v41 = vsel %vm1109_vm0, %v9939_v38, %v2300_v26  ;;  %v1243_v7 = vadd.f32 %v1164_v45, %v885_v34  ;;  %v1978_v35 = vrot.slane %v1863_v19, 2  ;;  %v2189_v38 = vmul.f32 %v7539_v32, %v982_v37  ;;  %v997_v45 = vpop.permute.xlu1 %996 }
 0x181   : > { %v2387_v9 = vadd.f32 %v2301_v41, %v7731_v42  ;;  %v1817_v5 = vadd.f32 %v1737_v17, %v1567_v57  ;;  %v2139_v11 = vadd.f32 %v7766_v28, %v2060_v12  ;;  %v2546_v61 = vsel %vm1355_vm1, %v9940_v60, %v2545_v29 }
 0x182   : > { %v1734_v18 = vsel %vm1109_vm0, %v1731_v13, %v1733_v16  ;;  %v2106_v42 = vmul.f32 %v7485_v30, %v7713_v47  ;;  %v2108_v15 = vmul.f32 %v7485_v30, %v7755_v54  ;;  %v1979_v28 = vsel %vm1355_vm1, %v1976_v51, %v1978_v35 }
 0x183   : > { %v2632_v21 = vadd.f32 %v2546_v61, %v2387_v9  ;;  %v2389_v17 = vadd.f32 %v2306_v59, %v2139_v11  ;;  %v1816_v10 = vadd.f32 %v1734_v18, %v1566_v27  ;;  %v2302_v13 = vrot.slane %v2189_v38, 1 }
 0x184   : > { %v2434_v34 = vmul.f32 %v7494_v39, %v982_v37  ;;  %v2138_v12 = vadd.f32 %v2106_v42, %v2059_v44  ;;  %v1410_v47 = vsel %vm1355_vm1, %v1407_v33, %v1409_v56  ;;  %v2062_v54 = vadd.f32 %v7932_v4, %v1817_v5 }
 0x185   : > { %v2671_v60 = vadd.f32 %v8018_v1, %v2632_v21  ;;  %v2634_v63 = vadd.f32 %v2551_v6, %v2389_v17  ;;  %v2061_v22 = vadd.f32 %v1979_v28, %v1816_v10  ;;  %v1489_v59 = vadd.f32 %v1410_v47, %v1243_v7 }
 0x186   : > { %v2303_v24 = vsel %vm1109_vm0, %v2300_v26, %v2302_v13  ;;  %v2547_v20 = vrot.slane %v2434_v34, 2  ;;  %v1053_v44 = vmul.f32 %v7445_v8, %v7825_v0  ;;  %v1299_v6 = vmul.f32 %v7452_v25, %v7825_v0 }
 0x187   : > { %v2673_v19 = vadd.f32 %v8018_v1, %v2634_v63  ;;  %v2703_v27 = vmax.f32 %v2671_v60, 0.0  ;;  %v2140_v57 = vadd.f32 %v2108_v15, %v2061_v22  ;;  %v2388_v41 = vadd.f32 %v2303_v24, %v2138_v12 }
 0x188   : > { %v2548_v51 = vsel %vm1355_vm1, %v2545_v29, %v2547_v20  ;;  %v1626_v4 = vmul.f32 %v7458_v40, %v7825_v0  ;;  %v1871_v9 = vmul.f32 %v7464_v48, %v7825_v0  ;;  %v9941_v56 = vrot.slane %v7915_v2, 2 }
 0x189   : > { %v2705_v33 = vmax.f32 %v2673_v19, 0.0  ;;  %v2390_v37 = vadd.f32 %v7965_v62, %v2140_v57  ;;  %v2633_v26 = vadd.f32 %v2548_v51, %v2388_v41  ;;  %v9942_v29 = vrot.slane %v7892_v46, 2 }
 0x18a   : > { %v9943_v5 = vrot.slane %v7935_v23, 2  ;;  %v9944_v11 = vrot.slane %v7899_v52, 2  ;;  %v8048_v7 = vadd.f32 %v7791_v53, %v2062_v54  ;;  %v1176_v62 = vrot.slane %v1053_v44, 1 }
 0x18b   : > { %v1984_v16 = vsel %vm1355_vm1, %v9942_v29, %v9941_v56  ;;  %v2727_v21 = vmax.f32 %v2703_v27, %v2705_v33  ;;  %v1568_v18 = vadd.f32 %v7975_v55, %v1489_v59  ;;  %v2672_v2 = vadd.f32 %v8018_v1, %v2633_v26 }
 0x18c   : > { %v2553_v61 = vsel %vm1355_vm1, %v9944_v11, %v9943_v5  ;;  %v891_v46 = vmul.f32 %v7532_v58, %v7825_v0  ;;  %v8056_v23 = vmul.f32 %v7539_v32, %v7825_v0  ;;  %v1054_v52 = vmul.f32 %v7445_v8, %v997_v45 }
 0x18d   : > { %v2635_v35 = vadd.f32 %v2553_v61, %v2390_v37  ;;  %v9945_v38 = vrot.slane %v7828_v49, 1  ;;  %v1422_v15 = vrot.slane %v1299_v6, 2  ;;  %v1746_v55 = vrot.slane %v1626_v4, 1  ;;  %v9950_v61 = vld [vmem:[#allocation21_spill] sm:$0xff] }
 0x18e   : > { %v1991_v17 = vrot.slane %v1871_v9, 2  ;;  %v2747_v10 = vrot.slane %v2727_v21, 1  ;;  %v8065_v60 = vmul.f32 %v7494_v39, %v7825_v0  ;;  %v1178_v28 = vrot.slane %v1054_v52, 1 }
 0x18f   : > { %v1177_v53 = vsel %vm1109_vm0, %v9945_v38, %v1176_v62  ;;  %v2674_v42 = vadd.f32 %v8018_v1, %v2635_v35  ;;  %v1300_v13 = vmul.f32 %v7452_v25, %v997_v45  ;;  %v2704_v34 = vmax.f32 %v2672_v2, 0.0 }
 0x190   : > { %v1248_v63 = vadd.f32 %v1177_v53, %v7850_v31  ;;  %v1627_v49 = vmul.f32 %v7458_v40, %v997_v45  ;;  %v2315_v47 = vrot.slane %v8056_v23, 1  ;;  %v1179_v22 = vsel %vm1109_vm0, %v1176_v62, %v1178_v28  ;;  %v8203_v23 = vld [vmem:[%s9804_s25 + $0x1] ss:$0 sm:$0xff] }
 0x191   : > { %v2706_v12 = vmax.f32 %v2674_v42, 0.0  ;;  %v1424_v54 = vrot.slane %v1300_v13, 2  ;;  %v1872_v59 = vmul.f32 %v7464_v48, %v997_v45  ;;  %v1818_v24 = vadd.f32 %v7947_v36, %v1568_v18  ;;  %v992_v13 = vpop.permute.xlu0 %991 }
 0x192   : > { %v1249_v19 = vadd.f32 %v1179_v22, %v891_v46  ;;  %v1748_v27 = vrot.slane %v1627_v49, 1  ;;  %v2560_v57 = vrot.slane %v8065_v60, 2  ;;  %v9946_v41 = vrot.slane %v7834_v3, 2  ;;  %v9957_v49 = vld [vmem:[#allocation12_spill] sm:$0xff] }
 0x193   : > { %v8074_v20 = vmax.f32 %v2704_v34, %v2706_v12  ;;  %v1993_v51 = vrot.slane %v1872_v59, 2  ;;  %v8081_v44 = vmul.f32 %v7539_v32, %v997_v45  ;;  %v8083_v6 = vmax.f32 %v2727_v21, %v2747_v10  ;;  %v9955_v34 = vld [vmem:[#allocation28_spill] sm:$0xff] }
 0x194   : > { %v1423_v31 = vsel %vm1355_vm1, %v9946_v41, %v1422_v15  ;;  %v1425_v4 = vsel %vm1355_vm1, %v1422_v15, %v1424_v54  ;;  %v9947_v36 = vrot.slane %v7840_v50, 1  ;;  %v9948_v9 = vrot.slane %v7860_v43, 2 }
 0x195   : > { %v8086_v33 = vadd.f32 %v1423_v31, %v1248_v63  ;;  %v2779_v26 = vrot.slane %v8074_v20, 1  ;;  %v8094_v3 = vadd.f32 %v1425_v4, %v1249_v19  ;;  %v9949_v29 = vrot.slane %v7885_v14, 1  ;;  %v9951_v14 = vld [vmem:[#allocation29_spill] sm:$0xff]  ;;  %v9960_v31 = vld [vmem:[#allocation14_spill] sm:$0xff] }
 0x196   : > { %v8091_v37 = vsel %vm1109_vm0, %v9947_v36, %v1746_v55  ;;  %v8099_v56 = vsel %vm1355_vm1, %v9948_v9, %v1991_v17  ;;  %v8107_v50 = vsel %vm1109_vm0, %v1746_v55, %v1748_v27  ;;  %v8110_v11 = vmul.f32 %v7494_v39, %v997_v45  ;;  %v9952_v45 = vld [vmem:[#allocation31_spill] sm:$0xff]  ;;  %v9954_v55 = vld [vmem:[#allocation33_spill] sm:$0xff]  ;;  %v9962_v36 = vld [vmem:[#allocation32_spill] sm:$0xff] }
 0x197   : > { %v2316_v5 = vsel %vm1109_vm0, %v9949_v29, %v2315_v47  ;;  %v1050_v62 = vmul.f32 %v7445_v8, %v9950_v61  ;;  %v1296_v43 = vmul.f32 %v7452_v25, %v9950_v61  ;;  %v8117_v21 = vsel %vm1355_vm1, %v1991_v17, %v1993_v51  ;;  %v9959_v27 = vld [vmem:[#allocation17_spill] sm:$0xff] }
 0x198   : > { %v2317_v18 = vrot.slane %v8081_v44, 1  ;;  %v1538_v35 = vmul.f32 %v9951_v14, %v9950_v61  ;;  %v1623_v2 = vmul.f32 %v7458_v40, %v9950_v61  ;;  %v9953_v46 = vrot.slane %v9952_v45, 2  ;;  %v9963_v14 = vld [vmem:[#allocation24_spill] sm:$0xff] }
 0x199   : > { %v1171_v38 = vrot.slane %v1050_v62, 1  ;;  %v1417_v53 = vrot.slane %v1296_v43, 2  ;;  %v1868_v42 = vmul.f32 %v7464_v48, %v9950_v61  ;;  %v889_v15 = vmul.f32 %v7532_v58, %v9950_v61 }
 0x19a   : > { %v2561_v52 = vsel %vm1355_vm1, %v9953_v46, %v2560_v57  ;;  %v1570_v17 = vadd.f32 %v1538_v35, %v9954_v55  ;;  %v1741_v10 = vrot.slane %v1623_v2, 1  ;;  %v2063_v28 = vadd.f32 %v1984_v16, %v1818_v24 }
 0x19b   : > { %v9956_v12 = vrot.slane %v9955_v34, 1  ;;  %v9958_v22 = vrot.slane %v9957_v49, 2  ;;  %v1986_v59 = vrot.slane %v1868_v42, 2  ;;  %v2110_v19 = vmul.f32 %v7485_v30, %v9950_v61 }
 0x19c   : > { %v9961_v51 = vrot.slane %v9960_v31, 1  ;;  %v2112_v16 = vmul.f32 %v7485_v30, %v7825_v0  ;;  %v2194_v24 = vmul.f32 %v7539_v32, %v9950_v61  ;;  %v2439_v62 = vmul.f32 %v7494_v39, %v9950_v61 }
 0x19d   : > { %v1172_v63 = vsel %vm1109_vm0, %v9956_v12, %v1171_v38  ;;  %v1418_v54 = vsel %vm1355_vm1, %v9958_v22, %v1417_v53  ;;  %v2142_v29 = vadd.f32 %v2110_v19, %v2063_v28  ;;  %v1051_v43 = vmul.f32 %v7445_v8, %v992_v13  ;;  %v9967_v19 = vld [vmem:[#allocation19_spill] sm:$0xff] }
 0x19e   : > { %v1246_v41 = vadd.f32 %v1172_v63, %v9959_v27  ;;  %v1742_v4 = vsel %vm1109_vm0, %v9961_v51, %v1741_v10  ;;  %v9964_v35 = vrot.slane %v9963_v14, 2  ;;  %v2310_v45 = vrot.slane %v2194_v24, 1  ;;  %v9965_v63 = vld [vmem:[#allocation16_spill] sm:$0xff]  ;;  %v9968_v51 = vld [vmem:[#allocation18_spill] sm:$0xff] }
 0x19f   : > { %v1819_v9 = vadd.f32 %v1742_v4, %v9962_v36  ;;  %v1297_v46 = vmul.f32 %v7452_v25, %v992_v13  ;;  %v1624_v30 = vmul.f32 %v7458_v40, %v992_v13  ;;  %v2555_v55 = vrot.slane %v2439_v62, 2  ;;  %v9970_v14 = vld [vmem:[#allocation26_spill] sm:$0xff] }
 0x1a0   : > { %v1987_v2 = vsel %vm1355_vm1, %v9964_v35, %v1986_v59  ;;  %v1173_v34 = vrot.slane %v1051_v43, 1  ;;  %v1869_v12 = vmul.f32 %v7464_v48, %v992_v13  ;;  %v1492_v28 = vadd.f32 %v1418_v54, %v1246_v41 }
 0x1a1   : > { %v2064_v42 = vadd.f32 %v1987_v2, %v1819_v9  ;;  %v9966_v49 = vrot.slane %v9965_v63, 1  ;;  %v1419_v8 = vrot.slane %v1297_v46, 2  ;;  %v1743_v22 = vrot.slane %v1624_v30, 1 }
 0x1a2   : > { %v9969_v25 = vrot.slane %v9968_v51, 2  ;;  %v1174_v4 = vsel %vm1109_vm0, %v1171_v38, %v1173_v34  ;;  %v1988_v41 = vrot.slane %v1869_v12, 2  ;;  %v2195_v43 = vmul.f32 %v7539_v32, %v992_v13  ;;  %v8244_v51 = vld [vmem:[%s9804_s25 + $0x6] ss:$0 sm:$0xff] }
 0x1a3   : > { %v2311_v61 = vsel %vm1109_vm0, %v9966_v49, %v2310_v45  ;;  %v2143_v27 = vadd.f32 %v9967_v19, %v2064_v42  ;;  %v1247_v24 = vadd.f32 %v1174_v4, %v889_v15  ;;  %v1420_v48 = vsel %vm1355_vm1, %v1417_v53, %v1419_v8  ;;  %v8223_v8 = vld [vmem:[%s9804_s25 + $0x4] ss:$0 sm:$0xff] }
 0x1a4   : > { %v2391_v31 = vadd.f32 %v2311_v61, %v8048_v7  ;;  %v2556_v40 = vsel %vm1355_vm1, %v9969_v25, %v2555_v55  ;;  %v1744_v54 = vsel %vm1109_vm0, %v1741_v10, %v1743_v22  ;;  %v1571_v35 = vadd.f32 %v9970_v14, %v1492_v28  ;;  %v8185_v10 = vld [vmem:[%s9804_s25 + $0x3] ss:$0 sm:$0xff]  ;;  %v8268_v14 = vld [vmem:[%s9804_s25 + $0x8] ss:$0 sm:$0xff] }
 0x1a5   : > { %v2393_v36 = vadd.f32 %v2316_v5, %v2143_v27  ;;  %v1820_v62 = vadd.f32 %v1744_v54, %v1570_v17  ;;  %v1493_v7 = vadd.f32 %v1420_v48, %v1247_v24  ;;  %v1989_v2 = vsel %vm1355_vm1, %v1986_v59, %v1988_v41  ;;  %v843_v59 = vpop.permute.xlu0 %842 }
 0x1a6   : > { %v2636_v9 = vadd.f32 %v2556_v40, %v2391_v31  ;;  %v2440_v46 = vmul.f32 %v7494_v39, %v992_v13  ;;  %v2312_v53 = vrot.slane %v2195_v43, 1  ;;  %v8179_v5 = vmax.f32 %v8074_v20, %v2779_v26  ;;  %v8189_v13 = vpop.permute.xlu1 %847 }
 0x1a7   : > { %v2638_v30 = vadd.f32 %v2561_v52, %v2393_v36  ;;  %v2065_v15 = vadd.f32 %v1989_v2, %v1820_v62  ;;  %v2562_v17 = vrot.slane %v8110_v11, 2  ;;  %v1540_v39 = vmul.f32 %v8185_v10, %v7825_v0  ;;  %v9971_v2 = vld [vmem:[#allocation30_spill] sm:$0xff] }
 0x1a8   : > { %v2675_v38 = vadd.f32 %v8018_v1, %v2636_v9  ;;  %v2557_v52 = vrot.slane %v2440_v46, 2  ;;  %v2318_v20 = vsel %vm1109_vm0, %v2315_v47, %v2317_v18  ;;  %v2313_v42 = vsel %vm1109_vm0, %v2310_v45, %v2312_v53 }
 0x1a9   : > { %v2677_v26 = vadd.f32 %v8018_v1, %v2638_v30  ;;  %v2144_v11 = vadd.f32 %v2112_v16, %v2065_v15  ;;  %v1572_v12 = vadd.f32 %v1540_v39, %v1493_v7  ;;  %v2392_v28 = vadd.f32 %v2313_v42, %v2142_v29  ;;  %v8254_v54 = vpop.permute.xlu0 %852 }
 0x1aa   : > { %v2707_v34 = vmax.f32 %v2675_v38, 0.0  ;;  %v1821_v0 = vadd.f32 %v8091_v37, %v1571_v35  ;;  %v2558_v61 = vsel %vm1355_vm1, %v2555_v55, %v2557_v52  ;;  %v8206_v47 = vmul.f32 %v8203_v23, %v843_v59  ;;  %v8214_v37 = vld [vmem:[%s9804_s25 + $0x2] ss:$0 sm:$0xff]  ;;  %v8247_v40 = vpop.permute.xlu1 %857 }
 0x1ab   : > { %v2709_v63 = vmax.f32 %v2677_v26, 0.0  ;;  %v2394_v49 = vadd.f32 %v2318_v20, %v2144_v11  ;;  %v2563_v44 = vsel %vm1355_vm1, %v2560_v57, %v2562_v17  ;;  %v2637_v18 = vadd.f32 %v2558_v61, %v2392_v28  ;;  %v8231_v57 = vld [vmem:[%s9804_s25 + $0x5] ss:$0 sm:$0xff] }
 0x1ac   : > { %v8217_v16 = vmul.f32 %v8214_v37, %v843_v59  ;;  %v1541_v29 = vmul.f32 %v8185_v10, %v843_v59  ;;  %v8226_v60 = vmul.f32 %v8223_v8, %v843_v59  ;;  %v8234_v22 = vmul.f32 %v8231_v57, %v843_v59  ;;  %v9972_v17 = vld [vmem:[#allocation20_spill] sm:$0xff] }
 0x1ad   : > { %v2729_v45 = vmax.f32 %v2707_v34, %v2709_v63  ;;  %v2639_v55 = vadd.f32 %v2563_v44, %v2394_v49  ;;  %v2676_v19 = vadd.f32 %v8018_v1, %v2637_v18  ;;  %v2066_v27 = vadd.f32 %v8099_v56, %v1821_v0  ;;  %v8396_v56 = vld [vmem:[%s9804_s25] ss:$0 sm:$0xff] }
 0x1ae   : > { %v8239_v31 = vmul.f32 %v7532_v58, %v843_v59  ;;  %v2113_v25 = vmul.f32 %v8244_v51, %v843_v59  ;;  %v8250_v24 = vadd.f32 %v8107_v50, %v1572_v12  ;;  %v8258_v36 = vadd.f32 %v1541_v29, %v8086_v33  ;;  %v1007_v26 = vpop.permute.xlu1 %1006  ;;  %v8298_v12 = vld [vmem:[%s9804_s25 + $0x7] ss:$0 sm:$0xff]  ;;  %s10017_s25 = smov 64  }
 0x1af   : > { %v2748_v4 = vrot.slane %v2729_v45, 1  ;;  %v2678_v48 = vadd.f32 %v8018_v1, %v2639_v55  ;;  %v2708_v58 = vmax.f32 %v2676_v19, 0.0  ;;  %v8261_v9 = vmul.f32 %v7539_v32, %v843_v59 }
 0x1b0   : > { %v1750_v43 = vrot.slane %v8226_v60, 1  ;;  %v8271_v35 = vmul.f32 %v8268_v14, %v843_v59  ;;  %v8273_v7 = vadd.f32 %v2113_v25, %v2066_v27  ;;  %v2202_v33 = vmul.f32 %v7539_v32, %v8254_v54 }
 0x1b1   : > { %v2710_v62 = vmax.f32 %v2678_v48, 0.0  ;;  %v2809_v46 = vrot.slane %v9971_v2, 1  ;;  %v2825_v30 = vrot.slane %v9971_v2, 2  ;;  %v8279_v38 = vmax.f32 %v2729_v45, %v2748_v4 }
 0x1b2   : > { %v8283_v53 = vmul.f32 %v8244_v51, %v8254_v54  ;;  %v2865_v39 = vrot.slane %v9972_v17, 4  ;;  %v2841_v59 = vrot.slane %v9971_v2, 3  ;;  %v2881_v20 = vrot.slane %v9972_v17, 5 }
 0x1b3   : > { %v2730_v15 = vmax.f32 %v2708_v58, %v2710_v62  ;;  %v2930_v32 = vsel %vm2927_vm2, %v9971_v2, %v2809_v46  ;;  %v2447_v42 = vmul.f32 %v8268_v14, %v8254_v54  ;;  %v2203_v28 = vmul.f32 %v8298_v12, %v8247_v40 }
 0x1b4   : > { %v2939_v34 = vsel %vm2936_vm3, %v2930_v32, %v2825_v30  ;;  %v2324_v0 = vrot.slane %v2202_v33, 1  ;;  %v2897_v63 = vrot.slane %v9972_v17, 6  ;;  %v8306_v61 = vmul.f32 %v8268_v14, %v8247_v40 }
 0x1b5   : > { %v2948_v49 = vsel %vm2945_vm4, %v2939_v34, %v2841_v59  ;;  %v2780_v44 = vrot.slane %v2730_v15, 1  ;;  %v8311_v29 = vmul.f32 %v8223_v8, %v8247_v40  ;;  %v8314_v45 = vmul.f32 %v8203_v23, %v1007_v26 }
 0x1b6   : > { %v2957_v18 = vsel %vm2954_vm5, %v2948_v49, %v2865_v39  ;;  %v2913_v55 = vrot.slane %v9972_v17, 7  ;;  %v2325_v27 = vrot.slane %v2203_v28, 1  ;;  %v8319_v25 = vmul.f32 %v8214_v37, %v1007_v26  ;;  %v9973_v28 = vld [vmem:[#allocation25_spill] sm:$0xff] }
 0x1b7   : > { %v2966_v19 = vsel %vm2963_vm6, %v2957_v18, %v2881_v20  ;;  %v2569_v4 = vrot.slane %v2447_v42, 2  ;;  %v1633_v58 = vmul.f32 %v8223_v8, %v1007_v26  ;;  %v2204_v62 = vmul.f32 %v8298_v12, %v1007_v26  ;;  %v9977_v18 = vld [vmem:[#allocation13_spill] sm:$0xff] }
 0x1b8   : > { %v2974_v48 = vsel %vm1355_vm1, %v2966_v19, %v2897_v63  ;;  %v9761_v2 = vrot.slane %v8306_v61, 2  ;;  %v8327_v46 = vmul.f32 %v8231_v57, %v1007_v26  ;;  %v8330_v30 = vmul.f32 %v8268_v14, %v1007_v26 }
 0x1b9   : > { %v2982_v33 = vsel %vm1109_vm0, %v2974_v48, %v2913_v55  ;;  %v8332_v17 = vmax.f32 %v2730_v15, %v2780_v44  ;;  %v9760_v59 = vrot.slane %v8311_v29, 1  ;;  %v1758_v42 = vrot.slane %v1633_v58, 1 }
 0x1ba   : > { %v2998_v39 = vrot.slane %v2982_v33, 7  ;;  %v8338_v34 = vsel %vm1109_vm0, %v2324_v0, %v2325_v27  ;;  %v9974_v63 = vrot.slane %v9973_v28, 7  ;;  %v2327_v15 = vrot.slane %v2204_v62, 1 }
 0x1bb   : > { %v3071_v55 = vrot.slane %v9977_v18, 2  ;;  %v8358_v48 = vsel %vm1355_vm1, %v2569_v4, %v9761_v2  ;;  %v8368_v28 = vsel %vm1109_vm0, %v9760_v59, %v1758_v42  ;;  %v8372_v4 = vmul.f32 %v8203_v23, %v8189_v13  ;;  %v1002_v59 = vpop.permute.xlu0 %1001 }
 0x1bc   : > { %v8343_v49 = vsel %vm2927_vm2, %v9974_v63, 0.0  ;;  %v8346_v26 = vsel %vm2927_vm2, 0.0, %v2998_v39  ;;  %v8349_v44 = vsel %vm2927_vm2, %v2998_v39, 0.0  ;;  %v8376_v63 = vmul.f32 %v8214_v37, %v8189_v13 }
 0x1bd   : > { %9975 = vst [vmem:[#allocation21_spill] sm:$0xff] %v8343_v49  ;;  %9976 = vst [vmem:[#allocation29_spill] sm:$0xff] %v8349_v44  ;;  %v5979_v19 = vpack.i.bf16 %v8346_v26, %v9977_v18  ;;  %v3072_v33 = vrot.slane %v8343_v49, 2  ;;  %v3074_v62 = vrot.slane %v8346_v26, 2  ;;  %v3075_v39 = vrot.slane %v8349_v44, 2 }
 0x1be   : > { %v1629_v32 = vmul.f32 %v8223_v8, %v8189_v13  ;;  %v8381_v20 = vsel %vm1109_vm0, %v2325_v27, %v2327_v15  ;;  %v1874_v0 = vmul.f32 %v8231_v57, %v8189_v13  ;;  %v893_v27 = vmul.f32 %v8396_v56, %v8189_v13 }
 0x1bf   : > { %5980 = vrot.lane.b32.xlu1 %v5979_v19, %s9769_s26  ;;  %v8384_v19 = vsel %vm1355_vm1, %v3071_v55, %v3072_v33  ;;  %v8387_v42 = vsel %vm1355_vm1, %v3074_v62, %v3075_v39  ;;  %v1542_v15 = vmul.f32 %v8185_v10, %v8189_v13  ;;  %v2067_v55 = vadd.f32 %v8117_v21, %v8250_v24 }
 0x1c0   : > { %9978 = vst [vmem:[#allocation31_spill] sm:$0xff] %v8384_v19  ;;  %9979 = vst [vmem:[#allocation33_spill] sm:$0xff] %v8387_v42  ;;  %v3337_v41 = vpack.c.bf16 %v8387_v42, %v8384_v19  ;;  %v1751_v39 = vrot.slane %v1629_v32, 1  ;;  %v1996_v2 = vrot.slane %v1874_v0, 2  ;;  %v2200_v11 = vmul.f32 %v8298_v12, %v8189_v13 }
 0x1c1   : > { %v1574_v58 = vadd.f32 %v1542_v15, %v8094_v3  ;;  %v2445_v52 = vmul.f32 %v8268_v14, %v8189_v13  ;;  %v1057_v50 = vmul.f32 %v8203_v23, %v1002_v59  ;;  %v2114_v24 = vmul.f32 %v8244_v51, %v8189_v13 }
 0x1c2   : > { %5540 = vmatprep.mubr.msk.bf16.mxu0 %vm3273_vm7, %v3337_v41  ;;  %v1752_v21 = vsel %vm1109_vm0, %v1750_v43, %v1751_v39  ;;  %v1303_v32 = vmul.f32 %v8214_v37, %v1002_v59  ;;  %v1630_v41 = vmul.f32 %v8223_v8, %v1002_v59  ;;  %v2320_v0 = vrot.slane %v2200_v11, 1 }
 0x1c3   : > { %v1823_v3 = vadd.f32 %v1752_v21, %v8258_v36  ;;  %v2565_v15 = vrot.slane %v2445_v52, 2  ;;  %v1183_v62 = vrot.slane %v1057_v50, 1  ;;  %v9980_v33 = vrot.slane %v8234_v22, 2 }
 0x1c4   : > { %v1753_v19 = vrot.slane %v1630_v41, 1  ;;  %v1875_v60 = vmul.f32 %v8231_v57, %v1002_v59  ;;  %v2201_v43 = vmul.f32 %v8298_v12, %v1002_v59  ;;  %v2146_v13 = vadd.f32 %v2114_v24, %v2067_v55 }
 0x1c5   : > { %v1997_v42 = vsel %vm1355_vm1, %v9980_v33, %v1996_v2  ;;  %v9981_v44 = vrot.slane %v8261_v9, 1  ;;  %v9982_v36 = vrot.slane %v8372_v4, 1  ;;  %v9983_v22 = vrot.slane %v8271_v35, 2 }
 0x1c6   : > { %v2068_v18 = vadd.f32 %v1997_v42, %v1823_v3  ;;  %v1429_v33 = vrot.slane %v1303_v32, 2  ;;  %v1754_v21 = vsel %vm1109_vm0, %v1751_v39, %v1753_v19  ;;  %v1998_v24 = vrot.slane %v1875_v60, 2  ;;  %v9984_v32 = vld [vmem:[#allocation23_spill] sm:$0xff] }
 0x1c7   : > { %v2321_v49 = vsel %vm1109_vm0, %v9981_v44, %v2320_v0  ;;  %v1184_v52 = vsel %vm1109_vm0, %v9982_v36, %v1183_v62  ;;  %v2566_v11 = vsel %vm1355_vm1, %v9983_v22, %v2565_v15  ;;  %v1824_v55 = vadd.f32 %v1754_v21, %v1574_v58  ;;  %v1509_v36 = vpop.permute.xlu1 %1508  ;;  %v9988_v22 = vld [vmem:[#allocation15_spill] sm:$0xff] }
 0x1c8   : > { %v2395_v50 = vadd.f32 %v2321_v49, %v8273_v7  ;;  %v2147_v42 = vadd.f32 %v8283_v53, %v2068_v18  ;;  %v2322_v9 = vrot.slane %v2201_v43, 1  ;;  %v2116_v44 = vmul.f32 %v8244_v51, %v8247_v40 }
 0x1c9   : > { %v1251_v3 = vadd.f32 %v1184_v52, %v893_v27  ;;  %v2446_v62 = vmul.f32 %v8268_v14, %v1002_v59  ;;  %v1999_v35 = vsel %vm1355_vm1, %v1996_v2, %v1998_v24  ;;  %v2810_v19 = vrot.slane %v9984_v32, 1 }
 0x1ca   : > { %v2640_v41 = vadd.f32 %v2566_v11, %v2395_v50  ;;  %v2397_v7 = vadd.f32 %v8338_v34, %v2147_v42  ;;  %v2323_v49 = vsel %vm1109_vm0, %v2320_v0, %v2322_v9  ;;  %v2069_v39 = vadd.f32 %v1999_v35, %v1824_v55 }
 0x1cb   : > { %v2396_v53 = vadd.f32 %v2323_v49, %v2146_v13  ;;  %v2567_v18 = vrot.slane %v2446_v62, 2  ;;  %v2826_v58 = vrot.slane %v9984_v32, 2  ;;  %v9985_v60 = vrot.slane %v8330_v30, 2 }
 0x1cc   : > { %v9986_v43 = vrot.slane %v8306_v61, 2  ;;  %v2642_v59 = vadd.f32 %v8358_v48, %v2397_v7  ;;  %v2679_v34 = vadd.f32 %v8018_v1, %v2640_v41  ;;  %v9987_v2 = vrot.slane %v8376_v63, 2 }
 0x1cd   : > { %v2148_v52 = vadd.f32 %v2116_v44, %v2069_v39  ;;  %v2568_v13 = vsel %vm1355_vm1, %v2565_v15, %v2567_v18  ;;  %v2842_v50 = vrot.slane %v9984_v32, 3  ;;  %v2866_v30 = vrot.slane %v9988_v22, 4 }
 0x1ce   : > { %v2573_v27 = vsel %vm1355_vm1, %v9986_v43, %v9985_v60  ;;  %v1430_v0 = vsel %vm1355_vm1, %v9987_v2, %v1429_v33  ;;  %v2681_v61 = vadd.f32 %v8018_v1, %v2642_v59  ;;  %v2641_v11 = vadd.f32 %v2568_v13, %v2396_v53 }
 0x1cf   : > { %v2882_v21 = vrot.slane %v9988_v22, 5  ;;  %v2931_v48 = vsel %vm2927_vm2, %v9984_v32, %v2810_v19  ;;  %v8463_v42 = vadd.f32 %v1430_v0, %v1251_v3  ;;  %v2398_v33 = vadd.f32 %v8381_v20, %v2148_v52 }
 0x1d0   : > { %v2940_v55 = vsel %vm2936_vm3, %v2931_v48, %v2826_v58  ;;  %v8468_v15 = vmul.f32 %v8223_v8, %v1509_v36  ;;  %v2711_v24 = vmax.f32 %v2679_v34, 0.0  ;;  %v2713_v9 = vmax.f32 %v2681_v61, 0.0 }
 0x1d1   : > { %v2680_v44 = vadd.f32 %v8018_v1, %v2641_v11  ;;  %v2949_v41 = vsel %vm2945_vm4, %v2940_v55, %v2842_v50  ;;  %v2643_v62 = vadd.f32 %v2573_v27, %v2398_v33  ;;  %v2898_v7 = vrot.slane %v9988_v22, 6 }
 0x1d2   : > { %v2958_v35 = vsel %vm2954_vm5, %v2949_v41, %v2866_v30  ;;  %v8475_v3 = vmul.f32 %v8231_v57, %v1509_v36  ;;  %v2731_v20 = vmax.f32 %v2711_v24, %v2713_v9  ;;  %v2914_v49 = vrot.slane %v9988_v22, 7 }
 0x1d3   : > { %v2967_v32 = vsel %vm2963_vm6, %v2958_v35, %v2882_v21  ;;  %v8480_v19 = vmul.f32 %v8185_v10, %v1509_v36  ;;  %v2682_v39 = vadd.f32 %v8018_v1, %v2643_v62  ;;  %v1761_v18 = vrot.slane %v8468_v15, 1  ;;  %v1504_v21 = vpop.permute.xlu0 %1503 }
 0x1d4   : > { %v2975_v53 = vsel %vm1355_vm1, %v2967_v32, %v2898_v7  ;;  %v8486_v58 = vmul.f32 %v8298_v12, %v1509_v36  ;;  %v2712_v60 = vmax.f32 %v2680_v44, 0.0  ;;  %v8492_v27 = vmul.f32 %v8244_v51, %v1509_v36 }
 0x1d5   : > { %v8489_v43 = vsel %vm1109_vm0, %v2975_v53, %v2914_v49  ;;  %v9989_v59 = vrot.slane %v8372_v4, 1  ;;  %v9990_v34 = vrot.slane %v8206_v47, 1  ;;  %v2749_v0 = vrot.slane %v2731_v20, 1 }
 0x1d6   : > { %v2999_v52 = vrot.slane %v8489_v43, 7  ;;  %v2006_v13 = vrot.slane %v8475_v3, 2  ;;  %v8502_v50 = vmul.f32 %v8268_v14, %v1509_v36  ;;  %v2714_v22 = vmax.f32 %v2682_v39, 0.0 }
 0x1d7   : > { %v1182_v2 = vsel %vm1109_vm0, %v9990_v34, %v9989_v59  ;;  %v9991_v61 = vrot.slane %v8376_v63, 2  ;;  %v9992_v11 = vrot.slane %v8217_v16, 2  ;;  %v1631_v47 = vmul.f32 %v8223_v8, %v8254_v54 }
 0x1d8   : > { %v1250_v30 = vadd.f32 %v1182_v2, %v8239_v31  ;;  %v8515_v48 = vsel %vm2927_vm2, 0.0, %v2999_v52  ;;  %v2330_v36 = vrot.slane %v8486_v58, 1  ;;  %v1876_v31 = vmul.f32 %v8231_v57, %v8254_v54 }
 0x1d9   : > { %v1428_v4 = vsel %vm1355_vm1, %v9992_v11, %v9991_v61  ;;  %v1877_v63 = vmul.f32 %v8231_v57, %v8247_v40  ;;  %v5984_v16 = vpack.i.bf16 %v8515_v48, %v8346_v26  ;;  %v1543_v55 = vmul.f32 %v8185_v10, %v8254_v54 }
 0x1da   : > { %v1496_v33 = vadd.f32 %v1428_v4, %v1250_v30  ;;  %v1755_v24 = vrot.slane %v1631_v47, 1  ;;  %v2575_v9 = vrot.slane %v8502_v50, 2  ;;  %v2000_v44 = vrot.slane %v1876_v31, 2 }
 0x1db   : > { %v2001_v41 = vrot.slane %v1877_v63, 2  ;;  %v1634_v62 = vmul.f32 %v8223_v8, %v1504_v21  ;;  %v8528_v7 = vmax.f32 %v2731_v20, %v2749_v0  ;;  %v8530_v35 = vmax.f32 %v2712_v60, %v2714_v22  ;;  %5985 = vrot.lane.b32.xlu1 %v5984_v16, %s6382_s28  ;;  %v2078_v22 = vpop.permute.xlu1 %2077 }
 0x1dc   : > { %v1575_v49 = vadd.f32 %v1543_v55, %v1496_v33  ;;  %v1879_v32 = vmul.f32 %v8231_v57, %v1504_v21  ;;  %v9993_v39 = vrot.slane %v8311_v29, 1  ;;  %v2117_v34 = vmul.f32 %v8244_v51, %v1504_v21 }
 0x1dd   : > { %v2002_v59 = vsel %vm1355_vm1, %v2000_v44, %v2001_v41  ;;  %v2205_v2 = vmul.f32 %v8298_v12, %v1504_v21  ;;  %v1760_v20 = vrot.slane %v1634_v62, 1  ;;  %v2450_v60 = vmul.f32 %v8268_v14, %v1504_v21 }
 0x1de   : > { %v1757_v53 = vsel %vm1109_vm0, %v1755_v24, %v9993_v39  ;;  %v1059_v0 = vmul.f32 %v8203_v23, %v8247_v40  ;;  %v2005_v61 = vrot.slane %v1879_v32, 2  ;;  %v1305_v29 = vmul.f32 %v8214_v37, %v8247_v40  ;;  %v1583_v39 = vpop.permute.xlu0 %1582 }
 0x1df   : > { %v1825_v30 = vadd.f32 %v1757_v53, %v1575_v49  ;;  %v2329_v11 = vrot.slane %v2205_v2, 1  ;;  %v1058_v4 = vmul.f32 %v8203_v23, %v8254_v54  ;;  %v2574_v31 = vrot.slane %v2450_v60, 2  ;;  %v2157_v60 = vpop.permute.xlu1 %2156 }
 0x1e0   : > { %v1186_v63 = vrot.slane %v1059_v0, 1  ;;  %v1304_v16 = vmul.f32 %v8214_v37, %v8254_v54  ;;  %v1545_v33 = vmul.f32 %v8185_v10, %v1504_v21  ;;  %v1432_v24 = vrot.slane %v1305_v29, 2 }
 0x1e1   : > { %v2070_v47 = vadd.f32 %v2002_v59, %v1825_v30  ;;  %v2331_v55 = vsel %vm1109_vm0, %v2329_v11, %v2330_v36  ;;  %v1185_v44 = vrot.slane %v1058_v4, 1  ;;  %v2781_v62 = vrot.slane %v8530_v35, 1 }
 0x1e2   : > { %v894_v23 = vmul.f32 %v8396_v56, %v8254_v54  ;;  %v1431_v32 = vrot.slane %v1304_v16, 2  ;;  %v2576_v37 = vsel %vm1355_vm1, %v2574_v31, %v2575_v9  ;;  %v1762_v53 = vsel %vm1109_vm0, %v1760_v20, %v1761_v18 }
 0x1e3   : > { %v2149_v49 = vadd.f32 %v2117_v34, %v2070_v47  ;;  %v1187_v21 = vsel %vm1109_vm0, %v1185_v44, %v1186_v63  ;;  %v2208_v59 = vmul.f32 %v8298_v12, %v2078_v22  ;;  %v2007_v54 = vsel %vm1355_vm1, %v2005_v61, %v2006_v13 }
 0x1e4   : > { %v1252_v30 = vadd.f32 %v1187_v21, %v894_v23  ;;  %v1544_v34 = vmul.f32 %v8185_v10, %v8247_v40  ;;  %v1433_v0 = vsel %vm1355_vm1, %v1431_v32, %v1432_v24  ;;  %v2119_v11 = vmul.f32 %v8244_v51, %v2078_v22 }
 0x1e5   : > { %v2399_v2 = vadd.f32 %v2331_v55, %v2149_v49  ;;  %v2453_v29 = vmul.f32 %v8268_v14, %v2078_v22  ;;  %v1636_v20 = vmul.f32 %v8223_v8, %v1583_v39  ;;  %v2334_v47 = vrot.slane %v2208_v59, 1 }
 0x1e6   : > { %v1498_v4 = vadd.f32 %v1433_v0, %v1252_v30  ;;  %v1576_v31 = vadd.f32 %v1544_v34, %v8463_v42  ;;  %v1881_v16 = vmul.f32 %v8231_v57, %v1583_v39  ;;  %v9994_v61 = vrot.slane %v8327_v46, 2  ;;  %v2083_v0 = vpop.permute.xlu0 %2082 }
 0x1e7   : > { %v2207_v10 = vmul.f32 %v8298_v12, %v1583_v39  ;;  %v2452_v44 = vmul.f32 %v8268_v14, %v1583_v39  ;;  %v2210_v49 = vmul.f32 %v8298_v12, %v2157_v60  ;;  %v2644_v23 = vadd.f32 %v2576_v37, %v2399_v2 }
 0x1e8   : > { %v2004_v55 = vsel %vm1355_vm1, %v2001_v41, %v9994_v61  ;;  %v1577_v22 = vadd.f32 %v1545_v33, %v1498_v4  ;;  %v1826_v8 = vadd.f32 %v8368_v28, %v1576_v31  ;;  %v2455_v32 = vmul.f32 %v8268_v14, %v2157_v60 }
 0x1e9   : > { %v1763_v21 = vrot.slane %v1636_v20, 1  ;;  %v2332_v42 = vrot.slane %v2207_v10, 1  ;;  %v2577_v59 = vrot.slane %v2452_v44, 2  ;;  %v895_v57 = vmul.f32 %v8396_v56, %v8247_v40 }
 0x1ea   : > { %v1827_v46 = vadd.f32 %v1762_v53, %v1577_v22  ;;  %v2071_v41 = vadd.f32 %v2004_v55, %v1826_v8  ;;  %v2008_v30 = vrot.slane %v1881_v16, 2  ;;  %v9995_v34 = vrot.slane %v8314_v45, 1 }
 0x1eb   : > { %v2579_v37 = vrot.slane %v2453_v29, 2  ;;  %v2337_v33 = vrot.slane %v2210_v49, 1  ;;  %v2582_v2 = vrot.slane %v2455_v32, 2  ;;  %v2333_v20 = vsel %vm1109_vm0, %v2330_v36, %v2332_v42 }
 0x1ec   : > { %v1189_v39 = vsel %vm1109_vm0, %v1186_v63, %v9995_v34  ;;  %v2072_v4 = vadd.f32 %v2007_v54, %v1827_v46  ;;  %v2150_v60 = vadd.f32 %v8492_v27, %v2071_v41  ;;  %v9996_v40 = vrot.slane %v8319_v25, 2 }
 0x1ed   : > { %v1253_v28 = vadd.f32 %v1189_v39, %v895_v57  ;;  %v2578_v45 = vsel %vm1355_vm1, %v2575_v9, %v2577_v59  ;;  %v2683_v53 = vadd.f32 %v8018_v1, %v2644_v23  ;;  %v2209_v29 = vmul.f32 %v8298_v12, %v2083_v0 }
 0x1ee   : > { %v1435_v56 = vsel %vm1355_vm1, %v1432_v24, %v9996_v40  ;;  %v2400_v54 = vadd.f32 %v2333_v20, %v2150_v60  ;;  %v1764_v58 = vsel %vm1109_vm0, %v1761_v18, %v1763_v21  ;;  %v2009_v25 = vsel %vm1355_vm1, %v2006_v13, %v2008_v30 }
 0x1ef   : > { %v1499_v63 = vadd.f32 %v1435_v56, %v1253_v28  ;;  %v2454_v27 = vmul.f32 %v8268_v14, %v2083_v0  ;;  %v2120_v36 = vmul.f32 %v8244_v51, %v2083_v0  ;;  %v2335_v9 = vrot.slane %v2209_v29, 1 }
 0x1f0   : > { %v2811_v24 = vrot.slane %v8083_v6, 1  ;;  %v2151_v31 = vadd.f32 %v2119_v11, %v2072_v4  ;;  %v2645_v12 = vadd.f32 %v2578_v45, %v2400_v54  ;;  %v2827_v15 = vrot.slane %v8083_v6, 2 }
 0x1f1   : > { %v1578_v50 = vadd.f32 %v8480_v19, %v1499_v63  ;;  %v2580_v16 = vrot.slane %v2454_v27, 2  ;;  %v2715_v18 = vmax.f32 %v2683_v53, 0.0  ;;  %v2336_v3 = vsel %vm1109_vm0, %v2334_v47, %v2335_v9  ;;  %v9998_v53 = vld [vmem:[#allocation22_spill] sm:$0xff] }
 0x1f2   : > { %v2843_v13 = vrot.slane %v8083_v6, 3  ;;  %v2684_v14 = vadd.f32 %v8018_v1, %v2645_v12  ;;  %v2338_v19 = vsel %vm1109_vm0, %v2335_v9, %v2337_v33  ;;  %v2401_v55 = vadd.f32 %v2336_v3, %v2151_v31 }
 0x1f3   : > { %v1828_v61 = vadd.f32 %v1764_v58, %v1578_v50  ;;  %v2867_v51 = vrot.slane %v8179_v5, 4  ;;  %v2581_v11 = vsel %vm1355_vm1, %v2579_v37, %v2580_v16  ;;  %v2883_v44 = vrot.slane %v8179_v5, 5  ;;  %v6189_v37 = vld [vmem:[%s9997_s21] sm:$0xff]  }
 0x1f4   : > { %v2932_v49 = vsel %vm2927_vm2, %v8083_v6, %v2811_v24  ;;  %v2583_v23 = vsel %vm1355_vm1, %v2580_v16, %v2582_v2  ;;  %v2646_v47 = vadd.f32 %v2581_v11, %v2401_v55  ;;  %v2812_v8 = vrot.slane %v8279_v38, 1  ;;  %3436 = vmatpush1.bf16.msra.mxu0 %v6189_v37  ;;  %v10001_v24 = vld [vmem:[#allocation27_spill] sm:$0xff] }
 0x1f5   : > { %v2073_v10 = vadd.f32 %v2009_v25, %v1828_v61  ;;  %v2941_v22 = vsel %vm2936_vm3, %v2932_v49, %v2827_v15  ;;  %v2899_v21 = vrot.slane %v8179_v5, 6  ;;  %v2828_v59 = vrot.slane %v8279_v38, 2  ;;  %v6190_v15 = vld [vmem:[%s9997_s21 + $0x8] sm:$0xff]  }
 0x1f6   : > { %v2950_v42 = vsel %vm2945_vm4, %v2941_v22, %v2843_v13  ;;  %v2716_v57 = vmax.f32 %v2684_v14, 0.0  ;;  %v2685_v46 = vadd.f32 %v8018_v1, %v2646_v47  ;;  %v2915_v41 = vrot.slane %v8179_v5, 7  ;;  %v10002_v61 = vld [vmem:[#allocation21_spill] sm:$0xff] }
 0x1f7   : > { %v2152_v32 = vadd.f32 %v2120_v36, %v2073_v10  ;;  %v2959_v6 = vsel %vm2954_vm5, %v2950_v42, %v2867_v51  ;;  %v2844_v39 = vrot.slane %v8279_v38, 3  ;;  %v2868_v0 = vrot.slane %v8332_v17, 4 }
 0x1f8   : > { %v2968_v34 = vsel %vm2963_vm6, %v2959_v6, %v2883_v44  ;;  %v2717_v33 = vmax.f32 %v2685_v46, 0.0  ;;  %v2884_v28 = vrot.slane %v8332_v17, 5  ;;  %v2933_v5 = vsel %vm2927_vm2, %v8279_v38, %v2812_v8  ;;  %v6191_v44 = vld [vmem:[%s9997_s21 + $0x10] sm:$0xff]  }
 0x1f9   : > { %v2402_v30 = vadd.f32 %v2338_v19, %v2152_v32  ;;  %v2976_v2 = vsel %vm1355_vm1, %v2968_v34, %v2899_v21  ;;  %v2900_v20 = vrot.slane %v8332_v17, 6  ;;  %v2942_v40 = vsel %vm2936_vm3, %v2933_v5, %v2828_v59  ;;  %v10003_v19 = vld [vmem:[#allocation29_spill] sm:$0xff] }
 0x1fa   : > { %v8640_v60 = vsel %vm1109_vm0, %v2976_v2, %v2915_v41  ;;  %v2733_v56 = vmax.f32 %v2715_v18, %v2717_v33  ;;  %v2951_v63 = vsel %vm2945_vm4, %v2942_v40, %v2844_v39  ;;  %v9999_v29 = vrot.slane %v9998_v53, 7 }
 0x1fb   : > { %v2647_v4 = vadd.f32 %v2583_v23, %v2402_v30  ;;  %v3000_v45 = vrot.slane %v8640_v60, 7  ;;  %v10000_v38 = vmov 0   ;;  %v2916_v25 = vrot.slane %v8332_v17, 7  ;;  %v10004_v30 = vld [vmem:[#allocation13_spill] sm:$0xff] }
 0x1fc   : > { %v8649_v54 = vsel %vm2927_vm2, %v9999_v29, 0.0  ;;  %3437 = vmatprep.subr.bf16.mxu0 %v10000_v38  ;;  %v2960_v27 = vsel %vm2954_vm5, %v2951_v63, %v2868_v0  ;;  %v2750_v50 = vrot.slane %v2733_v56, 1  ;;  %v3045_v31 = vrot.slane %v10001_v24, 1  ;;  %v6192_v0 = vld [vmem:[%s9997_s21 + $0x18] sm:$0xff]  }
 0x1fd   : > { %v2686_v58 = vadd.f32 %v8018_v1, %v2647_v4  ;;  %v8658_v36 = vsel %vm2927_vm2, 0.0, %v3000_v45  ;;  %v2969_v9 = vsel %vm2963_vm6, %v2960_v27, %v2884_v28  ;;  %v3046_v17 = vrot.slane %v8649_v54, 1  ;;  %3438 = vmatpush1.bf16.msra.mxu0 %v6190_v15 }
 0x1fe   : > { %v5989_v16 = vpack.i.bf16 %v8658_v36, %v8515_v48  ;;  %v2977_v1 = vsel %vm1355_vm1, %v2969_v9, %v2900_v20  ;;  %v3049_v18 = vrot.slane %v10002_v61, 1  ;;  %v2797_v3 = vmax.f32 %v8530_v35, %v2781_v62  ;;  %3439 = vmatprep.subr.bf16.mxu0 %v10000_v38 }
 0x1ff   : > { %v2718_v12 = vmax.f32 %v2686_v58, 0.0  ;;  %v2766_v13 = vmax.f32 %v2733_v56, %v2750_v50  ;;  %v8674_v14 = vsel %vm1109_vm0, %v2977_v1, %v2916_v25  ;;  %v3052_v55 = vrot.slane %v10003_v19, 1  ;;  %v6193_v25 = vld [vmem:[%s9997_s21 + $0x20] sm:$0xff]  }
 0x200   : > { %5990 = vrot.lane.b32.xlu0 %v5989_v16, %s9769_s26  ;;  %v3001_v10 = vrot.slane %v8674_v14, 7  ;;  %v2813_v11 = vrot.slane %v8528_v7, 1  ;;  %v6384_v35 = vmov 0.0   ;;  %v3068_v23 = vrot.slane %v10001_v24, 2 }
 0x201   : > { %v2734_v51 = vmax.f32 %v2716_v57, %v2718_v12  ;;  %v2814_v49 = vrot.slane %v2766_v13, 1  ;;  %v8684_v62 = vrot.slane %v6384_v35, 1  ;;  %v2829_v47 = vrot.slane %v8528_v7, 2  ;;  %3440 = vmatpush1.bf16.msra.mxu0 %v6191_v44 }
 0x202   : > { %v2830_v8 = vrot.slane %v2766_v13, 2  ;;  %v8692_v32 = vsel %vm2927_vm2, 0.0, %v3001_v10  ;;  %v8695_v21 = vsel %vm1109_vm0, %v3045_v31, %v3046_v17  ;;  %v2845_v59 = vrot.slane %v8528_v7, 3  ;;  %3441 = vmatprep.subr.bf16.mxu0 %v10000_v38  ;;  %v10005_v17 = vld [vmem:[#allocation31_spill] sm:$0xff] }
 0x203   : > { %v2782_v22 = vrot.slane %v2734_v51, 1  ;;  %v5994_v42 = vpack.i.bf16 %v8692_v32, %v8658_v36  ;;  %v2869_v57 = vrot.slane %v2797_v3, 4  ;;  %v2885_v46 = vrot.slane %v2797_v3, 5 }
 0x204   : > { %v2934_v6 = vsel %vm2927_vm2, %v8528_v7, %v2813_v11  ;;  %v3048_v34 = vrot.slane %v10004_v30, 1  ;;  %v3051_v39 = vrot.slane %v8346_v26, 1  ;;  %v6009_v37 = vpack.i.bf16 %v8695_v21, %v8684_v62 }
 0x205   : > { %v2798_v41 = vmax.f32 %v2734_v51, %v2782_v22  ;;  %5995 = vrot.lane.b32.xlu0 %v5994_v42, %s6382_s28  ;;  %v3069_v33 = vrot.slane %v8649_v54, 2  ;;  %v2943_v2 = vsel %vm2936_vm3, %v2934_v6, %v2829_v47  ;;  %v2935_v7 = vsel %vm2927_vm2, %v2766_v13, %v2814_v49  ;;  %3442 = vmatpush1.bf16.msra.mxu0 %v6192_v0  ;;  %v10006_v42 = vld [vmem:[#allocation33_spill] sm:$0xff] }
 0x206   : > { %v2952_v28 = vsel %vm2945_vm4, %v2943_v2, %v2845_v59  ;;  %v8716_v5 = vsel %vm1109_vm0, %v3048_v34, %v3049_v18  ;;  %v8719_v4 = vsel %vm1109_vm0, %v3051_v39, %v3052_v55  ;;  %v2901_v40 = vrot.slane %v2797_v3, 6  ;;  %3443 = vmatprep.subr.bf16.mxu0 %v10000_v38  ;;  %v6194_v55 = vld [vmem:[%s9997_s21 + $0x28] sm:$0xff]  }
 0x207   : > { %v2870_v20 = vrot.slane %v2798_v41, 4  ;;  %v2961_v56 = vsel %vm2954_vm5, %v2952_v28, %v2869_v57  ;;  %v8724_v63 = vpack.i.bf16 %v8719_v4, %v8716_v5  ;;  %v2846_v53 = vrot.slane %v2766_v13, 3 }
 0x208   : > { %v2917_v29 = vrot.slane %v2797_v3, 7  ;;  %v2970_v54 = vsel %vm2963_vm6, %v2961_v56, %v2885_v46  ;;  %v2944_v58 = vsel %vm2936_vm3, %v2935_v7, %v2830_v8  ;;  %v2886_v50 = vrot.slane %v2798_v41, 5 }
 0x209   : > { %6010 = vrot.lane.b32.xlu0 %v6009_v37, %s6385_s23  ;;  %v2978_v27 = vsel %vm1355_vm1, %v2970_v54, %v2901_v40  ;;  %v2953_v9 = vsel %vm2945_vm4, %v2944_v58, %v2846_v53  ;;  %v3070_v31 = vsel %vm1355_vm1, %v3068_v23, %v3069_v33  ;;  %v2902_v16 = vrot.slane %v2798_v41, 6  ;;  %3444 = vmatpush1.bf16.msra.mxu0 %v6193_v25  ;;  %v6197_v25 = vld [vmem:[%s9997_s21 + $0x40] sm:$0xff]  }
 0x20a   : > { %v2986_v12 = vsel %vm1109_vm0, %v2978_v27, %v2917_v29  ;;  %v2962_v1 = vsel %vm2954_vm5, %v2953_v9, %v2870_v20  ;;  %v6024_v15 = vpack.i.bf16 %v10005_v17, %v3070_v31  ;;  %v2918_v18 = vrot.slane %v2798_v41, 7  ;;  %3445 = vmatprep.subr.bf16.mxu0 %v10000_v38 }
 0x20b   : > { %v3002_v61 = vrot.slane %v2986_v12, 7  ;;  %v2971_v3 = vsel %vm2963_vm6, %v2962_v1, %v2886_v50  ;;  %v3023_v19 = vsel %vm2927_vm2, %v2999_v52, 0.0  ;;  %v3054_v52 = vrot.slane %v8515_v48, 1 }
 0x20c   : > { %v2979_v13 = vsel %vm1355_vm1, %v2971_v3, %v2902_v16  ;;  %v3055_v49 = vrot.slane %v3023_v19, 1  ;;  %v3024_v47 = vsel %vm2927_vm2, %v3000_v45, 0.0  ;;  %v6039_v59 = vpack.i.bf16 %v10006_v42, %v10005_v17  ;;  %v6195_v45 = vld [vmem:[%s9997_s21 + $0x30] sm:$0xff]  }
 0x20d   : > { %6025 = vrot.lane.b32.xlu0 %v6024_v15, %s9773_s0  ;;  %v8749_v51 = vsel %vm2927_vm2, 0.0, %v3002_v61  ;;  %v2987_v11 = vsel %vm1109_vm0, %v2979_v13, %v2918_v18  ;;  %v3026_v22 = vsel %vm2927_vm2, %v3002_v61, 0.0  ;;  %3446 = vmatpush1.bf16.msra.mxu0 %v6194_v55  ;;  %v8772_v57 = vrot.slane %v6384_v35, 2  ;;  %s10009_s0 = smov 96  }
 0x20e   : > { %v5999_v43 = vpack.i.bf16 %v8749_v51, %v8692_v32  ;;  %v3003_v44 = vrot.slane %v2987_v11, 7  ;;  %3447 = vmatprep.subr.bf16.mxu0 %v10000_v38  ;;  %v3025_v60 = vsel %vm2927_vm2, %v3001_v10, 0.0  ;;  %v3080_v46 = vrot.slane %v8658_v36, 2  ;;  %v6196_v10 = vld [vmem:[%s9997_s21 + $0x38] sm:$0xff]  }
 0x20f   : > { %v3081_v41 = vrot.slane %v3024_v47, 2  ;;  %v3086_v6 = vrot.slane %v8749_v51, 2  ;;  %v3087_v34 = vrot.slane %v3026_v22, 2  ;;  %v3056_v39 = vsel %vm1109_vm0, %v3054_v52, %v3055_v49 }
 0x210   : > { %6000 = vrot.lane.b32.xlu1 %v5999_v43, %s9769_s26  ;;  %v8758_v23 = vsel %vm2927_vm2, 0.0, %v3003_v44  ;;  %v3057_v0 = vrot.slane %v8658_v36, 1  ;;  %v3058_v37 = vrot.slane %v3024_v47, 1  ;;  %v3083_v14 = vrot.slane %v8692_v32, 2  ;;  %s9777_s26 = smov 32  }
 0x211   : > { %6030 = vrot.lane.b32.xlu0 %v8724_v63, %s9771_s29  ;;  %v6004_v8 = vpack.i.bf16 %v8758_v23, %v8749_v51  ;;  %3448 = vmatpush1.bf16.msra.mxu0 %v6195_v45  ;;  %v3084_v33 = vrot.slane %v3025_v60, 2  ;;  %v3077_v2 = vrot.slane %v8515_v48, 2  ;;  %v3078_v7 = vrot.slane %v3023_v19, 2  ;;  %s9775_s29 = smov 64  }
 0x212   : > { %v3027_v28 = vsel %vm2927_vm2, %v3003_v44, 0.0  ;;  %3449 = vmatprep.subr.bf16.mxu0 %v10000_v38  ;;  %v6014_v20 = vpack.i.bf16 %v3070_v31, %v8772_v57  ;;  %v6044_v40 = vpack.i.bf16 %v3056_v39, %v8719_v4  ;;  %v8796_v56 = vsel %vm1355_vm1, %v3080_v46, %v3081_v41 }
 0x213   : > { %v8799_v53 = vsel %vm1355_vm1, %v3086_v6, %v3087_v34  ;;  %v3094_v29 = vrot.slane %v8758_v23, 2  ;;  %v3059_v54 = vsel %vm1109_vm0, %v3057_v0, %v3058_v37  ;;  %v3095_v58 = vrot.slane %v3027_v28, 2 }
 0x214   : > { %6005 = vrot.lane.b32.xlu1 %v6004_v8, %s6382_s28  ;;  %v8809_v4 = vsel %vm1355_vm1, %v3083_v14, %v3084_v33  ;;  %v8812_v27 = vsel %vm1355_vm1, %v3077_v2, %v3078_v7  ;;  %v6019_v50 = vpack.i.bf16 %v8716_v5, %v8695_v21  ;;  %v6059_v16 = vpack.i.bf16 %v3059_v54, %v3056_v39  ;;  %s10008_s28 = smov 112   ;;  %v5976_v8 = vpop.permute.xlu0 %5975 }
 0x215   : > { %6040 = vrot.lane.b32.xlu0 %v6039_v59, %s9777_s26  ;;  %3450 = vmatpush1.bf16.msra.mxu0 %v6196_v10  ;;  %v8818_v9 = vsel %vm1355_vm1, %v3094_v29, %v3095_v58  ;;  %v3339_v31 = vpack.c.bf16 %v8796_v56, %v8812_v27  ;;  %v3341_v12 = vpack.c.bf16 %v8799_v53, %v8809_v4  ;;  %v3064_v17 = vrot.slane %v3026_v22, 1 }
 0x216   : > { %3451 = vmatprep.subr.bf16.mxu0 %v10000_v38  ;;  %v3343_v1 = vpack.c.bf16 %v8772_v57, %v8818_v9  ;;  %v3063_v38 = vrot.slane %v8749_v51, 1  ;;  %v3060_v21 = vrot.slane %v8692_v32, 1  ;;  %v3061_v5 = vrot.slane %v3025_v60, 1 }
 0x217   : > { %v6074_v15 = vpack.i.bf16 %v8809_v4, %v8796_v56  ;;  %v6049_v3 = vpack.i.bf16 %v8812_v27, %v10006_v42  ;;  %v3091_v19 = vrot.slane %v8758_v23, 1  ;;  %v3092_v55 = vrot.slane %v3027_v28, 1 }
 0x218   : > { %6015 = vrot.lane.b32.xlu1 %v6014_v20, %s9777_s26  ;;  %v3065_v61 = vsel %vm1109_vm0, %v3063_v38, %v3064_v17  ;;  %v3062_v18 = vsel %vm1109_vm0, %v3060_v21, %v3061_v5  ;;  %v6064_v43 = vpack.i.bf16 %v8796_v56, %v8812_v27  ;;  %v6099_v49 = vpack.i.bf16 %v6384_v35, %v8758_v23 }
 0x219   : > { %6045 = vrot.lane.b32.xlu0 %v6044_v40, %s9775_s29  ;;  %3452 = vmatpush1.bf16.msra.mxu0 %v6197_v25  ;;  %v6079_v13 = vpack.i.bf16 %v3065_v61, %v3062_v18  ;;  %v3093_v11 = vsel %vm1109_vm0, %v3091_v19, %v3092_v55  ;;  %v6069_v52 = vpack.i.bf16 %v3062_v18, %v3059_v54  ;;  %v5978_v28 = vunpack.i.h.bf16 %v5976_v8 }
 0x21a   : > { %v6094_v44 = vpack.i.bf16 %v3093_v11, %v3065_v61  ;;  %v6104_v47 = vpack.i.bf16 %v8818_v9, %v8799_v53  ;;  %v6109_v22 = vpack.i.bf16 %v8684_v62, %v3093_v11  ;;  %v5977_v29 = vunpack.i.l.bf16 %v5976_v8  ;;  %v6198_v9 = vld [vmem:[%s10010_s5 + $0x40] sm:$0xff]  }
 0x21b   : > { %5674 = vmatprep.subr.bf16.mxu1 %v6198_v9  ;;  %vm3613_vm0 = vcmask 1045508  }
 0x21c   : > { %6020 = vrot.lane.b32.xlu1 %v6019_v50, %s9775_s29  ;;  %vm9032_vm1 = vmor %vm2936_vm3, %vm3613_vm0  ;;  %vm4910_vm0 = vcmask 48128  }
 0x21d   : > { %6060 = vrot.lane.b32.xlu0 %v6059_v16, %s6385_s23 }
 0x220   : > { %6035 = vrot.lane.b32.xlu1 %v8724_v63, %s6385_s23  ;;  %v6089_v63 = vpack.i.bf16 %v8799_v53, %v8809_v4 }
 0x221   : > { %6075 = vrot.lane.b32.xlu0 %v6074_v15, %s10007_s27 }
 0x224   : > { %6050 = vrot.lane.b32.xlu1 %v6049_v3, %s10007_s27 }
 0x225   : > { %6080 = vrot.lane.b32.xlu0 %v6079_v13, %s10008_s28 }
 0x228   : > { %6055 = vrot.lane.b32.xlu1 %v6059_v16, %s10008_s28 }
 0x229   : > { %6090 = vrot.lane.b32.xlu0 %v6089_v63, %s9777_s26 }
 0x22c   : > { %6065 = vrot.lane.b32.xlu1 %v6064_v43, %s9777_s26  ;;  %s6323_s26 = scalar_lea.vmem %s6322_s3, 32 }
 0x22d   : > { %6095 = vrot.lane.b32.xlu0 %v6094_v44, %s9775_s29 }
 0x230   : > { %6070 = vrot.lane.b32.xlu1 %v6069_v52, %s9775_s29  ;;  %s643_s29 = scalar_lea.vmem %s9705_s20, %s6549_s30 }
 0x231   : > { %6100 = vrot.lane.b32.xlu0 %v6099_v49, %s10009_s0  ;;  %v5981_v23 = vpop.permute.xlu1 %5980 }
 0x232   : > { %v5983_v58 = vunpack.i.h.bf16 %v5981_v23  ;;  %v5982_v5 = vunpack.i.l.bf16 %v5981_v23 }
 0x234   : > { %6085 = vrot.lane.b32.xlu1 %v6079_v13, %s6385_s23 }
 0x238   : > { %6105 = vrot.lane.b32.xlu1 %v6104_v47, %s10007_s27  ;;  %s10016_s27 = smov 32  }
 0x23c   : > { %6110 = vrot.lane.b32.xlu1 %v6109_v22, %s10008_s28 }
 0x24d   : > { %v8865_v45 = vpop.permute.xlu1 %5985 }
 0x24e   : > { %v5988_v15 = vunpack.i.h.bf16 %v8865_v45 }
 0x272   : > { %v8861_v42 = vpop.permute.xlu0 %5990 }
 0x277   : > { %v8863_v59 = vpop.permute.xlu0 %5995 }
 0x27b   : > { %v6011_v60 = vpop.permute.xlu0 %6010 }
 0x27c   : > { %v6013_v0 = vunpack.i.h.bf16 %v6011_v60  ;;  %v6012_v62 = vunpack.i.l.bf16 %v6011_v60  ;;  %v5987_v60 = vunpack.i.l.bf16 %v8865_v45 }
 0x27e   : > { %v3275_v2 = vsel %vm3273_vm7, %v10001_v24, %v6013_v0  ;;  %v3274_v7 = vsel %vm3273_vm7, 0.0, %v6012_v62 }
 0x27f   : > { %v6026_v46 = vpop.permute.xlu0 %6025 }
 0x280   : > { %v6028_v24 = vunpack.i.h.bf16 %v6026_v46  ;;  %v6027_v38 = vunpack.i.l.bf16 %v6026_v46 }
 0x282   : > { %v8867_v41 = vpop.permute.xlu1 %6000 }
 0x283   : > { %v6031_v6 = vpop.permute.xlu0 %6030  ;;  %v6002_v53 = vunpack.i.l.bf16 %v8867_v41 }
 0x284   : > { %v6033_v3 = vunpack.i.h.bf16 %v6031_v6  ;;  %v6032_v13 = vunpack.i.l.bf16 %v6031_v6 }
 0x286   : > { %v8869_v34 = vpop.permute.xlu1 %6005 }
 0x287   : > { %v6041_v39 = vpop.permute.xlu0 %6040  ;;  %v6008_v4 = vunpack.i.h.bf16 %v8869_v34 }
 0x288   : > { %v6043_v47 = vunpack.i.h.bf16 %v6041_v39  ;;  %v6042_v22 = vunpack.i.l.bf16 %v6041_v39 }
 0x28a   : > { %v6016_v37 = vpop.permute.xlu1 %6015 }
 0x28b   : > { %v6046_v14 = vpop.permute.xlu0 %6045  ;;  %v6018_v10 = vunpack.i.h.bf16 %v6016_v37  ;;  %v6017_v33 = vunpack.i.l.bf16 %v6016_v37 }
 0x28c   : > { %v6048_v62 = vunpack.i.h.bf16 %v6046_v14  ;;  %v6047_v37 = vunpack.i.l.bf16 %v6046_v14 }
 0x28d   : > { %v3283_v20 = vsel %vm3282_vm8, %v3274_v7, %v6017_v33  ;;  %v3284_v40 = vsel %vm3282_vm8, %v3275_v2, %v6018_v10 }
 0x28e   : > { %v6021_v54 = vpop.permute.xlu1 %6020  ;;  %v3292_v17 = vsel %vm3291_vm9, %v3283_v20, %v5977_v29  ;;  %v3293_v21 = vsel %vm3291_vm9, %v3284_v40, %v5978_v28  ;;  %v5993_v29 = vunpack.i.h.bf16 %v8861_v42 }
 0x28f   : > { %v8876_v25 = vpop.permute.xlu0 %6060  ;;  %v6023_v50 = vunpack.i.h.bf16 %v6021_v54  ;;  %v6022_v16 = vunpack.i.l.bf16 %v6021_v54  ;;  %v5992_v54 = vunpack.i.l.bf16 %v8861_v42 }
 0x291   : > { %v3301_v61 = vsel %vm3300_vm10, %v3292_v17, %v6022_v16  ;;  %v3302_v18 = vsel %vm3300_vm10, %v3293_v21, %v6023_v50 }
 0x292   : > { %v3310_v19 = vsel %vm3309_vm11, %v3301_v61, %v6027_v38  ;;  %v3311_v55 = vsel %vm3309_vm11, %v3302_v18, %v6028_v24  ;;  %v6036_v63 = vpop.permute.xlu1 %6035  ;;  %v6063_v24 = vunpack.i.h.bf16 %v8876_v25  ;;  %v6062_v38 = vunpack.i.l.bf16 %v8876_v25 }
 0x293   : > { %v8885_v11 = vpop.permute.xlu0 %6075  ;;  %v6038_v43 = vunpack.i.h.bf16 %v6036_v63  ;;  %v6037_v44 = vunpack.i.l.bf16 %v6036_v63  ;;  %v3319_v52 = vsel %vm3318_vm12, %v3310_v19, %v5982_v5  ;;  %v3320_v49 = vsel %vm3318_vm12, %v3311_v55, %v5983_v58 }
 0x294   : > { %v3328_v8 = vsel %vm3327_vm13, %v3319_v52, %v6032_v13  ;;  %v3329_v23 = vsel %vm3327_vm13, %v3320_v49, %v6033_v3  ;;  %v3279_v18 = vsel %vm3273_vm7, %v8658_v36, %v6063_v24  ;;  %v3278_v3 = vsel %vm3273_vm7, %v8515_v48, %v6062_v38 }
 0x295   : > { %v3277_v46 = vsel %vm3273_vm7, %v8346_v26, %v6038_v43  ;;  %v3276_v6 = vsel %vm3273_vm7, %v10004_v30, %v6037_v44  ;;  %v3336_v0 = vpack.c.bf16 %v3329_v23, %v3328_v8  ;;  %v5998_v19 = vunpack.i.h.bf16 %v8863_v59 }
 0x296   : > { %v3285_v10 = vsel %vm3282_vm8, %v3276_v6, %v6042_v22  ;;  %v3286_v33 = vsel %vm3282_vm8, %v3277_v46, %v6043_v47  ;;  %v6051_v39 = vpop.permute.xlu1 %6050  ;;  %v5997_v55 = vunpack.i.l.bf16 %v8863_v59  ;;  %v6003_v36 = vunpack.i.h.bf16 %v8867_v41 }
 0x297   : > { %v6053_v2 = vunpack.i.h.bf16 %v6051_v39  ;;  %v6052_v7 = vunpack.i.l.bf16 %v6051_v39  ;;  %v3294_v28 = vsel %vm3291_vm9, %v3285_v10, %v5987_v60  ;;  %v3295_v45 = vsel %vm3291_vm9, %v3286_v33, %v5988_v15  ;;  %3468 = vmatmul.mubr.bf16.vlgmr.msra.gmra.mrb[0].mxu0 %v3336_v0  ;;  %v6081_v30 = vpop.permute.xlu0 %6080 }
 0x298   : > { %v3303_v26 = vsel %vm3300_vm10, %v3294_v28, %v6047_v37  ;;  %v3304_v20 = vsel %vm3300_vm10, %v3295_v45, %v6048_v62  ;;  %5541 = vmatprep.mubr.msk.bf16.mxu0 %vm3273_vm7, %v3339_v31  ;;  %v6078_v48 = vunpack.i.h.bf16 %v8885_v11  ;;  %v6077_v52 = vunpack.i.l.bf16 %v8885_v11 }
 0x299   : > { %v3312_v14 = vsel %vm3309_vm11, %v3303_v26, %v6052_v7  ;;  %v3313_v40 = vsel %vm3309_vm11, %v3304_v20, %v6053_v2  ;;  %v6083_v8 = vunpack.i.h.bf16 %v6081_v30  ;;  %v6082_v23 = vunpack.i.l.bf16 %v6081_v30 }
 0x29a   : > { %v6056_v58 = vpop.permute.xlu1 %6055  ;;  %v3321_v56 = vsel %vm3318_vm12, %v3312_v14, %v5992_v54  ;;  %v3322_v27 = vsel %vm3318_vm12, %v3313_v40, %v5993_v29  ;;  %v6007_v2 = vunpack.i.l.bf16 %v8869_v34 }
 0x29b   : > { %v6058_v50 = vunpack.i.h.bf16 %v6056_v58  ;;  %v6057_v16 = vunpack.i.l.bf16 %v6056_v58  ;;  %v6091_v15 = vpop.permute.xlu0 %6090 }
 0x29c   : > { %v6093_v37 = vunpack.i.h.bf16 %v6091_v15  ;;  %v6092_v10 = vunpack.i.l.bf16 %v6091_v15 }
 0x29d   : > { %v3330_v31 = vsel %vm3327_vm13, %v3321_v56, %v6057_v16  ;;  %v3331_v17 = vsel %vm3327_vm13, %v3322_v27, %v6058_v50 }
 0x29e   : > { %v6066_v21 = vpop.permute.xlu1 %6065  ;;  %v3338_v5 = vpack.c.bf16 %v3331_v17, %v3330_v31 }
 0x29f   : > { %v6068_v61 = vunpack.i.h.bf16 %v6066_v21  ;;  %v6067_v42 = vunpack.i.l.bf16 %v6066_v21 }
 0x2a0   : > { %3476 = vmatmul.mubr.bf16.gmra.mrb[4].mxu0 %v3338_v5 }
 0x2a1   : > { %v3287_v25 = vsel %vm3282_vm8, %v3278_v3, %v6067_v42  ;;  %v3288_v13 = vsel %vm3282_vm8, %v3279_v18, %v6068_v61  ;;  %5542 = vmatprep.mubr.msk.bf16.mxu0 %vm3273_vm7, %v3341_v12  ;;  %v6096_v12 = vpop.permute.xlu0 %6095  ;;  %v6200_v42 = vld [vmem:[%s10010_s5 + $0x48] sm:$0xff]   ;;  %v6202_v3 = vld [vmem:[%s10010_s5 + $0x50] sm:$0xff]  }
 0x2a2   : > { %v6071_v63 = vpop.permute.xlu1 %6070  ;;  %v3296_v49 = vsel %vm3291_vm9, %v3287_v25, %v5997_v55  ;;  %v3297_v47 = vsel %vm3291_vm9, %v3288_v13, %v5998_v19  ;;  %v6098_v26 = vunpack.i.h.bf16 %v6096_v12  ;;  %v6097_v20 = vunpack.i.l.bf16 %v6096_v12  ;;  %v6201_v18 = vld [vmem:[%s10010_s5 + $0x8] sm:$0xff]   ;;  %v6203_v25 = vld [vmem:[%s10010_s5 + $0x10] sm:$0xff]   ;;  %v6204_v13 = vld [vmem:[%s10010_s5 + $0x58] sm:$0xff]  }
 0x2a3   : > { %v6073_v43 = vunpack.i.h.bf16 %v6071_v63  ;;  %v6072_v44 = vunpack.i.l.bf16 %v6071_v63  ;;  %v6205_v19 = vld [vmem:[%s10010_s5 + $0x18] sm:$0xff]   ;;  %v8991_v55 = vld [vmem:[%s10011_s24] ss:$0 sm:$0xff] }
 0x2a5   : > { %v3305_v59 = vsel %vm3300_vm10, %v3296_v49, %v6072_v44  ;;  %v3306_v22 = vsel %vm3300_vm10, %v3297_v47, %v6073_v43  ;;  %v6101_v29 = vpop.permute.xlu0 %6100 }
 0x2a6   : > { %v3314_v60 = vsel %vm3309_vm11, %v3305_v59, %v6077_v52  ;;  %v3315_v46 = vsel %vm3309_vm11, %v3306_v22, %v6078_v48  ;;  %v6086_v11 = vpop.permute.xlu1 %6085  ;;  %v6103_v38 = vunpack.i.h.bf16 %v6101_v29  ;;  %v6102_v56 = vunpack.i.l.bf16 %v6101_v29 }
 0x2a7   : > { %v6088_v6 = vunpack.i.h.bf16 %v6086_v11  ;;  %v6087_v0 = vunpack.i.l.bf16 %v6086_v11  ;;  %v3323_v62 = vsel %vm3318_vm12, %v3314_v60, %v6002_v53  ;;  %v3324_v41 = vsel %vm3318_vm12, %v3315_v46, %v6003_v36 }
 0x2a8   : > { %v3332_v33 = vsel %vm3327_vm13, %v3323_v62, %v6082_v23  ;;  %v3333_v39 = vsel %vm3327_vm13, %v3324_v41, %v6083_v8 }
 0x2a9   : > { %v3281_v7 = vsel %vm3273_vm7, %v8749_v51, %v6088_v6  ;;  %v3280_v28 = vsel %vm3273_vm7, %v8692_v32, %v6087_v0  ;;  %v3340_v45 = vpack.c.bf16 %v3333_v39, %v3332_v33 }
 0x2aa   : > { %v3289_v30 = vsel %vm3282_vm8, %v3280_v28, %v6092_v10  ;;  %v3290_v14 = vsel %vm3282_vm8, %v3281_v7, %v6093_v37  ;;  %v6106_v40 = vpop.permute.xlu1 %6105 }
 0x2ab   : > { %v6108_v54 = vunpack.i.h.bf16 %v6106_v40  ;;  %v6107_v58 = vunpack.i.l.bf16 %v6106_v40  ;;  %v3298_v50 = vsel %vm3291_vm9, %v3289_v30, %v6007_v2  ;;  %v3299_v34 = vsel %vm3291_vm9, %v3290_v14, %v6008_v4  ;;  %3484 = vmatmul.mubr.bf16.gmra.mrb[8].mxu0 %v3340_v45 }
 0x2ac   : > { %v3307_v51 = vsel %vm3300_vm10, %v3298_v50, %v6097_v20  ;;  %v3308_v32 = vsel %vm3300_vm10, %v3299_v34, %v6098_v26  ;;  %5543 = vmatprep.mubr.msk.bf16.mxu0 %vm3273_vm7, %v3343_v1  ;;  %v6199_v1 = vld [vmem:[%s10010_s5] sm:$0xff]   ;;  %vm4900_vm7 = vcmask 7168   ;;  %vm4902_vm9 = vcmask 15360  }
 0x2ad   : > { %v3316_v16 = vsel %vm3309_vm11, %v3307_v51, %v6107_v58  ;;  %v3317_v24 = vsel %vm3309_vm11, %v3308_v32, %v6108_v54  ;;  %5675 = vmatpush3.bf16.msra.mxu1 %v6199_v1  ;;  %vm4904_vm11 = vcmask 23552  }
 0x2ae   : > { %v6111_v27 = vpop.permute.xlu1 %6110  ;;  %v3325_v21 = vsel %vm3318_vm12, %v3316_v16, %v6102_v56  ;;  %v3326_v5 = vsel %vm3318_vm12, %v3317_v24, %v6103_v38  ;;  %5676 = vmatprep.subr.bf16.mxu1 %v6200_v42 }
 0x2af   : > { %v6113_v31 = vunpack.i.h.bf16 %v6111_v27  ;;  %v6112_v17 = vunpack.i.l.bf16 %v6111_v27 }
 0x2b1   : > { %v3334_v15 = vsel %vm3327_vm13, %v3325_v21, %v6112_v17  ;;  %v3335_v61 = vsel %vm3327_vm13, %v3326_v5, %v6113_v31  ;;  %5677 = vmatpush3.bf16.msra.mxu1 %v6201_v18  ;;  %vm4906_vm13 = vcmask 31744  }
 0x2b2   : > { %v3342_v57 = vpack.c.bf16 %v3335_v61, %v3334_v15  ;;  %5678 = vmatprep.subr.bf16.mxu1 %v6202_v3 }
 0x2b4   : > { %3492 = vmatmul.mubr.bf16.gmra.mrb[12].mxu0 %v3342_v57 }
 0x2b5   : > { %5679 = vmatpush3.bf16.msra.mxu1 %v6203_v25  ;;  %v3591_v25 = vcombine.high %v6384_v35, %v6384_v35 }
 0x2b6   : > { %5680 = vmatprep.subr.bf16.mxu1 %v6204_v13 }
 0x2b9   : > { %5681 = vmatpush3.bf16.msra.mxu1 %v6205_v19 }
 0x36a   : > { %v3469_v63 = vpop.f32.mrb[0].mxu0 }
 0x36b   : > { %v3470_v36 = vadd.f32 %v8991_v55, %v3469_v63  ;;  %v3471_v43 = vpop.f32.mrb[1].mxu0 }
 0x36c   : > { %v3472_v44 = vpop.f32.mrb[2].mxu0 }
 0x36d   : > { %v3473_v48 = vadd.f32 %v8991_v55, %v3472_v44  ;;  %v3474_v52 = vpop.f32.mrb[3].mxu0  ;;  %v3500_v49 = vmax.f32 %v3470_v36, 0.0 }
 0x36f   : > { %v3501_v47 = vmax.f32 %v3473_v48, 0.0 }
 0x371   : > { %v3508_v53 = vmax.f32 %v3500_v49, %v3501_v47 }
 0x373   : > { %v3516_v4 = vrot.slane %v3508_v53, 1  ;;  %v3477_v12 = vpop.f32.mrb[4].mxu0 }
 0x374   : > { %v3478_v59 = vadd.f32 %v8991_v55, %v3477_v12  ;;  %v3479_v22 = vpop.f32.mrb[5].mxu0 }
 0x375   : > { %v3524_v8 = vmax.f32 %v3508_v53, %v3516_v4  ;;  %v3480_v23 = vpop.f32.mrb[6].mxu0 }
 0x376   : > { %v3481_v60 = vadd.f32 %v8991_v55, %v3480_v23  ;;  %v3482_v46 = vpop.f32.mrb[7].mxu0  ;;  %v3502_v0 = vmax.f32 %v3478_v59, 0.0 }
 0x377   : > { %v3532_v11 = vrot.slane %v3524_v8, 1  ;;  %v3540_v6 = vrot.slane %v3524_v8, 2  ;;  %v3548_v41 = vrot.slane %v3524_v8, 3 }
 0x378   : > { %v3503_v62 = vmax.f32 %v3481_v60, 0.0 }
 0x379   : > { %v3556_v37 = vsel %vm2927_vm2, %v3524_v8, %v3532_v11 }
 0x37a   : > { %v3560_v10 = vsel %vm2936_vm3, %v3556_v37, %v3540_v6  ;;  %v3509_v33 = vmax.f32 %v3502_v0, %v3503_v62 }
 0x37b   : > { %v3564_v39 = vsel %vm2945_vm4, %v3560_v10, %v3548_v41 }
 0x37c   : > { %v3572_v2 = vrot.slane %v3564_v39, 7  ;;  %v3517_v7 = vrot.slane %v3509_v33, 1  ;;  %v5544_v39 = vrot.slane %v6384_v35, 9 }
 0x37e   : > { %v3525_v28 = vmax.f32 %v3509_v33, %v3517_v7  ;;  %v3485_v45 = vpop.f32.mrb[8].mxu0  ;;  %v3580_v26 = vsel %vm2927_vm2, 0.0, %v3572_v2  ;;  %v3599_v2 = vrot.slane %v3591_v25, 5  ;;  %v5548_v7 = vrot.slane %v6384_v35, 10 }
 0x37f   : > { %v3486_v20 = vadd.f32 %v8991_v55, %v3485_v45  ;;  %v3487_v30 = vpop.f32.mrb[9].mxu0  ;;  %v9003_v14 = vsel %vm2963_vm6, %v3580_v26, 0.0 }
 0x380   : > { %v3533_v40 = vrot.slane %v3525_v28, 1  ;;  %v3541_v29 = vrot.slane %v3525_v28, 2  ;;  %v3488_v54 = vpop.f32.mrb[10].mxu0  ;;  %v3549_v34 = vrot.slane %v3525_v28, 3  ;;  %v3592_v32 = vcombine.high %v9003_v14, %v9003_v14  ;;  %v6207_v30 = vld [vmem:[%s10010_s5 + $0x20] sm:$0xff]  }
 0x381   : > { %v3489_v58 = vadd.f32 %v8991_v55, %v3488_v54  ;;  %v3490_v50 = vpop.f32.mrb[11].mxu0  ;;  %v3504_v24 = vmax.f32 %v3486_v20, 0.0  ;;  %v5545_v42 = vrot.slane %v9003_v14, 9  ;;  %v5549_v48 = vrot.slane %v9003_v14, 10  ;;  %v6206_v20 = vld [vmem:[%s10010_s5 + $0x60] sm:$0xff]  }
 0x382   : > { %v3557_v51 = vsel %vm2927_vm2, %v3525_v28, %v3533_v40  ;;  %v3603_v17 = vrot.slane %v3592_v32, 5  ;;  %v3621_v19 = vrot.slane %v3592_v32, 6  ;;  %v3617_v28 = vrot.slane %v3591_v25, 6  ;;  %5682 = vmatprep.subr.bf16.mxu1 %v6206_v20 }
 0x383   : > { %v3561_v16 = vsel %vm2936_vm3, %v3557_v51, %v3541_v29  ;;  %v3505_v38 = vmax.f32 %v3489_v58, 0.0  ;;  %v9072_v50 = vsel %vm9013_vm15, %v5544_v39, %v3599_v2  ;;  %5683 = vmatpush3.bf16.msra.mxu1 %v6207_v30 }
 0x384   : > { %v3565_v56 = vsel %vm2945_vm4, %v3561_v16, %v3549_v34  ;;  %v9029_v43 = vsel %vm9013_vm15, %v5545_v42, %v3603_v17  ;;  %v9048_v46 = vsel %vm9032_vm1, %v5549_v48, %v3621_v19  ;;  %v9079_v16 = vsel %vm9032_vm1, %v5548_v7, %v3617_v28  ;;  %v6209_v17 = vld [vmem:[%s10010_s5 + $0x28] sm:$0xff]   ;;  %v6211_v19 = vld [vmem:[%s10010_s5 + $0x30] sm:$0xff]  }
 0x385   : > { %v3573_v27 = vrot.slane %v3565_v56, 7  ;;  %v3510_v31 = vmax.f32 %v3504_v24, %v3505_v38 }
 0x387   : > { %v3518_v21 = vrot.slane %v3510_v31, 1  ;;  %v3493_v5 = vpop.f32.mrb[12].mxu0  ;;  %v3581_v15 = vsel %vm2927_vm2, 0.0, %v3573_v27 }
 0x388   : > { %v3494_v57 = vadd.f32 %v8991_v55, %v3493_v5  ;;  %v3495_v9 = vpop.f32.mrb[13].mxu0  ;;  %v9019_v1 = vsel %vm2963_vm6, %v3581_v15, 0.0  ;;  %v3645_v15 = vcombine.low %v9072_v50, %v9029_v43 }
 0x389   : > { %v3526_v18 = vmax.f32 %v3510_v31, %v3518_v21  ;;  %v3496_v3 = vpop.f32.mrb[14].mxu0  ;;  %v3593_v13 = vcombine.high %v9019_v1, %v9019_v1  ;;  %v3661_v52 = vcombine.low %v9003_v14, %v9019_v1  ;;  %v5546_v53 = vrot.slane %v9019_v1, 9  ;;  %v6208_v31 = vld [vmem:[%s10010_s5 + $0x68] sm:$0xff]  }
 0x38a   : > { %v3497_v63 = vadd.f32 %v8991_v55, %v3496_v3  ;;  %v3498_v36 = vpop.f32.mrb[15].mxu0  ;;  %v3506_v4 = vmax.f32 %v3494_v57, 0.0  ;;  %v5550_v59 = vrot.slane %v9019_v1, 10  ;;  %5684 = vmatprep.subr.bf16.mxu1 %v6208_v31  ;;  %v3653_v3 = vcombine.low %v9079_v16, %v9048_v46 }
 0x38b   : > { %v3534_v49 = vrot.slane %v3526_v18, 1  ;;  %v3542_v47 = vrot.slane %v3526_v18, 2  ;;  %v3607_v55 = vrot.slane %v3593_v13, 5  ;;  %v3625_v22 = vrot.slane %v3593_v13, 6  ;;  %5685 = vmatpush3.bf16.msra.mxu1 %v6209_v17  ;;  %v6210_v13 = vld [vmem:[%s10010_s5 + $0x70] sm:$0xff]  }
 0x38c   : > { %v3507_v12 = vmax.f32 %v3497_v63, 0.0  ;;  %v3550_v8 = vrot.slane %v3526_v18, 3  ;;  %5686 = vmatprep.subr.bf16.mxu1 %v6210_v13 }
 0x38d   : > { %v3558_v23 = vsel %vm2927_vm2, %v3526_v18, %v3534_v49  ;;  %v9044_v60 = vsel %vm9013_vm15, %v5546_v53, %v3607_v55  ;;  %v9055_v62 = vsel %vm9032_vm1, %v5550_v59, %v3625_v22  ;;  %v6213_v22 = vld [vmem:[%s10010_s5 + $0x38] sm:$0xff]  }
 0x38e   : > { %v3562_v11 = vsel %vm2936_vm3, %v3558_v23, %v3542_v47  ;;  %v3511_v6 = vmax.f32 %v3506_v4, %v3507_v12  ;;  %v3669_v0 = vcombine.low %v9029_v43, %v9044_v60  ;;  %v3673_v37 = vcombine.low %v9048_v46, %v9055_v62  ;;  %v6212_v4 = vld [vmem:[%s10010_s5 + $0x78] sm:$0xff]  }
 0x38f   : > { %v3566_v41 = vsel %vm2945_vm4, %v3562_v11, %v3550_v8  ;;  %5687 = vmatpush3.bf16.msra.mxu1 %v6211_v19  ;;  %v3641_v46 = vcombine.low %v6384_v35, %v9003_v14  ;;  %v6215_v19 = vld [vmem:[%s10010_s5 + $0x88] sm:$0xff]  }
 0x390   : > { %v3574_v10 = vrot.slane %v3566_v41, 7  ;;  %v3519_v33 = vrot.slane %v3511_v6, 1  ;;  %5688 = vmatprep.subr.bf16.mxu1 %v6212_v4  ;;  %v6222_v4 = vld [vmem:[%s9692_s7 + $0x50] sm:$0xff]  }
 0x392   : > { %v3527_v45 = vmax.f32 %v3511_v6, %v3519_v33  ;;  %v3582_v26 = vsel %vm2927_vm2, 0.0, %v3574_v10 }
 0x393   : > { %v3586_v40 = vsel %vm2963_vm6, %v3582_v26, 0.0  ;;  %5689 = vmatpush3.bf16.msra.mxu1 %v6213_v22  ;;  %v6224_v22 = vld [vmem:[%s9692_s7 + $0x10] sm:$0xff]  }
 0x394   : > { %v3535_v29 = vrot.slane %v3527_v45, 1  ;;  %v3543_v54 = vrot.slane %v3527_v45, 2  ;;  %v3594_v58 = vcombine.high %v3586_v40, %v3586_v40  ;;  %v3551_v34 = vrot.slane %v3527_v45, 3  ;;  %5820 = vmatprep.subr.bf16.mxu1 %v6384_v35 }
 0x395   : > { %v5547_v51 = vrot.slane %v3586_v40, 9  ;;  %v9075_v32 = vcombine.low %v9019_v1, %v3586_v40  ;;  %v5551_v56 = vrot.slane %v3586_v40, 10 }
 0x396   : > { %v3559_v24 = vsel %vm2927_vm2, %v3527_v45, %v3535_v29  ;;  %v3611_v38 = vrot.slane %v3594_v58, 5  ;;  %v3629_v27 = vrot.slane %v3594_v58, 6 }
 0x397   : > { %v3563_v21 = vsel %vm2936_vm3, %v3559_v24, %v3543_v54  ;;  %vm6390_vm3 = vmmov 0  }
 0x398   : > { %v9091_v5 = vsel %vm9013_vm15, %v5547_v51, %v3611_v38  ;;  %v3567_v57 = vsel %vm2945_vm4, %v3563_v21, %v3551_v34  ;;  %v3630_v9 = vsel %vm9032_vm1, %v5551_v56, %v3629_v27 }
 0x399   : > { %v3646_v42 = vcombine.low %v9044_v60, %v9091_v5  ;;  %v3575_v18 = vrot.slane %v3567_v57, 7  ;;  %v3654_v25 = vcombine.low %v9055_v62, %v3630_v9 }
 0x39b   : > { %v6114_v63 = vpack.i.bf16 %v3646_v42, %v3645_v15  ;;  %v3583_v36 = vsel %vm2927_vm2, 0.0, %v3575_v18  ;;  %v6119_v48 = vpack.i.bf16 %v3654_v25, %v3653_v3 }
 0x39c   : > { %v3587_v49 = vsel %vm2963_vm6, %v3583_v36, 0.0  ;;  %v6217_v36 = vld [vmem:[%s9692_s7] sm:$0xff]  }
 0x39d   : > { %6115 = vrot.lane.b32.xlu1 %v6114_v63, %s10016_s27  ;;  %v3681_v47 = vcombine.low %v3587_v49, %v6384_v35  ;;  %v3662_v53 = vcombine.low %v3586_v40, %v3587_v49  ;;  %v3632_v55 = vcombine.high %v3587_v49, %v3587_v49  ;;  %v5553_v12 = vrot.slane %v3587_v49, 10  ;;  %v6216_v63 = vld [vmem:[%s9692_s7 + $0x40] sm:$0xff]  }
 0x39e   : > { %v5552_v59 = vrot.slane %v3587_v49, 9  ;;  %v6219_v49 = vld [vmem:[%s9692_s7 + $0xc0] sm:$0xff]   ;;  %5699 = vmatprep.subr.bf16.mxu0 %v6216_v63 }
 0x39f   : > { %v6124_v8 = vpack.i.bf16 %v3681_v47, %v9075_v32  ;;  %v6139_v23 = vpack.i.bf16 %v3662_v53, %v3661_v52  ;;  %v3639_v11 = vrot.slane %v3632_v55, 6  ;;  %v3635_v6 = vrot.slane %v3632_v55, 5  ;;  %v6221_v47 = vld [vmem:[%s9692_s7 + $0x80] sm:$0xff]   ;;  %v6223_v53 = vld [vmem:[%s9692_s7 + $0xc8] sm:$0xff]   ;;  %5700 = vmatpush3.bf16.msra.mxu0 %v6217_v36 }
 0x3a0   : > { %v6220_v55 = vld [vmem:[%s9692_s7 + $0x8] sm:$0xff]  }
 0x3a1   : > { %6125 = vrot.lane.b32.xlu0 %v6124_v8, %s10017_s25  ;;  %6120 = vrot.lane.b32.xlu1 %v6119_v48, %s10017_s25  ;;  %v3640_v41 = vsel %vm9032_vm1, %v5553_v12, %v3639_v11  ;;  %v3636_v10 = vsel %vm9013_vm15, %v5552_v59, %v3635_v6  ;;  %v6218_v48 = vld [vmem:[%s9692_s7 + $0x48] sm:$0xff]   ;;  %v6227_v59 = vld [vmem:[%s9692_s7 + $0xd0] sm:$0xff]  }
 0x3a2   : > { %v3674_v33 = vcombine.low %v3630_v9, %v3640_v41  ;;  %v3695_v39 = vcombine.low %v3640_v41, %v9079_v16  ;;  %v3670_v2 = vcombine.low %v9091_v5, %v3636_v10  ;;  %v3688_v1 = vcombine.low %v3636_v10, %v9072_v50  ;;  %5701 = vmatprep.subr.bf16.mxu0 %v6218_v48  ;;  %v6225_v12 = vld [vmem:[%s9692_s7 + $0x88] sm:$0xff]   ;;  %v6226_v8 = vld [vmem:[%s9692_s7 + $0x58] sm:$0xff]   ;;  %v6230_v41 = vld [vmem:[%s9692_s7 + $0x60] sm:$0xff]  }
 0x3a3   : > { %5702 = vmatpush3.bf16.msra.mxu0 %v6220_v55  ;;  %v6231_v11 = vld [vmem:[%s9692_s7 + $0xd8] sm:$0xff]  }
 0x3a4   : > { %v3712_v52 = vpack.c.bf16 %v3695_v39, %v3654_v25  ;;  %v6129_v7 = vpack.i.bf16 %v3674_v33, %v3673_v37  ;;  %v6134_v28 = vpack.i.bf16 %v3688_v1, %v3646_v42  ;;  %v6214_v25 = vld [vmem:[%s10010_s5 + $0x80] sm:$0xff]   ;;  %5703 = vmatprep.subr.bf16.mxu0 %v6222_v4  ;;  %v6228_v6 = vld [vmem:[%s9692_s7 + $0x18] sm:$0xff]   ;;  %s621_s5 = sand.u32 1, %s6371_s22  }
 0x3a5   : > { %6140 = vrot.lane.b32.xlu1 %v6139_v23, %s10009_s0  ;;  %v6229_v23 = vld [vmem:[%s9692_s7 + $0x90] sm:$0xff]   ;;  %v6233_v10 = vld [vmem:[%s9692_s7 + $0x98] sm:$0xff]   ;;  %v6235_v33 = vld [vmem:[%s9692_s7 + $0xe0] sm:$0xff]   ;;  %s622_s4 = scalar_lea.vmem [#allocation2], %s621_s5  ;;  %s5398_s30 = scalar_lea.sflag [#allocation3], %s621_s5 }
 0x3a6   : > { %6130 = vrot.lane.b32.xlu0 %v6129_v7, %s10016_s27  ;;  %v6232_v39 = vld [vmem:[%s9692_s7 + $0x20] sm:$0xff]   ;;  %v6236_v7 = vld [vmem:[%s9692_s7 + $0x28] sm:$0xff]   ;;  %s5416_s21 = sshll.u32 %s622_s4, 4  ;;  %s9644_s21 = int_to_ptr.vmem [resolvable:$true] %s5416_s21 }
 0x3a7   : > { %5704 = vmatpush3.bf16.msra.mxu0 %v6224_v22  ;;  %v6237_v1 = vld [vmem:[%s9692_s7 + $0xa0] sm:$0xff]   ;;  %p6324_p0 = scmp.lt.s32.totalorder %s9644_s21, %s6322_s3 }
 0x3a8   : > { %5705 = vmatprep.subr.bf16.mxu0 %v6226_v8 }
 0x3aa   : > { %6135 = vrot.lane.b32.xlu0 %v6134_v28, %s10009_s0  ;;  %v6238_v28 = vld [vmem:[%s9692_s7 + $0x70] sm:$0xff]  }
 0x3ab   : > { %5706 = vmatpush3.bf16.msra.mxu0 %v6228_v6 }
 0x3ac   : > { %5707 = vmatprep.subr.bf16.mxu0 %v6230_v41 }
 0x3af   : > { %5708 = vmatpush3.bf16.msra.mxu0 %v6232_v39  ;;  %v6247_v39 = vld [vmem:[%s9692_s7 + $0xb8] sm:$0xff]  }
 0x40f   : > { %v6116_v45 = vpop.permute.xlu1 %6115 }
 0x410   : > { %v6118_v40 = vunpack.i.h.bf16 %v6116_v45  ;;  %v6117_v29 = vunpack.i.l.bf16 %v6116_v45 }
 0x412   : > { %v3699_v27 = vsel %vm3282_vm8, %v9075_v32, %v6118_v40  ;;  %v3698_v31 = vsel %vm3282_vm8, %v3641_v46, %v6117_v29 }
 0x413   : > { %v6126_v26 = vpop.permute.xlu0 %6125  ;;  %v6121_v20 = vpop.permute.xlu1 %6120 }
 0x414   : > { %v6123_v58 = vunpack.i.h.bf16 %v6121_v20  ;;  %v6122_v34 = vunpack.i.l.bf16 %v6121_v20  ;;  %v6128_v17 = vunpack.i.h.bf16 %v6126_v26  ;;  %v6127_v21 = vunpack.i.l.bf16 %v6126_v26 }
 0x416   : > { %v3700_v15 = vsel %vm3300_vm10, %v3698_v31, %v6122_v34  ;;  %v3701_v14 = vsel %vm3300_vm10, %v3699_v27, %v6123_v58  ;;  %v6240_v27 = vld [vmem:[%s9692_s7 + $0x30] sm:$0xff]   ;;  %v6241_v31 = vld [vmem:[%s9692_s7 + $0xa8] sm:$0xff]  }
 0x417   : > { %v6141_v30 = vpop.permute.xlu1 %6140 }
 0x418   : > { %v6131_v54 = vpop.permute.xlu0 %6130  ;;  %v6143_v62 = vunpack.i.h.bf16 %v6141_v30  ;;  %v6142_v37 = vunpack.i.l.bf16 %v6141_v30 }
 0x419   : > { %v6133_v51 = vunpack.i.h.bf16 %v6131_v54  ;;  %v6132_v24 = vunpack.i.l.bf16 %v6131_v54  ;;  %v5554_v54 = vld [vmem:[%s9691_s6] ss:$0 sm:$0xff] }
 0x41a   : > { %v3703_v42 = vsel %vm3318_vm12, %v3701_v14, %v6143_v62 }
 0x41b   : > { %v3704_v38 = vsel %vm3282_vm8, %v3669_v0, %v6132_v24  ;;  %v3705_v56 = vsel %vm3282_vm8, %v3670_v2, %v6133_v51  ;;  %v3702_v0 = vsel %vm3318_vm12, %v3700_v15, %v6142_v37  ;;  %v6234_v2 = vld [vmem:[%s9692_s7 + $0x68] sm:$0xff]  }
 0x41c   : > { %v6136_v5 = vpop.permute.xlu0 %6135  ;;  %v3706_v43 = vsel %vm3300_vm10, %v3704_v38, %v6127_v21  ;;  %v3707_v60 = vsel %vm3300_vm10, %v3705_v56, %v6128_v17  ;;  %v3710_v13 = vpack.c.bf16 %v3703_v42, %v3702_v0  ;;  %5709 = vmatprep.subr.bf16.mxu0 %v6234_v2 }
 0x41d   : > { %v6138_v57 = vunpack.i.h.bf16 %v6136_v5  ;;  %v6137_v9 = vunpack.i.l.bf16 %v6136_v5  ;;  %5710 = vmatpush3.bf16.msra.mxu0 %v6236_v7 }
 0x41e   : > { %5711 = vmatprep.subr.bf16.mxu0 %v6238_v28 }
 0x41f   : > { %v3708_v32 = vsel %vm3318_vm12, %v3706_v43, %v6137_v9  ;;  %v3709_v18 = vsel %vm3318_vm12, %v3707_v60, %v6138_v57 }
 0x420   : > { %v3711_v3 = vpack.c.bf16 %v3709_v18, %v3708_v32 }
 0x421   : > { %5712 = vmatpush3.bf16.msra.mxu0 %v6240_v27 }
 0x422   : > { %3899 = vmatprep.mubr.bf16.mxu1 %v3711_v3 }
 0x423   : > { %3900 = vmatmul.mubr.bf16.vlgmr.msra.gmra.mrb[0].mxu1 %v3710_v13  ;;  %v6242_v13 = vld [vmem:[%s9692_s7 + $0x78] sm:$0xff]  }
 0x424   : > { %5821 = vmatpush3.bf16.msra.mxu1 %v6214_v25  ;;  %5824 = vmatprep.mubr.msk.bf16.mxu1 %vm6390_vm3, %v6384_v35 }
 0x425   : > { %5822 = vmatprep.subr.bf16.mxu1 %v6384_v35  ;;  %5713 = vmatprep.subr.bf16.mxu0 %v6242_v13 }
 0x428   : > { %5823 = vmatpush3.bf16.msra.mxu1 %v6215_v19  ;;  %v6243_v19 = vld [vmem:[%s9692_s7 + $0xf0] sm:$0xff]  }
 0x429   : > { %5721 = vmatprep.subr.bf16.mxu1 %v6219_v49 }
 0x42b   : > { %5825 = vmatmul.mubr.msk.bf16.vlgmr.msra.gmra.mrb[4].mxu1 %vm3282_vm8, %v3712_v52  ;;  %v6239_v52 = vld [vmem:[%s9692_s7 + $0xe8] sm:$0xff]  }
 0x42c   : > { %5722 = vmatpush3.bf16.msra.mxu1 %v6221_v47  ;;  %v6244_v47 = vld [vmem:[%s9692_s7 + $0x38] sm:$0xff]  }
 0x42d   : > { %5723 = vmatprep.subr.bf16.mxu1 %v6223_v53  ;;  %v6245_v53 = vld [vmem:[%s9692_s7 + $0xb0] sm:$0xff]   ;;  %5714 = vmatpush3.bf16.msra.mxu0 %v6244_v47 }
 0x42e   : > { %5828 = vmatprep.subr.bf16.mxu0 %v6384_v35 }
 0x430   : > { %5724 = vmatpush3.bf16.msra.mxu1 %v6225_v12 }
 0x431   : > { %5725 = vmatprep.subr.bf16.mxu1 %v6227_v59 }
 0x434   : > { %5726 = vmatpush3.bf16.msra.mxu1 %v6229_v23 }
 0x435   : > { %5727 = vmatprep.subr.bf16.mxu1 %v6231_v11 }
 0x438   : > { %5728 = vmatpush3.bf16.msra.mxu1 %v6233_v10 }
 0x439   : > { %5729 = vmatprep.subr.bf16.mxu1 %v6235_v33  ;;  %v6246_v33 = vld [vmem:[%s9692_s7 + $0xf8] sm:$0xff]  }
 0x43c   : > { %5730 = vmatpush3.bf16.msra.mxu1 %v6237_v1 }
 0x43d   : > { %5731 = vmatprep.subr.bf16.mxu1 %v6239_v52 }
 0x440   : > { %5732 = vmatpush3.bf16.msra.mxu1 %v6241_v31 }
 0x441   : > { %5733 = vmatprep.subr.bf16.mxu1 %v6243_v19 }
 0x444   : > { %5734 = vmatpush3.bf16.msra.mxu1 %v6245_v53 }
 0x445   : > { %5735 = vmatprep.subr.bf16.mxu1 %v6246_v33 }
 0x448   : > { %5736 = vmatpush3.bf16.msra.mxu1 %v6247_v39 }
 0x4f6   : > { %v5690_v45 = vpop.f32.mrb[0].mxu1 }
 0x4f7   : > { %v5691_v26 = vpop.f32.mrb[1].mxu1 }
 0x4f8   : > { %v5692_v20 = vadd.f32 %v5691_v26, %v5690_v45  ;;  %v5693_v30 = vpop.f32.mrb[2].mxu1 }
 0x4f9   : > { %v5694_v40 = vpop.f32.mrb[3].mxu1 }
 0x4fa   : > { %v5695_v29 = vadd.f32 %v5694_v40, %v5693_v30  ;;  %v3902_v58 = vadd.f32 %v5692_v20, %v5554_v54 }
 0x4fc   : > { %v3905_v46 = vadd.f32 %v5695_v29, %v5554_v54 }
 0x4fe   : > { %v3942_v34 = vpop.f32.mrb[4].mxu1 }
 0x4ff   : > { %v3943_v51 = vadd.f32 %v3942_v34, %v3902_v58  ;;  %v5826_v24 = vpop.f32.mrb[5].mxu1 }
 0x500   : > { %v3945_v62 = vpop.f32.mrb[6].mxu1 }
 0x501   : > { %v3949_v37 = vmax.f32 %v3943_v51, 0.0  ;;  %v3946_v38 = vadd.f32 %v3945_v62, %v3905_v46  ;;  %v5827_v56 = vpop.f32.mrb[7].mxu1 }
 0x503   : > { %v3953_v17 = vcombine.high %v3949_v37, %v3949_v37  ;;  %v3955_v21 = vrot.slane %v3949_v37, 7  ;;  %v3950_v5 = vmax.f32 %v3946_v38, 0.0 }
 0x505   : > { %v3956_v15 = vrot.slane %v3953_v17, 7  ;;  %v3963_v14 = vsel %vm2927_vm2, 0.0, %v3955_v21  ;;  %v3954_v57 = vcombine.high %v3950_v5, %v3950_v5  ;;  %v3957_v9 = vrot.slane %v3950_v5, 7 }
 0x506   : > { %v9250_v43 = vsel %vm2963_vm6, %v3963_v14, 0.0 }
 0x507   : > { %v3964_v60 = vsel %vm2927_vm2, 0.0, %v3956_v15  ;;  %v3974_v0 = vcombine.high %v9250_v43, %v9250_v43  ;;  %v3958_v42 = vrot.slane %v3954_v57, 7  ;;  %v3965_v32 = vsel %vm2927_vm2, 0.0, %v3957_v9 }
 0x508   : > { %v9257_v18 = vsel %vm2963_vm6, %v3964_v60, 0.0  ;;  %v9260_v3 = vsel %vm2963_vm6, %v3965_v32, 0.0  ;;  %v5574_v25 = vrot.slane %v9250_v43, 9  ;;  %v5577_v20 = vrot.slane %v9250_v43, 10 }
 0x509   : > { %v3975_v63 = vcombine.high %v9257_v18, %v9257_v18  ;;  %v3966_v36 = vsel %vm2927_vm2, 0.0, %v3958_v42  ;;  %v3976_v48 = vcombine.high %v9260_v3, %v9260_v3  ;;  %v4027_v49 = vcombine.low %v9250_v43, %v9257_v18 }
 0x50a   : > { %v9283_v55 = vsel %vm2963_vm6, %v3966_v36, 0.0  ;;  %v3979_v4 = vrot.slane %v3974_v0, 5  ;;  %v5575_v12 = vrot.slane %v9257_v18, 9  ;;  %v5576_v59 = vrot.slane %v9260_v3, 9 }
 0x50b   : > { %v4002_v22 = vcombine.high %v9283_v55, %v9283_v55  ;;  %v4028_v8 = vcombine.low %v9260_v3, %v9283_v55  ;;  %v3983_v23 = vrot.slane %v3975_v63, 5  ;;  %v3987_v11 = vrot.slane %v3976_v48, 5 }
 0x50c   : > { %v9293_v6 = vsel %vm9013_vm15, %v5574_v25, %v3979_v4  ;;  %v3991_v41 = vrot.slane %v3974_v0, 6  ;;  %v3995_v10 = vrot.slane %v3975_v63, 6  ;;  %v5578_v7 = vrot.slane %v9257_v18, 10 }
 0x50d   : > { %v6144_v2 = vpack.i.bf16 %v4028_v8, %v4027_v49  ;;  %v3984_v1 = vsel %vm9013_vm15, %v5575_v12, %v3983_v23  ;;  %v3988_v52 = vsel %vm9013_vm15, %v5576_v59, %v3987_v11  ;;  %v4015_v28 = vcombine.low %v9072_v50, %v9293_v6  ;;  %v6249_v59 = vld [vmem:[%s9692_s7 + $0x108] sm:$0xff]   ;;  %v6251_v23 = vld [vmem:[%s9692_s7 + $0x118] sm:$0xff]   ;;  %v6252_v11 = vld [vmem:[%s9694_s9] sm:$0xff]  }
 0x50e   : > { %v4016_v45 = vcombine.low %v3984_v1, %v3988_v52  ;;  %v4035_v26 = vcombine.low %v9293_v6, %v3984_v1  ;;  %v3996_v30 = vsel %vm9032_vm1, %v5578_v7, %v3995_v10  ;;  %v5580_v40 = vrot.slane %v9283_v55, 9  ;;  %v6253_v6 = vld [vmem:[%s9694_s9 + $0x8] sm:$0xff]   ;;  %v5582_v1 = vld [vmem:[%s9693_s8] ss:$0 sm:$0xff] }
 0x50f   : > { %6145 = vrot.lane.b32.xlu0 %v6144_v2, %s10017_s25  ;;  %v4005_v29 = vrot.slane %v4002_v22, 5  ;;  %v3992_v58 = vsel %vm9032_vm1, %v5577_v20, %v3991_v41  ;;  %v5579_v34 = vrot.slane %v9260_v3, 10  ;;  %v3999_v51 = vrot.slane %v3976_v48, 6  ;;  %v4566_v41 = vld [vmem:[%s9696_s11] sm:$0xff]  ;;  %v4567_v10 = vld [vmem:[%s9696_s11 + $0x8] sm:$0xff] }
 0x510   : > { %v6149_v54 = vpack.i.bf16 %v4016_v45, %v4015_v28  ;;  %v5581_v46 = vrot.slane %v9283_v55, 10  ;;  %v4009_v62 = vrot.slane %v4002_v22, 6  ;;  %v4012_v37 = vcombine.low %v9257_v18, %v9260_v3 }
 0x511   : > { %v4006_v24 = vsel %vm9013_vm15, %v5580_v40, %v4005_v29  ;;  %v4039_v38 = vcombine.low %v3992_v58, %v3996_v30  ;;  %v4000_v27 = vsel %vm9032_vm1, %v5579_v34, %v3999_v51  ;;  %v4011_v32 = vcombine.low %v6384_v35, %v9250_v43 }
 0x512   : > { %6150 = vrot.lane.b32.xlu1 %v6149_v54, %s10017_s25  ;;  %v4049_v56 = vcombine.low %v4006_v24, %v9072_v50  ;;  %v4036_v31 = vcombine.low %v3988_v52, %v4006_v24  ;;  %v4010_v17 = vsel %vm9032_vm1, %v5581_v46, %v4009_v62  ;;  %v4024_v61 = vcombine.low %v3996_v30, %v4000_v27 }
 0x513   : > { %v4040_v5 = vcombine.low %v4000_v27, %v4010_v17  ;;  %v4053_v15 = vcombine.low %v4010_v17, %v9079_v16  ;;  %v4023_v50 = vcombine.low %v9079_v16, %v3992_v58  ;;  %v6248_v16 = vld [vmem:[%s9692_s7 + $0x100] sm:$0xff]   ;;  %v4047_v43 = vcombine.low %v9283_v55, %v6384_v35  ;;  %v6250_v55 = vld [vmem:[%s9692_s7 + $0x110] sm:$0xff]  }
 0x514   : > { %v6154_v21 = vpack.i.bf16 %v4039_v38, %v4049_v56  ;;  %v5898_v33 = vpack.c.bf16 %v4567_v10, %v4566_v41  ;;  %vm4912_vm1 = vcmask 56320  }
 0x515   : > { %v4066_v14 = vpack.c.bf16 %v4053_v15, %v4024_v61 }
 0x516   : > { %6155 = vrot.lane.b32.xlu0 %v6154_v21, %s10017_s25  ;;  %4043 = vrot.lane.b32.xlu1 %v4040_v5, %s10017_s25  ;;  %v4568_v21 = vld [vmem:[%s9696_s11 + $0x10] sm:$0xff]  ;;  %v4569_v5 = vld [vmem:[%s9696_s11 + $0x18] sm:$0xff] }
 0x517   : > { %5899 = vmatprep.subr.bf16.mxu1 %v5898_v33  ;;  %v5902_v15 = vpack.c.bf16 %v4569_v5, %v4568_v21 }
 0x581   : > { %v6146_v57 = vpop.permute.xlu0 %6145 }
 0x582   : > { %v6148_v9 = vunpack.i.h.bf16 %v6146_v57  ;;  %v6147_v60 = vunpack.i.l.bf16 %v6146_v57 }
 0x584   : > { %v6151_v0 = vpop.permute.xlu1 %6150  ;;  %v4057_v42 = vsel %vm3300_vm10, %v4023_v50, %v6147_v60  ;;  %v4058_v44 = vsel %vm3300_vm10, %v4024_v61, %v6148_v9 }
 0x585   : > { %v6153_v18 = vunpack.i.h.bf16 %v6151_v0  ;;  %v6152_v3 = vunpack.i.l.bf16 %v6151_v0  ;;  %v4063_v25 = vpack.c.bf16 %v4058_v44, %v4057_v42 }
 0x587   : > { %v4056_v13 = vsel %vm3300_vm10, %v4012_v37, %v6153_v18  ;;  %v4055_v19 = vsel %vm3300_vm10, %v4011_v32, %v6152_v3  ;;  %4397 = vmatprep.mubr.bf16.mxu0 %v4063_v25 }
 0x588   : > { %v4062_v63 = vpack.c.bf16 %v4056_v13, %v4055_v19  ;;  %v6156_v36 = vpop.permute.xlu0 %6155  ;;  %v4044_v48 = vpop.permute.xlu1 %4043 }
 0x589   : > { %v6158_v49 = vunpack.i.h.bf16 %v6156_v36  ;;  %v6157_v47 = vunpack.i.l.bf16 %v6156_v36  ;;  %v4060_v53 = vsel %vm3300_vm10, %v4036_v31, %v4044_v48  ;;  %v5626_v48 = vld [vmem:[%s9698_s13] ss:$0 sm:$0xff] }
 0x58a   : > { %4398 = vmatmul.mubr.bf16.vlgmr.msra.gmra.mrb[16].mxu0 %v4062_v63 }
 0x58b   : > { %v4059_v4 = vsel %vm3300_vm10, %v4035_v26, %v6158_v49  ;;  %5829 = vmatpush3.bf16.msra.mxu0 %v6248_v16  ;;  %v4061_v12 = vsel %vm3300_vm10, %v4047_v43, %v6157_v47  ;;  %5836 = vmatprep.mubr.msk.bf16.mxu0 %vm6390_vm3, %v6384_v35 }
 0x58c   : > { %v4064_v22 = vpack.c.bf16 %v4060_v53, %v4059_v4  ;;  %v4065_v8 = vpack.c.bf16 %v4061_v12, %v4056_v13  ;;  %5830 = vmatprep.subr.bf16.mxu0 %v6384_v35 }
 0x58e   : > { %4438 = vmatprep.mubr.bf16.mxu1 %v4065_v8 }
 0x58f   : > { %4439 = vmatmul.mubr.bf16.vlgmr.msra.gmra.mrb[8].mxu1 %v4064_v22  ;;  %5831 = vmatpush3.bf16.msra.mxu0 %v6249_v59  ;;  %v4670_v59 = vlaneseq }
 0x590   : > { %5832 = vmatprep.subr.bf16.mxu0 %v6384_v35  ;;  %5901 = vmatpush3.bf16.msra.mxu1 %v5898_v33 }
 0x591   : > { %5903 = vmatprep.subr.bf16.mxu1 %v5902_v15  ;;  %v9410_v22 = vand.u32 127, %v4670_v59 }
 0x593   : > { %5833 = vmatpush3.bf16.msra.mxu0 %v6250_v55 }
 0x594   : > { %5834 = vmatprep.subr.bf16.mxu0 %v6384_v35  ;;  %5905 = vmatpush3.bf16.msra.mxu1 %v5902_v15 }
 0x597   : > { %5835 = vmatpush3.bf16.msra.mxu0 %v6251_v23 }
 0x598   : > { %5840 = vmatprep.subr.bf16.mxu0 %v6384_v35 }
 0x59a   : > { %5837 = vmatmul.mubr.msk.bf16.vlgmr.msra.gmra.mrb[20].mxu0 %vm3300_vm10, %v4066_v14  ;;  %v5620_v14 = vld [vmem:[%s9695_s10] ss:$0 sm:$0xff] }
 0x59b   : > { %5844 = vmatprep.mubr.msk.bf16.mxu0 %vm6390_vm3, %v6384_v35  ;;  %5841 = vmatpush3.bf16.msra.mxu0 %v6252_v11 }
 0x59c   : > { %5842 = vmatprep.subr.bf16.mxu0 %v6384_v35 }
 0x59f   : > { %5843 = vmatpush3.bf16.msra.mxu0 %v6253_v6 }
 0x65d   : > { %v5715_v39 = vpop.f32.mrb[16].mxu0 }
 0x65e   : > { %v5716_v2 = vpop.f32.mrb[17].mxu0 }
 0x65f   : > { %v5717_v52 = vadd.f32 %v5716_v2, %v5715_v39  ;;  %v5718_v7 = vpop.f32.mrb[18].mxu0 }
 0x660   : > { %v5719_v28 = vpop.f32.mrb[19].mxu0 }
 0x661   : > { %v5720_v45 = vadd.f32 %v5719_v28, %v5718_v7  ;;  %v4400_v26 = vadd.f32 %v5717_v52, %v5582_v1  ;;  %v4713_v52 = vld [vmem:[%s9697_s12 + $0x8] sm:$0xff]  ;;  %v4714_v7 = vld [vmem:[%s9697_s12 + $0x10] sm:$0xff] }
 0x662   : > { %v5737_v20 = vpop.f32.mrb[8].mxu1 }
 0x663   : > { %v5738_v30 = vpop.f32.mrb[9].mxu1  ;;  %v4403_v40 = vadd.f32 %v5720_v45, %v5582_v1  ;;  %v4712_v1 = vld [vmem:[%s9697_s12] sm:$0xff]  ;;  %v4715_v45 = vld [vmem:[%s9697_s12 + $0x18] sm:$0xff] }
 0x664   : > { %v5739_v29 = vadd.f32 %v5738_v30, %v5737_v20  ;;  %v5740_v54 = vpop.f32.mrb[10].mxu1  ;;  %v5906_v28 = vpack.c.bf16 %v4713_v52, %v4712_v1  ;;  %v6254_v1 = vld [vmem:[%s9699_s14 + $0x40] sm:$0xff]  }
 0x665   : > { %v5741_v58 = vpop.f32.mrb[11].mxu1  ;;  %v6255_v52 = vld [vmem:[%s9699_s14] sm:$0xff]   ;;  %5767 = vmatprep.subr.bf16.mxu1 %v6254_v1 }
 0x666   : > { %v5742_v34 = vadd.f32 %v5741_v58, %v5740_v54  ;;  %v4441_v51 = vadd.f32 %v5739_v29, %v4400_v26  ;;  %v5910_v26 = vpack.c.bf16 %v4715_v45, %v4714_v7  ;;  %5907 = vmatprep.subr.bf16.mxu0 %v5906_v28  ;;  %v6256_v7 = vld [vmem:[%s9699_s14 + $0x48] sm:$0xff]   ;;  %v6259_v45 = vld [vmem:[%s9699_s14 + $0x80] sm:$0xff]  }
 0x668   : > { %v4444_v24 = vadd.f32 %v5742_v34, %v4403_v40 }
 0x66d   : > { %v4481_v46 = vpop.f32.mrb[20].mxu0 }
 0x66e   : > { %v4482_v62 = vadd.f32 %v4481_v46, %v4441_v51  ;;  %v5838_v37 = vpop.f32.mrb[21].mxu0  ;;  %v4717_v46 = vld [vmem:[%s9697_s12 + $0x28] sm:$0xff] }
 0x66f   : > { %v4484_v38 = vpop.f32.mrb[22].mxu0  ;;  %v4718_v37 = vld [vmem:[%s9697_s12 + $0x30] sm:$0xff] }
 0x670   : > { %v4485_v56 = vadd.f32 %v4484_v38, %v4444_v24  ;;  %v5839_v27 = vpop.f32.mrb[23].mxu0  ;;  %v4488_v31 = vmax.f32 %v4482_v62, 0.0  ;;  %v4716_v24 = vld [vmem:[%s9697_s12 + $0x20] sm:$0xff]  ;;  %v4719_v38 = vld [vmem:[%s9697_s12 + $0x38] sm:$0xff] }
 0x671   : > { %v5914_v62 = vpack.c.bf16 %v4717_v46, %v4716_v24  ;;  %v6266_v24 = vld [vmem:[%s9699_s14 + $0x18] sm:$0xff]   ;;  %v6268_v46 = vld [vmem:[%s9699_s14 + $0x60] sm:$0xff]  }
 0x672   : > { %v4489_v17 = vmax.f32 %v4485_v56, 0.0  ;;  %v5918_v56 = vpack.c.bf16 %v4719_v38, %v4718_v37  ;;  %v6270_v37 = vld [vmem:[%s9699_s14 + $0x20] sm:$0xff]   ;;  %v6272_v38 = vld [vmem:[%s9699_s14 + $0x68] sm:$0xff]  }
 0x674   : > { %v4490_v61 = vpack.c.bf16 %v4489_v17, %v4488_v31 }
 0x676   : > { %5845 = vmatmul.mubr.msk.bf16.vlgmr.msra.gmra.mrb[24].mxu0 %vm3282_vm8, %v4490_v61 }
 0x677   : > { %5909 = vmatpush3.bf16.msra.mxu0 %v5906_v28  ;;  %v6257_v28 = vld [vmem:[%s9699_s14 + $0xc0] sm:$0xff]  }
 0x678   : > { %5911 = vmatprep.subr.bf16.mxu0 %v5910_v26 }
 0x67b   : > { %5913 = vmatpush3.bf16.msra.mxu0 %v5910_v26  ;;  %v6261_v26 = vld [vmem:[%s9699_s14 + $0xc8] sm:$0xff]  }
 0x67c   : > { %5915 = vmatprep.subr.bf16.mxu0 %v5914_v62 }
 0x67f   : > { %5917 = vmatpush3.bf16.msra.mxu0 %v5914_v62  ;;  %v6271_v62 = vld [vmem:[%s9699_s14 + $0x98] sm:$0xff]  }
 0x680   : > { %5919 = vmatprep.subr.bf16.mxu0 %v5918_v56 }
 0x683   : > { %5921 = vmatpush3.bf16.msra.mxu0 %v5918_v56  ;;  %v6273_v56 = vld [vmem:[%s9699_s14 + $0xe0] sm:$0xff]  }
 0x684   : > { %5789 = vmatprep.subr.bf16.mxu0 %v6257_v28 }
 0x749   : > { %v4551_v57 = vpop.f32.mrb[24].mxu0 }
 0x74a   : > { %v9391_v50 = vadd.f32 %v5620_v14, %v4551_v57  ;;  %v5846_v9 = vpop.f32.mrb[25].mxu0 }
 0x74b   : > { %v4554_v60 = vpop.f32.mrb[26].mxu0 }
 0x74c   : > { %v9393_v0 = vadd.f32 %v5620_v14, %v4554_v60  ;;  %v5847_v42 = vpop.f32.mrb[27].mxu0  ;;  %5856 = vmatprep.mubr.msk.f32.mxu1 %vm3282_vm8, %v9391_v50  ;;  %v4558_v44 = vmul.f32 %v9391_v50, %v9391_v50 }
 0x74e   : > { %5857 = vmatmul.mubr.msk.f32.vlgmr.msra.gmra.mrb[12].mxu1 %vm3282_vm8, %v9393_v0  ;;  %v4560_v32 = vsel %vm3282_vm8, %v4558_v44, 0.0  ;;  %v4559_v18 = vmul.f32 %v9393_v0, %v9393_v0 }
 0x74f   : > { %4561 = vadd.xlane.f32.xlu0 %v4560_v32  ;;  %5768 = vmatpush3.bf16.msra.mxu1 %v6255_v52 }
 0x750   : > { %v4563_v3 = vsel %vm3282_vm8, %v4559_v18, 0.0  ;;  %5769 = vmatprep.subr.bf16.mxu1 %v6256_v7 }
 0x751   : > { %4564 = vadd.xlane.f32.xlu1 %v4563_v3 }
 0x7dc   : > { %v4562_v63 = vpop.xlane.xlu0 %4561 }
 0x7de   : > { %v4565_v36 = vpop.xlane.xlu1 %4564 }
 0x821   : > { %v5858_v25 = vpop.f32.mrb[12].mxu1 }
 0x822   : > { %v4652_v13 = vmul.f32 2.0, %v5858_v25  ;;  %v4642_v19 = vpop.f32.mrb[13].mxu1 }
 0x823   : > { %v4651_v16 = vmul.f32 2.0, %v4642_v19 }
 0x824   : > { %v4654_v49 = vsub.f32 %v4565_v36, %v4652_v13 }
 0x825   : > { %v4653_v47 = vsub.f32 %v4562_v63, %v4651_v16 }
 0x826   : > { %v4663_v4 = vadd.f32 %v5626_v48, %v4654_v49 }
 0x827   : > { %v4662_v53 = vadd.f32 %v5626_v48, %v4653_v47 }
 0x828   : > { %v4667_v12 = vsel %vm3300_vm10, %v4663_v4, inf }
 0x829   : > { %v4664_v43 = vsel %vm3300_vm10, %v4662_v53, inf }
 0x82a   : > { %4665 = vmin.xlane.f32.xlu0 %v4664_v43 }
 0x82e   : > { %4668 = vmin.xlane.f32.xlu0 %v4667_v12 }
 0x8b7   : > { %v4666_v8 = vpop.xlane.xlu0 %4665 }
 0x8b8   : > { %vm4672_vm2 = vcmp.eq.f32.partialorder %v4662_v53, %v4666_v8 }
 0x8b9   : > { %v4674_v55 = vsel %vm4672_vm2, %v9410_v22, 64  ;;  %vm4914_vm2 = vcmask 64512  }
 0x8ba   : > { %v4676_v23 = vsel %vm3300_vm10, %v4674_v55, 2147483647 }
 0x8bb   : > { %v4669_v11 = vpop.xlane.xlu0 %4668  ;;  %v4678_v6 = vshra.s32 %v4676_v23, 16  ;;  %v4677_v20 = vand.u32 65535, %v4676_v23 }
 0x8bc   : > { %vm4673_vm4 = vcmp.eq.f32.partialorder %v4663_v4, %v4669_v11 }
 0x8bd   : > { %v4675_v41 = vsel %vm4673_vm4, %v9410_v22, 64  ;;  %v4680_v10 = vcvt.s32.f32 %v4678_v6  ;;  %v4679_v29 = vcvt.s32.f32 %v4677_v20  ;;  %vm4916_vm4 = vcmask 72704   ;;  %v6258_v20 = vld [vmem:[%s9699_s14 + $0x8] sm:$0xff]  }
 0x8be   : > { %v4691_v33 = vsel %vm3300_vm10, %v4675_v41, 2147483647  ;;  %5770 = vmatpush3.bf16.msra.mxu1 %v6258_v20 }
 0x8bf   : > { %v4693_v39 = vshra.s32 %v4691_v33, 16  ;;  %4681 = vmin.xlane.f32.xlu1 %v4680_v10  ;;  %v4692_v30 = vand.u32 65535, %v4691_v33 }
 0x8c1   : > { %v4695_v2 = vcvt.s32.f32 %v4693_v39  ;;  %v4694_v34 = vcvt.s32.f32 %v4692_v30  ;;  %v6260_v30 = vld [vmem:[%s9699_s14 + $0x50] sm:$0xff]  }
 0x8c2   : > { %5771 = vmatprep.subr.bf16.mxu1 %v6260_v30 }
 0x8c3   : > { %4696 = vmin.xlane.f32.xlu0 %v4695_v2 }
 0x94c   : > { %v4682_v40 = vpop.xlane.xlu1 %4681 }
 0x94d   : > { %vm4683_vm5 = vcmp.eq.f32.partialorder %v4680_v10, %v4682_v40  ;;  %v4688_v27 = vcvt.f32.s32 %v4682_v40  ;;  %v6263_v40 = vld [vmem:[%s9699_s14 + $0x88] sm:$0xff]  }
 0x94e   : > { %v4684_v54 = vsel %vm4683_vm5, %v4679_v29, inf  ;;  %v6265_v29 = vld [vmem:[%s9699_s14 + $0xd0] sm:$0xff]  }
 0x94f   : > { %4685 = vmin.xlane.f32.xlu1 %v4684_v54  ;;  %v4689_v17 = vshll.u32 %v4688_v27, 16  ;;  %v6262_v54 = vld [vmem:[%s9699_s14 + $0x10] sm:$0xff]   ;;  %v6274_v27 = vld [vmem:[%s9699_s14 + $0x28] sm:$0xff]  }
 0x950   : > { %v4697_v58 = vpop.xlane.xlu0 %4696  ;;  %5772 = vmatpush3.bf16.msra.mxu1 %v6262_v54 }
 0x951   : > { %vm4698_vm6 = vcmp.eq.f32.partialorder %v4695_v2, %v4697_v58  ;;  %v4703_v21 = vcvt.f32.s32 %v4697_v58  ;;  %v6264_v58 = vld [vmem:[%s9699_s14 + $0x58] sm:$0xff]  }
 0x952   : > { %v4699_v51 = vsel %vm4698_vm6, %v4694_v34, inf  ;;  %vm4918_vm6 = vcmask 80896   ;;  %v6267_v34 = vld [vmem:[%s9699_s14 + $0x90] sm:$0xff]   ;;  %5773 = vmatprep.subr.bf16.mxu1 %v6264_v58 }
 0x953   : > { %4700 = vmin.xlane.f32.xlu0 %v4699_v51  ;;  %v4704_v9 = vshll.u32 %v4703_v21, 16  ;;  %v6269_v51 = vld [vmem:[%s9699_s14 + $0xd8] sm:$0xff]   ;;  %v6278_v21 = vld [vmem:[%s9699_s14 + $0x30] sm:$0xff]  }
 0x954   : > { %5774 = vmatpush3.bf16.msra.mxu1 %v6266_v24 }
 0x955   : > { %5775 = vmatprep.subr.bf16.mxu1 %v6268_v46 }
 0x958   : > { %5776 = vmatpush3.bf16.msra.mxu1 %v6270_v37  ;;  %v6286_v37 = vld [vmem:[%s9701_s16] sm:$0xff]  }
 0x959   : > { %5777 = vmatprep.subr.bf16.mxu1 %v6272_v38 }
 0x95c   : > { %5778 = vmatpush3.bf16.msra.mxu1 %v6274_v27 }
 0x9dc   : > { %v4686_v31 = vpop.xlane.xlu1 %4685 }
 0x9dd   : > { %v4687_v61 = vcvt.f32.s32 %v4686_v31  ;;  %v6275_v31 = vld [vmem:[%s9699_s14 + $0xa0] sm:$0xff]  }
 0x9df   : > { %v4690_v5 = vadd.s32 %v4689_v17, %v4687_v61  ;;  %v6276_v17 = vld [vmem:[%s9699_s14 + $0x70] sm:$0xff]   ;;  %v6277_v61 = vld [vmem:[%s9699_s14 + $0xe8] sm:$0xff]  }
 0x9e0   : > { %v4701_v15 = vpop.xlane.xlu0 %4700  ;;  %5779 = vmatprep.subr.bf16.mxu1 %v6276_v17 }
 0x9e1   : > { %v4886_v14 = vrot.slane %v4690_v5, 1  ;;  %v4887_v57 = vrot.slane %v4690_v5, 2  ;;  %v4702_v60 = vcvt.f32.s32 %v4701_v15  ;;  %v4888_v42 = vrot.slane %v4690_v5, 3  ;;  %v6279_v15 = vld [vmem:[%s9699_s14 + $0xa8] sm:$0xff]   ;;  %5780 = vmatpush3.bf16.msra.mxu1 %v6278_v21 }
 0x9e2   : > { %vm4706_vm15 = vcmp.eq.s32.totalorder %v9410_v22, %v4690_v5  ;;  %v4889_v32 = vrot.slane %v4690_v5, 4  ;;  %v4890_v13 = vrot.slane %v4690_v5, 5  ;;  %v4891_v16 = vrot.slane %v4690_v5, 6 }
 0x9e3   : > { %v4901_v44 = vsel %vm4900_vm7, %v4690_v5, %v4886_v14  ;;  %v4705_v3 = vadd.s32 %v4704_v9, %v4702_v60  ;;  %v5627_v25 = vsel %vm4706_vm15, 1.0, %v6384_v35  ;;  %v4892_v36 = vrot.slane %v4690_v5, 7 }
 0x9e4   : > { %v4903_v18 = vsel %vm4902_vm9, %v4901_v44, %v4887_v57  ;;  %5875 = vmatprep.mubr.msk.f32.mxu0 %vm3300_vm10, %v5627_v25  ;;  %vm4920_vm7 = vcmask 89088   ;;  %vm4922_vm9 = vcmask 97280   ;;  %vm4930_vm15 = vcmask 122880   ;;  %v6281_v25 = vld [vmem:[%s9699_s14 + $0xf0] sm:$0xff]  }
 0x9e5   : > { %v4905_v19 = vsel %vm4904_vm11, %v4903_v18, %v4888_v42  ;;  %vm4707_vm5 = vcmp.eq.s32.totalorder %v9410_v22, %v4705_v3  ;;  %v4893_v47 = vrot.slane %v4705_v3, 1  ;;  %v4894_v4 = vrot.slane %v4705_v3, 2 }
 0x9e6   : > { %v4907_v63 = vsel %vm4906_vm13, %v4905_v19, %v4889_v32  ;;  %v5628_v43 = vsel %vm4707_vm5, 1.0, %v6384_v35  ;;  %v4895_v59 = vrot.slane %v4705_v3, 3  ;;  %vm4924_vm11 = vcmask 105472  }
 0x9e7   : > { %v4909_v48 = vsel %vm4908_vm14, %v4907_v63, %v4890_v13  ;;  %5876 = vmatmul.mubr.msk.f32.vlgmr.msra.gmra.mrb[28].mxu0 %vm3300_vm10, %v5628_v43  ;;  %v4896_v55 = vrot.slane %v4705_v3, 4  ;;  %vm4926_vm13 = vcmask 113664   ;;  %v4897_v11 = vrot.slane %v4705_v3, 5  ;;  %v6282_v13 = vld [vmem:[%s9699_s14 + $0x38] sm:$0xff]  }
 0x9e8   : > { %v4911_v49 = vsel %vm4910_vm0, %v4909_v48, %v4891_v16  ;;  %vm4928_vm14 = vcmask 121856   ;;  %v4898_v6 = vrot.slane %v4705_v3, 6  ;;  %v4899_v10 = vrot.slane %v4705_v3, 7  ;;  %5790 = vmatpush3.bf16.msra.mxu0 %v6259_v45  ;;  %v6285_v43 = vld [vmem:[%s9699_s14 + $0xb8] sm:$0xff]  }
 0x9e9   : > { %v4913_v53 = vsel %vm4912_vm1, %v4911_v49, %v4892_v36  ;;  %5791 = vmatprep.subr.bf16.mxu0 %v6261_v26  ;;  %v6283_v36 = vld [vmem:[%s9699_s14 + $0xb0] sm:$0xff]  }
 0x9ea   : > { %v4915_v12 = vsel %vm4914_vm2, %v4913_v53, %v4705_v3  ;;  %v6280_v3 = vld [vmem:[%s9699_s14 + $0x78] sm:$0xff]  }
 0x9eb   : > { %v4917_v8 = vsel %vm4916_vm4, %v4915_v12, %v4893_v47  ;;  %5781 = vmatprep.subr.bf16.mxu1 %v6280_v3  ;;  %v6284_v53 = vld [vmem:[%s9699_s14 + $0xf8] sm:$0xff]   ;;  %v6292_v3 = vld [vmem:[%s9701_s16 + $0x30] sm:$0xff]  }
 0x9ec   : > { %v4919_v23 = vsel %vm4918_vm6, %v4917_v8, %v4894_v4  ;;  %5792 = vmatpush3.bf16.msra.mxu0 %v6263_v40  ;;  %5782 = vmatpush3.bf16.msra.mxu1 %v6282_v13 }
 0x9ed   : > { %v4921_v22 = vsel %vm4920_vm7, %v4919_v23, %v4895_v59  ;;  %5793 = vmatprep.subr.bf16.mxu0 %v6265_v29  ;;  %5878 = vmatprep.subr.bf16.mxu1 %v6384_v35 }
 0x9ee   : > { %v4923_v41 = vsel %vm4922_vm9, %v4921_v22, %v4896_v55 }
 0x9ef   : > { %v4925_v33 = vsel %vm4924_vm11, %v4923_v41, %v4897_v11 }
 0x9f0   : > { %v4927_v39 = vsel %vm4926_vm13, %v4925_v33, %v4898_v6  ;;  %5794 = vmatpush3.bf16.msra.mxu0 %v6267_v34 }
 0x9f1   : > { %v4929_v2 = vsel %vm4928_vm14, %v4927_v39, %v4899_v10  ;;  %5795 = vmatprep.subr.bf16.mxu0 %v6269_v51 }
 0x9f2   : > { %4931 = vst.msk [vmem:[%s643_s29] sm:$0x1] %vm4930_vm15, %v4929_v2  ;;  %s6317_s29 = scalar_lea.vmem %s9644_s21, 16 }
 0x9f3   : > { %p6318_p11 = scmp.ne.s32.totalorder %s9644_s21, %s6317_s29  ;;  %p6325_p1 = scmp.lt.s32.totalorder %s6323_s26, %s6317_s29 }
 0x9f4   : > { %5796 = vmatpush3.bf16.msra.mxu0 %v6271_v62 }
 0x9f5   : > { %5797 = vmatprep.subr.bf16.mxu0 %v6273_v56  ;;  %p6319_p12 = pnand %p6318_p11, %p6535_p5  ;;  %p6326_p2 = por %p6325_p1, %p6324_p0 }
 0x9f7   : > { %p6320_p13 = pneg %p6319_p12 }
 0x9f8   : > { %5798 = vmatpush3.bf16.msra.mxu0 %v6275_v31 }
 0x9f9   : > { %5799 = vmatprep.subr.bf16.mxu0 %v6277_v61  ;;  %p6327_p3 = pnand %p6326_p2, %p6320_p13 }
 0x9fc   : > { %5800 = vmatpush3.bf16.msra.mxu0 %v6279_v15 }
 0x9fd   : > { %5801 = vmatprep.subr.bf16.mxu0 %v6281_v25  ;;  %v6293_v25 = vld [vmem:[%s9701_s16 + $0x38] sm:$0xff]  }
 0xa00   : > { %5802 = vmatpush3.bf16.msra.mxu0 %v6283_v36  ;;  %v5000_v36 = vld [vmem:[%s9700_s15] sm:$0x1] }
 0xa01   : > { %5803 = vmatprep.subr.bf16.mxu0 %v6284_v53 }
 0xa04   : > { %5804 = vmatpush3.bf16.msra.mxu0 %v6285_v43 }
 0xaba   : > { %v9526_v5 = vpop.f32.mrb[28].mxu0 }
 0xabb   : > { %v9531_v14 = vpop.f32.mrb[29].mxu0  ;;  %v4848_v57 = vrot.slane %v9526_v5, 1  ;;  %v4862_v9 = vrot.slane %v9526_v5, 5  ;;  %v4852_v16 = vrot.slane %v9526_v5, 2  ;;  %v4866_v63 = vrot.slane %v9526_v5, 6 }
 0xabc   : > { %v4825_v60 = vrot.slane %v9531_v14, 2  ;;  %v4839_v42 = vrot.slane %v9531_v14, 6  ;;  %v4821_v32 = vrot.slane %v9531_v14, 1  ;;  %v4835_v18 = vrot.slane %v9531_v14, 5 }
 0xabd   : > { %v6159_v44 = vpack.i.bf16 %v4848_v57, %v4862_v9  ;;  %v4829_v49 = vrot.slane %v9531_v14, 3  ;;  %v4843_v47 = vrot.slane %v9531_v14, 7  ;;  %v6174_v4 = vpack.i.bf16 %v4852_v16, %v4866_v63 }
 0xabe   : > { %v6169_v19 = vpack.i.bf16 %v4825_v60, %v4839_v42  ;;  %v6164_v48 = vpack.i.bf16 %v4821_v32, %v4835_v18  ;;  %v4856_v59 = vrot.slane %v9526_v5, 3  ;;  %v4870_v8 = vrot.slane %v9526_v5, 7  ;;  %v6287_v60 = vld [vmem:[%s9701_s16 + $0x8] sm:$0xff]   ;;  %v6288_v42 = vld [vmem:[%s9701_s16 + $0x10] sm:$0xff]   ;;  %v6290_v32 = vld [vmem:[%s9701_s16 + $0x20] sm:$0xff]  }
 0xabf   : > { %6160 = vrot.lane.b32.xlu1 %v6159_v44, %s10016_s27  ;;  %v6179_v12 = vpack.i.bf16 %v4829_v49, %v4843_v47  ;;  %v4833_v6 = vrot.slane %v9531_v14, 4  ;;  %v4860_v58 = vrot.slane %v9526_v5, 4  ;;  %v6289_v44 = vld [vmem:[%s9701_s16 + $0x18] sm:$0xff]   ;;  %v6291_v18 = vld [vmem:[%s9701_s16 + $0x28] sm:$0xff]  }
 0xac0   : > { %6170 = vrot.lane.b32.xlu0 %v6169_v19, %s10017_s25  ;;  %v6184_v55 = vpack.i.bf16 %v4856_v59, %v4870_v8 }
 0xac3   : > { %6165 = vrot.lane.b32.xlu1 %v6164_v48, %s10016_s27 }
 0xac4   : > { %6175 = vrot.lane.b32.xlu0 %v6174_v4, %s10017_s25  ;;  %s10019_s25 = sld [smem:[#allocation40_spill]] }
 0xac7   : > { %6180 = vrot.lane.b32.xlu1 %v6179_v12, %s10009_s0 }
 0xaca   : > { %s9642_s23 = scalar_lea.hbm %s10019_s25, %s5671_s18 }
 0xacb   : > { %6185 = vrot.lane.b32.xlu1 %v6184_v55, %s10009_s0 }
 0xb31   : > { %v6161_v23 = vpop.permute.xlu1 %6160 }
 0xb32   : > { %v6171_v11 = vpop.permute.xlu0 %6170  ;;  %v6163_v28 = vunpack.i.h.bf16 %v6161_v23  ;;  %v6162_v45 = vunpack.i.l.bf16 %v6161_v23  ;;  %v5293_v23 = vld [vmem:[%s9702_s17] sm:$0x1] }
 0xb33   : > { %v6173_v1 = vunpack.i.h.bf16 %v6171_v11  ;;  %v6172_v52 = vunpack.i.l.bf16 %v6171_v11  ;;  %v4801_v11 = vsub.f32 %v9531_v14, %v9391_v50 }
 0xb34   : > { %v4880_v38 = vsel %vm3282_vm8, %v9526_v5, %v6163_v28  ;;  %v4883_v56 = vsel %vm3282_vm8, %v4860_v58, %v6162_v45 }
 0xb35   : > { %v6166_v22 = vpop.permute.xlu1 %6165 }
 0xb36   : > { %v6168_v41 = vunpack.i.h.bf16 %v6166_v22  ;;  %v6167_v10 = vunpack.i.l.bf16 %v6166_v22  ;;  %v6176_v2 = vpop.permute.xlu0 %6175 }
 0xb37   : > { %v6178_v30 = vunpack.i.h.bf16 %v6176_v2  ;;  %v6177_v40 = vunpack.i.l.bf16 %v6176_v2  ;;  %v4803_v2 = vmul.f32 %v4801_v11, %v4801_v11 }
 0xb38   : > { %v4874_v33 = vsel %vm3282_vm8, %v9531_v14, %v6168_v41  ;;  %v4877_v39 = vsel %vm3282_vm8, %v4833_v6, %v6167_v10 }
 0xb39   : > { %v6181_v7 = vpop.permute.xlu1 %6180  ;;  %v4875_v29 = vsel %vm3300_vm10, %v4874_v33, %v6173_v1  ;;  %v4878_v54 = vsel %vm3300_vm10, %v4877_v39, %v6172_v52  ;;  %v4881_v17 = vsel %vm3300_vm10, %v4880_v38, %v6178_v30  ;;  %v4884_v61 = vsel %vm3300_vm10, %v4883_v56, %v6177_v40 }
 0xb3a   : > { %v6183_v26 = vunpack.i.h.bf16 %v6181_v7  ;;  %v6182_v20 = vunpack.i.l.bf16 %v6181_v7  ;;  %v4802_v1 = vsub.f32 %v9526_v5, %v9393_v0  ;;  %v4805_v52 = vsel %vm3282_vm8, %v4803_v2, 0.0 }
 0xb3c   : > { %v4876_v34 = vsel %vm3318_vm12, %v4875_v29, %v6183_v26  ;;  %v4879_v51 = vsel %vm3318_vm12, %v4878_v54, %v6182_v20  ;;  %v4804_v7 = vmul.f32 %v4802_v1, %v4802_v1 }
 0xb3d   : > { %v4932_v24 = vpack.c.bf16 %v4876_v34, %v4876_v34  ;;  %v6186_v46 = vpop.permute.xlu1 %6185  ;;  %v4933_v62 = vpack.c.bf16 %v4879_v51, %v4879_v51 }
 0xb3e   : > { %v6188_v27 = vunpack.i.h.bf16 %v6186_v46  ;;  %v6187_v31 = vunpack.i.l.bf16 %v6186_v46  ;;  %v4808_v28 = vsel %vm3282_vm8, %v4804_v7, 0.0  ;;  %vm4818_vm8 = vcmask 0  }
 0xb3f   : > { %5225 = vmatprep.mubr.bf16.mxu1 %v4933_v62 }
 0xb40   : > { %v4882_v21 = vsel %vm3318_vm12, %v4881_v17, %v6188_v27  ;;  %5226 = vmatmul.mubr.bf16.vlgmr.msra.gmra.mrb[16].mxu1 %v4932_v24  ;;  %v4885_v15 = vsel %vm3318_vm12, %v4884_v61, %v6187_v31  ;;  %vm5382_vm12 = vcmask 81920  }
 0xb41   : > { %v4934_v57 = vpack.c.bf16 %v4882_v21, %v4882_v21  ;;  %v4935_v9 = vpack.c.bf16 %v4885_v15, %v4885_v15  ;;  %5879 = vmatpush3.bf16.msra.mxu1 %v6286_v37  ;;  %5894 = vmatprep.mubr.msk.bf16.mxu1 %vm6390_vm3, %v6384_v35 }
 0xb42   : > { %5880 = vmatprep.subr.bf16.mxu1 %v6384_v35 }
 0xb43   : > { %5265 = vmatprep.mubr.bf16.mxu0 %v4935_v9 }
 0xb44   : > { %5266 = vmatmul.mubr.bf16.vlgmr.msra.gmra.mrb[32].mxu0 %v4934_v57 }
 0xb45   : > { %5881 = vmatpush3.bf16.msra.mxu1 %v6287_v60 }
 0xb46   : > { %5882 = vmatprep.subr.bf16.mxu1 %v6384_v35 }
 0xb49   : > { %5883 = vmatpush3.bf16.msra.mxu1 %v6288_v42 }
 0xb4a   : > { %5884 = vmatprep.subr.bf16.mxu1 %v6384_v35 }
 0xb4d   : > { %5885 = vmatpush3.bf16.msra.mxu1 %v6289_v44 }
 0xb4e   : > { %5886 = vmatprep.subr.bf16.mxu1 %v6384_v35 }
 0xb51   : > { %5887 = vmatpush3.bf16.msra.mxu1 %v6290_v32 }
 0xb52   : > { %5888 = vmatprep.subr.bf16.mxu1 %v6384_v35 }
 0xb55   : > { %5889 = vmatpush3.bf16.msra.mxu1 %v6291_v18 }
 0xb56   : > { %5890 = vmatprep.subr.bf16.mxu1 %v6384_v35 }
 0xb59   : > { %5891 = vmatpush3.bf16.msra.mxu1 %v6292_v3 }
 0xb5a   : > { %5892 = vmatprep.subr.bf16.mxu1 %v6384_v35 }
 0xb5d   : > { %5893 = vmatpush3.bf16.msra.mxu1 %v6293_v25 }
 0xc13   : > { %v5783_v13 = vpop.f32.mrb[16].mxu1 }
 0xc14   : > { %v5784_v19 = vpop.f32.mrb[17].mxu1 }
 0xc15   : > { %v5785_v16 = vadd.f32 %v5784_v19, %v5783_v13  ;;  %v5786_v63 = vpop.f32.mrb[18].mxu1 }
 0xc16   : > { %v5787_v48 = vpop.f32.mrb[19].mxu1 }
 0xc17   : > { %v5805_v49 = vpop.f32.mrb[32].mxu0  ;;  %v5228_v53 = vadd.f32 %v5785_v16, %v5000_v36 }
 0xc18   : > { %v5806_v47 = vpop.f32.mrb[33].mxu0 }
 0xc19   : > { %v5807_v43 = vadd.f32 %v5806_v47, %v5805_v49  ;;  %v5808_v4 = vpop.f32.mrb[34].mxu0 }
 0xc1a   : > { %v5809_v12 = vpop.f32.mrb[35].mxu0 }
 0xc1b   : > { %v5268_v59 = vadd.f32 %v5807_v43, %v5228_v53 }
 0xc1d   : > { %vm5273_vm10 = vcmp.gt.f32.partialorder %v5268_v59, 0.0  ;;  %v5274_v8 = vmul.f32 0.01, %v5268_v59 }
 0xc1f   : > { %v5275_v35 = vsel %vm5273_vm10, %v5268_v59, %v5274_v8 }
 0xc20   : > { %v5276_v55 = vpack.c.bf16 %v5275_v35, %v5275_v35 }
 0xc22   : > { %5895 = vmatmul.mubr.bf16.vlgmr.msra.gmra.mrb[20].mxu1 %v5276_v55 }
 0xcf5   : > { %v5376_v22 = vpop.f32.mrb[20].mxu1 }
 0xcf6   : > { %v5377_v6 = vadd.f32 %v5376_v22, %v5293_v23  ;;  %v5896_v41 = vpop.f32.mrb[21].mxu1 }
 0xcf7   : > { %v5379_v10 = vpop.f32.mrb[22].mxu1 }
 0xcf8   : > { %v5897_v33 = vpop.f32.mrb[23].mxu1  ;;  %v5383_v39 = vsel %vm5382_vm12, %v5377_v6, -inf }
 0xcf9   : > { %5384 = vmax.xlane.f32.xlu0 %v5383_v39 }
 0xcfd   : > { %4806 = vadd.xlane.f32.xlu0 %v4805_v52 }
 0xd01   : > { %4809 = vadd.xlane.f32.xlu0 %v4808_v28 }
 0xd86   : > { %v5385_v50 = vpop.xlane.xlu0 %5384 }
 0xd87   : > { %v5386_v14 = vsub.f32 %v5377_v6, %v5385_v50 }
 0xd89   : > { %v5387_v45 = vmul.f32 1.442695, %v5386_v14 }
 0xd8a   : > { %v4807_v26 = vpop.xlane.xlu0 %4806 }
 0xd8b   : > { %6294 = vpow2.f32 %v5387_v45 }
 0xd8e   : > { %v4810_v20 = vpop.xlane.xlu0 %4809 }
 0xd8f   : > { %v4811_v30 = vadd.f32 %v4810_v20, %v4807_v26 }
 0xd91   : > { %v4812_v40 = vrot.slane %v4811_v30, 4 }
 0xd93   : > { %v4813_v29 = vadd.f32 %v4812_v40, %v4811_v30 }
 0xd95   : > { %v6295_v0 = vpop.eup %6294  ;;  %v4814_v5 = vrot.slane %v4813_v29, 2 }
 0xd96   : > { %v5389_v54 = vsel %vm5382_vm12, %v6295_v0, 0.0 }
 0xd97   : > { %v4815_v58 = vadd.f32 %v4814_v5, %v4813_v29  ;;  %5390 = vadd.xlane.f32.xlu1 %v5389_v54 }
 0xd99   : > { %v4816_v34 = vrot.slane %v4815_v58, 1 }
 0xd9b   : > { %v4817_v51 = vadd.f32 %v4816_v34, %v4815_v58 }
 0xd9d   : > { %4819 = vst.msk [vmem:[%s640_s1] sm:$0x1] %vm4818_vm8, %v4817_v51 }
 0xe24   : > { %v5391_v24 = vpop.xlane.xlu1 %5390 }
 0xe25   : > { %6296 = vlog2.f32 %v5391_v24 }
 0xe2f   : > { %v6297_v46 = vpop.eup %6296 }
 0xe30   : > { %v5393_v62 = vmul.f32 0.6931472, %v6297_v46 }
 0xe32   : > { %v5394_v37 = vadd.f32 %v5393_v62, %v5385_v50 }
 0xe34   : > { %v5395_v38 = vsub.f32 %v5377_v6, %v5394_v37 }
 0xe36   : > { %5396 = vst.msk [vmem:[%s622_s4] sm:$0x1] %vm5382_vm12, %v5395_v38 }
 0xe37   : > { %6330 = shalt.err (!%p6327_p3)
}
 0xe38   : > { %s6331_s28 = scalar_lea.hbm %s9642_s23, 16  ;;  %s6335_s18 = scalar_lea.hbm %s10019_s25, 32 }
 0xe39   : > { %p6332_p4 = scmp.ne.s32.totalorder %s9642_s23, %s6331_s28  ;;  %p6336_p9 = scmp.lt.u32.totalorder %s9642_s23, %s10019_s25 }
 0xe3a   : > { %p6337_p10 = scmp.lt.u32.totalorder %s6335_s18, %s6331_s28  ;;  %p6339_p12 = scmp.lt.u32.totalorder %s6331_s28, %s9642_s23 }
 0xe3b   : > { %p6333_p7 = pnand %p6332_p4, %p6535_p5 }
 0xe3c   : > { %p6338_p11 = por %p6337_p10, %p6336_p9 }
 0xe3d   : > { %p6334_p8 = pneg %p6333_p7 }
 0xe3e   : > { %p6340_p13 = por %p6339_p12, %p6338_p11 }
 0xe40   : > { %p6341_p0 = pnand %p6340_p13, %p6334_p8 }
 0xe42   : > { %6344 = shalt.err (!%p6341_p0)
}
 0xe43   : > { %5923 = dma.vmem_to_hbm [thread:$0]  (%p6535_p5), %s9644_s21, 16, %s9642_s23, %s5398_s30  }
 0xe44 PF: > { %s10020_s27 = sld [smem:[#allocation7_spill]]  ;;  %s10021_s29 = sld [smem:[#allocation5_spill]] }
 0xe4a   : > { %p5929_p1 = scmp.ge.s32.totalorder %s10020_s27, 2  ;;  %s5434_s3 = sand.u32 1, %s10021_s29  }
 0xe4b   : > { %s5435_s26 = scalar_lea.sflag [#allocation3], %s5434_s3 }
 0xe4c   : > { %p5926_p2 = pnand %p5929_p1, %p6539_p6 }
 0xe4e   : > { %6362 = dma.done.wait (!%p5926_p2), %s5435_s26, 16  }
 0xe4f   : > { %6364 = vsyncadd (!%p5926_p2), %s5435_s26, 4294967280  ;;  %s10023_s24 = sld [smem:[#allocation8_spill]]  ;;  %s10024_s28 = sld [smem:[#allocation6_spill]] }
 0xe50   : > { %s10025_s23 = sld [smem:[#allocation9_spill]]  ;;  %s10026_s1 = smov %s6371_s22 }
 0xe55   : > { %p31_p3 = scmp.ge.s32.totalorder %s10023_s24, 4   ;;  %s10027_s22 = smov %s10024_s28 }
 0xe57   :  { %33 = sbr.rel (!%p31_p3) target bundleno = 11 (0xb), region = 151 }
 0xe5e   :  { %5451 = vsyncpa [#allocation3], 1 }
 0xe5f   :  { %5453 = vsyncpa [#allocation3 + $0x1], 1 }

</bundles_post_ra>
